<compile_context>
chip_gen: v7x
topology: tpu7x:2x2x1
jax: 0.10.0
libtpu: 0.0.40
codegen_flags: <defaults>
</compile_context>

<pallas_src>
import functools

import jax
import jax.numpy as jnp
from jax.experimental import pallas as pl
from jax.experimental.pallas import tpu as pltpu

HIDDEN = 300   # fixed by the module definition
_LANES = 128
_SUBLANES = 8


def _round_up(x, m):
    return (x + m - 1) // m * m


def _cdiv(a, b):
    return (a + b - 1) // b


def _vmem_limit_bytes():
    """Per-generation VMEM limit: leave headroom below physical capacity."""
    cap = 128 * 1024 * 1024
    try:
        info = pltpu.get_tpu_info()
        cap = int(getattr(info, "vmem_capacity_bytes", cap))
    except Exception:
        pass
    # ~100 MiB on 128 MiB parts (v5e/v6e), ~52 MiB on 64 MiB parts (v7x).
    return max(32 * 1024 * 1024,
               min(100 * 1024 * 1024, cap - 12 * 1024 * 1024))


def _autoencoder_kernel(x_ref,
                        w1_ref, b1_ref,   # encoder layer 1: [Dp, Hp], [1, Hp]
                        w2_ref, b2_ref,   # encoder layer 2: [Hp, Zp], [1, Zp]
                        w3_ref, b3_ref,   # decoder layer 1: [Zp, Hp], [1, Hp]
                        w4_ref, b4_ref,   # decoder layer 2: [Hp, Dp], [1, Dp]
                        dec_ref, enc_ref):
    """Full autoencoder forward for one batch tile; all 4 matmuls on the MXU.

    All feature dims are 128-lane multiples, so every matmul, bias-add, ReLU
    and store is fully dense (no masked lane tails)."""
    f32 = jnp.float32
    cd = w1_ref.dtype                      # matmul compute dtype (bf16 or f32)

    x = x_ref[...].astype(cd)

    # ---- encoder ----
    h1 = jnp.dot(x, w1_ref[...], preferred_element_type=f32)
    h1 = jnp.maximum(h1 + b1_ref[...].astype(f32), 0.0)          # ReLU in f32
    enc = jnp.dot(h1.astype(cd), w2_ref[...], preferred_element_type=f32)
    enc = enc + b2_ref[...].astype(f32)

    # ---- decoder ----
    h2 = jnp.dot(enc.astype(cd), w3_ref[...], preferred_element_type=f32)
    h2 = jnp.maximum(h2 + b3_ref[...].astype(f32), 0.0)          # ReLU in f32
    dec = jnp.dot(h2.astype(cd), w4_ref[...], preferred_element_type=f32)
    dec = dec + b4_ref[...].astype(f32)

    # Lane-dense stores (all output feature dims are multiples of 128 lanes).
    enc_ref[...] = enc.astype(enc_ref.dtype)
    dec_ref[...] = dec.astype(dec_ref.dtype)


@functools.partial(
    jax.jit,
    static_argnames=("batch_tile", "out_dtype", "single_buffer_weights"))
def autoencoder_forward(x, params, *, batch_tile=512, out_dtype=None,
                        single_buffer_weights=True):
    """Autoencoder forward pass as one fused Pallas kernel.

    x: [B, input_dim]; params: dict of pre-transposed weights (see init_params).
    Returns (decoded [B, input_dim], encoded [B, bottleneck_dim]).

    Note: with out_dtype=bf16 the returned `encoded` is rounded to bf16 while
    the decoder internally consumes the f32 encoding, so decoded may differ
    slightly from re-decoding the returned (rounded) encoding.
    """
    B, D = x.shape
    w1, b1 = params["w1"], params["b1"]   # [D, H], [1, H]
    w2, b2 = params["w2"], params["b2"]   # [H, Z], [1, Z]
    w3, b3 = params["w3"], params["b3"]   # [Z, H], [1, H]
    w4, b4 = params["w4"], params["b4"]   # [H, D], [1, D]
    H = w1.shape[1]
    Z = w2.shape[1]
    out_dtype = x.dtype if out_dtype is None else out_dtype

    # --- lane-dense padding of ALL feature dims to 128-lane multiples -------
    Dp = _round_up(D, _LANES)   # input contraction + decoder output lanes
    Hp = _round_up(H, _LANES)   # hidden 300 -> 384
    Zp = _round_up(Z, _LANES)   # bottleneck output lanes

    if Dp != D:
        w1 = jnp.pad(w1, ((0, Dp - D), (0, 0)))          # contraction rows
        w4 = jnp.pad(w4, ((0, 0), (0, Dp - D)))          # output cols
        b4 = jnp.pad(b4, ((0, 0), (0, Dp - D)))
    if Hp != H:
        w1 = jnp.pad(w1, ((0, 0), (0, Hp - H)))
        b1 = jnp.pad(b1, ((0, 0), (0, Hp - H)))
        w2 = jnp.pad(w2, ((0, Hp - H), (0, 0)))
        w3 = jnp.pad(w3, ((0, 0), (0, Hp - H)))
        b3 = jnp.pad(b3, ((0, 0), (0, Hp - H)))
        w4 = jnp.pad(w4, ((0, Hp - H), (0, 0)))
    if Zp != Z:
        w2 = jnp.pad(w2, ((0, 0), (0, Zp - Z)))
        b2 = jnp.pad(b2, ((0, 0), (0, Zp - Z)))
        w3 = jnp.pad(w3, ((0, Zp - Z), (0, 0)))

    # --- batch tiling: >= 2 grid steps (v7x megacore) and balanced tiles ----
    num_steps = max(2, _cdiv(B, batch_tile))
    tb = max(_SUBLANES, _round_up(_cdiv(B, num_steps), _SUBLANES))
    Bp = _round_up(B, tb)
    grid = (Bp // tb,)

    xp = x
    if Bp != B or Dp != D:
        xp = jnp.pad(x, ((0, Bp - B), (0, Dp - D)))

    # Weights/biases are identical for every grid step: keep a single VMEM
    # copy instead of the default double-buffer (frees VMEM for bigger tiles).
    def w_spec(shape):
        idx = lambda i: (0,) * len(shape)
        if single_buffer_weights:
            return pl.BlockSpec(shape, idx, pipeline_mode=pl.Buffered(1))
        return pl.BlockSpec(shape, idx)

    # Advisory cost estimate so XLA schedules well around the custom call.
    out_isz = jnp.dtype(out_dtype).itemsize
    w_bytes = sum(int(a.size) * a.dtype.itemsize
                  for a in (w1, b1, w2, b2, w3, b3, w4, b4))
    cost = pl.CostEstimate(
        flops=2 * Bp * (Dp * Hp + Hp * Zp + Zp * Hp + Hp * Dp),
        transcendentals=0,
        bytes_accessed=int(xp.size) * xp.dtype.itemsize + w_bytes
                       + Bp * Dp * out_isz + Bp * Zp * out_isz,
    )

    dec_p, enc_p = pl.pallas_call(
        _autoencoder_kernel,
        out_shape=(
            jax.ShapeDtypeStruct((Bp, Dp), out_dtype),   # decoded (padded)
            jax.ShapeDtypeStruct((Bp, Zp), out_dtype),   # encoded (padded)
        ),
        grid_spec=pltpu.PrefetchScalarGridSpec(
            num_scalar_prefetch=0,
            grid=grid,
            in_specs=[
                pl.BlockSpec((tb, Dp), lambda i: (i, 0)),   # x tile
                w_spec((Dp, Hp)), w_spec((1, Hp)),          # encoder layer 1
                w_spec((Hp, Zp)), w_spec((1, Zp)),          # encoder layer 2
                w_spec((Zp, Hp)), w_spec((1, Hp)),          # decoder layer 1
                w_spec((Hp, Dp)), w_spec((1, Dp)),          # decoder layer 2
            ],
            out_specs=[
                pl.BlockSpec((tb, Dp), lambda i: (i, 0)),   # decoded tile
                pl.BlockSpec((tb, Zp), lambda i: (i, 0)),   # encoded tile
            ],
        ),
        compiler_params=pltpu.CompilerParams(
            dimension_semantics=("parallel",),      # megacore-shard the batch
            vmem_limit_bytes=_vmem_limit_bytes(),
        ),
        cost_estimate=cost,
    )(xp, w1, b1, w2, b2, w3, b3, w4, b4)

    return dec_p[:B, :D], enc_p[:B, :Z]


def init_params(key, input_dim, bottleneck_dim, dtype=jnp.float32):
    """Init matching the PyTorch module's shapes.

    Weights: kaiming-normal (fan_in, relu) as in the module's init loop,
    stored pre-transposed as [in, out]. Biases: PyTorch Linear default
    U(-1/sqrt(fan_in), 1/sqrt(fan_in)).  bf16 dtype recommended on v5e.
    """
    H = HIDDEN

    def linear(key, fan_in, fan_out):
        kw, kb = jax.random.split(key)
        std = (2.0 / fan_in) ** 0.5
        w = (jax.random.normal(kw, (fan_in, fan_out), jnp.float32) * std).astype(dtype)
        bound = 1.0 / (fan_in ** 0.5)
        b = jax.random.uniform(kb, (1, fan_out), jnp.float32, -bound, bound).astype(dtype)
        return w, b

    k1, k2, k3, k4 = jax.random.split(key, 4)
    w1, b1 = linear(k1, input_dim, H)
    w2, b2 = linear(k2, H, bottleneck_dim)
    w3, b3 = linear(k3, bottleneck_dim, H)
    w4, b4 = linear(k4, H, input_dim)
    return dict(w1=w1, b1=b1, w2=w2, b2=b2, w3=w3, b3=b3, w4=w4, b4=b4)


def reference_forward(x, params, compute_dtype=None):
    """Plain-JAX reference mirroring the kernel's casting points."""
    f32 = jnp.float32
    cd = params["w1"].dtype if compute_dtype is None else compute_dtype
    mm = lambda a, w: jnp.dot(a.astype(cd), w.astype(cd), preferred_element_type=f32)
    h1 = jnp.maximum(mm(x, params["w1"]) + params["b1"].astype(f32), 0.0)
    enc = mm(h1, params["w2"]) + params["b2"].astype(f32)
    h2 = jnp.maximum(mm(enc, params["w3"]) + params["b3"].astype(f32), 0.0)
    dec = mm(h2, params["w4"]) + params["b4"].astype(f32)
    return dec, enc


if __name__ == "__main__":
    key = jax.random.PRNGKey(0)
    kx, kp = jax.random.split(key)

    batch = 32
    input_dim = 64
    bottleneck_dim = 32

    def run(x, params, **kw):
        # pl.Buffered(1) (single-buffered grid-invariant weights) is a newer
        # pipeline knob; fall back to default double-buffering if rejected.
        try:
            return jax.block_until_ready(autoencoder_forward(x, params, **kw))
        except Exception:
            return jax.block_until_ready(
                autoencoder_forward(x, params, single_buffer_weights=False, **kw))

    # ---- f32 path (tight check); grid of >=2 tiles exercised by default ----
    params = init_params(kp, input_dim, bottleneck_dim, dtype=jnp.float32)
    x = jax.random.normal(kx, (batch, input_dim), jnp.float32)
    dec, enc = run(x, params)
    dec_ref, enc_ref = reference_forward(x, params)
    assert dec.shape == (batch, input_dim) and enc.shape == (batch, bottleneck_dim)
    assert jnp.allclose(dec, dec_ref, atol=2e-4, rtol=2e-4)
    assert jnp.allclose(enc, enc_ref, atol=2e-4, rtol=2e-4)

    # ---- bf16 matmul path with f32 accumulation (looser check) ----
    params16 = jax.tree_util.tree_map(lambda p: p.astype(jnp.bfloat16), params)
    x16 = x.astype(jnp.bfloat16)
    dec16, enc16 = run(x16, params16, out_dtype=jnp.float32)
    dec16_ref, enc16_ref = reference_forward(x16, params16)
    assert jnp.allclose(dec16, dec16_ref, atol=2e-2, rtol=2e-2)
    assert jnp.allclose(enc16, enc16_ref, atol=2e-2, rtol=2e-2)

    # ---- ragged batch (exercises balanced batch padding path) ----
    x_odd = x[:19]
    dec_o, enc_o = run(x_odd, params)
    dec_o_ref, enc_o_ref = reference_forward(x_odd, params)
    assert dec_o.shape == (19, input_dim) and enc_o.shape == (19, bottleneck_dim)
    assert jnp.allclose(dec_o, dec_o_ref, atol=2e-4, rtol=2e-4)
    assert jnp.allclose(enc_o, enc_o_ref, atol=2e-4, rtol=2e-4)

    print("KERNEL_OK")
</pallas_src>

<mosaic_0001>
module attributes {stable_mosaic.version = 11 : i64} {
  func.func @_autoencoder_kernel(%arg0: i32, %arg1: memref<16x128xf32, #tpu.memory_space<vmem>>, %arg2: memref<128x384xf32, #tpu.memory_space<vmem>>, %arg3: memref<1x384xf32, #tpu.memory_space<vmem>>, %arg4: memref<384x128xf32, #tpu.memory_space<vmem>>, %arg5: memref<1x128xf32, #tpu.memory_space<vmem>>, %arg6: memref<128x384xf32, #tpu.memory_space<vmem>>, %arg7: memref<1x384xf32, #tpu.memory_space<vmem>>, %arg8: memref<384x128xf32, #tpu.memory_space<vmem>>, %arg9: memref<1x128xf32, #tpu.memory_space<vmem>>, %arg10: memref<16x128xf32, #tpu.memory_space<vmem>>, %arg11: memref<16x128xf32, #tpu.memory_space<vmem>>) attributes {dimension_semantics = [#tpu.dimension_semantics<parallel>], iteration_bounds = array<i64: 2>, scalar_prefetch = 0 : i64, scratch_operands = 0 : i64, tpu.core_type = #tpu.core_type<tc>, window_params = [{transform_indices = @transform_0, window_bounds = array<i64: 16, 128>}, {pipeline_mode = #tpu.pipeline_mode<synchronous>, transform_indices = @transform_1, window_bounds = array<i64: 128, 384>}, {pipeline_mode = #tpu.pipeline_mode<synchronous>, transform_indices = @transform_2, window_bounds = array<i64: 1, 384>}, {pipeline_mode = #tpu.pipeline_mode<synchronous>, transform_indices = @transform_3, window_bounds = array<i64: 384, 128>}, {pipeline_mode = #tpu.pipeline_mode<synchronous>, transform_indices = @transform_4, window_bounds = array<i64: 1, 128>}, {pipeline_mode = #tpu.pipeline_mode<synchronous>, transform_indices = @transform_5, window_bounds = array<i64: 128, 384>}, {pipeline_mode = #tpu.pipeline_mode<synchronous>, transform_indices = @transform_6, window_bounds = array<i64: 1, 384>}, {pipeline_mode = #tpu.pipeline_mode<synchronous>, transform_indices = @transform_7, window_bounds = array<i64: 384, 128>}, {pipeline_mode = #tpu.pipeline_mode<synchronous>, transform_indices = @transform_8, window_bounds = array<i64: 1, 128>}, {transform_indices = @transform_9, window_bounds = array<i64: 16, 128>}, {transform_indices = @transform_10, window_bounds = array<i64: 16, 128>}]} {
    %c0 = arith.constant 0 : index
    %c0_0 = arith.constant 0 : index
    %0 = vector.load %arg1[%c0, %c0_0] : memref<16x128xf32, #tpu.memory_space<vmem>>, vector<16x128xf32>
    %c0_1 = arith.constant 0 : index
    %c0_2 = arith.constant 0 : index
    %1 = vector.load %arg2[%c0_1, %c0_2] : memref<128x384xf32, #tpu.memory_space<vmem>>, vector<128x384xf32>
    %cst = arith.constant dense<0.000000e+00> : vector<16x384xf32>
    %2 = tpu.matmul %0, %1, %cst {dimension_numbers = #tpu.dot_dimension_numbers<[1], [0], [0], [1], [0, 0, 1, 1], [], []>} : vector<16x128xf32>, vector<128x384xf32>, vector<16x384xf32> -> vector<16x384xf32>
    %c0_3 = arith.constant 0 : index
    %c0_4 = arith.constant 0 : index
    %3 = vector.load %arg3[%c0_3, %c0_4] : memref<1x384xf32, #tpu.memory_space<vmem>>, vector<1x384xf32>
    %4 = vector.broadcast %3 : vector<1x384xf32> to vector<16x384xf32>
    %5 = arith.addf %2, %4 : vector<16x384xf32>
    %cst_5 = arith.constant 0.000000e+00 : f32
    %6 = vector.broadcast %cst_5 : f32 to vector<16x384xf32>
    %7 = arith.maximumf %5, %6 : vector<16x384xf32>
    %c0_6 = arith.constant 0 : index
    %c0_7 = arith.constant 0 : index
    %8 = vector.load %arg4[%c0_6, %c0_7] : memref<384x128xf32, #tpu.memory_space<vmem>>, vector<384x128xf32>
    %cst_8 = arith.constant dense<0.000000e+00> : vector<16x128xf32>
    %9 = tpu.matmul %7, %8, %cst_8 {dimension_numbers = #tpu.dot_dimension_numbers<[1], [0], [0], [1], [0, 0, 1, 1], [], []>} : vector<16x384xf32>, vector<384x128xf32>, vector<16x128xf32> -> vector<16x128xf32>
    %c0_9 = arith.constant 0 : index
    %c0_10 = arith.constant 0 : index
    %10 = vector.load %arg5[%c0_9, %c0_10] : memref<1x128xf32, #tpu.memory_space<vmem>>, vector<1x128xf32>
    %11 = vector.broadcast %10 : vector<1x128xf32> to vector<16x128xf32>
    %12 = arith.addf %9, %11 : vector<16x128xf32>
    %c0_11 = arith.constant 0 : index
    %c0_12 = arith.constant 0 : index
    %13 = vector.load %arg6[%c0_11, %c0_12] : memref<128x384xf32, #tpu.memory_space<vmem>>, vector<128x384xf32>
    %cst_13 = arith.constant dense<0.000000e+00> : vector<16x384xf32>
    %14 = tpu.matmul %12, %13, %cst_13 {dimension_numbers = #tpu.dot_dimension_numbers<[1], [0], [0], [1], [0, 0, 1, 1], [], []>} : vector<16x128xf32>, vector<128x384xf32>, vector<16x384xf32> -> vector<16x384xf32>
    %c0_14 = arith.constant 0 : index
    %c0_15 = arith.constant 0 : index
    %15 = vector.load %arg7[%c0_14, %c0_15] : memref<1x384xf32, #tpu.memory_space<vmem>>, vector<1x384xf32>
    %16 = vector.broadcast %15 : vector<1x384xf32> to vector<16x384xf32>
    %17 = arith.addf %14, %16 : vector<16x384xf32>
    %cst_16 = arith.constant 0.000000e+00 : f32
    %18 = vector.broadcast %cst_16 : f32 to vector<16x384xf32>
    %19 = arith.maximumf %17, %18 : vector<16x384xf32>
    %c0_17 = arith.constant 0 : index
    %c0_18 = arith.constant 0 : index
    %20 = vector.load %arg8[%c0_17, %c0_18] : memref<384x128xf32, #tpu.memory_space<vmem>>, vector<384x128xf32>
    %cst_19 = arith.constant dense<0.000000e+00> : vector<16x128xf32>
    %21 = tpu.matmul %19, %20, %cst_19 {dimension_numbers = #tpu.dot_dimension_numbers<[1], [0], [0], [1], [0, 0, 1, 1], [], []>} : vector<16x384xf32>, vector<384x128xf32>, vector<16x128xf32> -> vector<16x128xf32>
    %c0_20 = arith.constant 0 : index
    %c0_21 = arith.constant 0 : index
    %22 = vector.load %arg9[%c0_20, %c0_21] : memref<1x128xf32, #tpu.memory_space<vmem>>, vector<1x128xf32>
    %23 = vector.broadcast %22 : vector<1x128xf32> to vector<16x128xf32>
    %24 = arith.addf %21, %23 : vector<16x128xf32>
    %c0_22 = arith.constant 0 : index
    %c0_23 = arith.constant 0 : index
    %25 = vector.load %arg11[%c0_22, %c0_23] : memref<16x128xf32, #tpu.memory_space<vmem>>, vector<16x128xf32>
    tpu.vector_store %arg11[%c0_22, %c0_23], %12 {strides = array<i32>} : memref<16x128xf32, #tpu.memory_space<vmem>>, vector<16x128xf32>,
    %c0_24 = arith.constant 0 : index
    %c0_25 = arith.constant 0 : index
    %26 = vector.load %arg10[%c0_24, %c0_25] : memref<16x128xf32, #tpu.memory_space<vmem>>, vector<16x128xf32>
    tpu.vector_store %arg10[%c0_24, %c0_25], %24 {strides = array<i32>} : memref<16x128xf32, #tpu.memory_space<vmem>>, vector<16x128xf32>,
    return
  }
  func.func @transform_0(%arg0: i32) -> (i32, i32) {
    %c0_i32 = arith.constant 0 : i32
    %c0_i32_0 = arith.constant 0 : i32
    return %arg0, %c0_i32 : i32, i32
  }
  func.func @transform_1(%arg0: i32) -> (i32, i32) {
    %c0_i32 = arith.constant 0 : i32
    %c0_i32_0 = arith.constant 0 : i32
    %c0_i32_1 = arith.constant 0 : i32
    return %c0_i32, %c0_i32_0 : i32, i32
  }
  func.func @transform_2(%arg0: i32) -> (i32, i32) {
    %c0_i32 = arith.constant 0 : i32
    %c0_i32_0 = arith.constant 0 : i32
    %c0_i32_1 = arith.constant 0 : i32
    return %c0_i32, %c0_i32_0 : i32, i32
  }
  func.func @transform_3(%arg0: i32) -> (i32, i32) {
    %c0_i32 = arith.constant 0 : i32
    %c0_i32_0 = arith.constant 0 : i32
    %c0_i32_1 = arith.constant 0 : i32
    return %c0_i32, %c0_i32_0 : i32, i32
  }
  func.func @transform_4(%arg0: i32) -> (i32, i32) {
    %c0_i32 = arith.constant 0 : i32
    %c0_i32_0 = arith.constant 0 : i32
    %c0_i32_1 = arith.constant 0 : i32
    return %c0_i32, %c0_i32_0 : i32, i32
  }
  func.func @transform_5(%arg0: i32) -> (i32, i32) {
    %c0_i32 = arith.constant 0 : i32
    %c0_i32_0 = arith.constant 0 : i32
    %c0_i32_1 = arith.constant 0 : i32
    return %c0_i32, %c0_i32_0 : i32, i32
  }
  func.func @transform_6(%arg0: i32) -> (i32, i32) {
    %c0_i32 = arith.constant 0 : i32
    %c0_i32_0 = arith.constant 0 : i32
    %c0_i32_1 = arith.constant 0 : i32
    return %c0_i32, %c0_i32_0 : i32, i32
  }
  func.func @transform_7(%arg0: i32) -> (i32, i32) {
    %c0_i32 = arith.constant 0 : i32
    %c0_i32_0 = arith.constant 0 : i32
    %c0_i32_1 = arith.constant 0 : i32
    return %c0_i32, %c0_i32_0 : i32, i32
  }
  func.func @transform_8(%arg0: i32) -> (i32, i32) {
    %c0_i32 = arith.constant 0 : i32
    %c0_i32_0 = arith.constant 0 : i32
    %c0_i32_1 = arith.constant 0 : i32
    return %c0_i32, %c0_i32_0 : i32, i32
  }
  func.func @transform_9(%arg0: i32) -> (i32, i32) {
    %c0_i32 = arith.constant 0 : i32
    %c0_i32_0 = arith.constant 0 : i32
    return %arg0, %c0_i32 : i32, i32
  }
  func.func @transform_10(%arg0: i32) -> (i32, i32) {
    %c0_i32 = arith.constant 0 : i32
    %c0_i32_0 = arith.constant 0 : i32
    return %arg0, %c0_i32 : i32, i32
  }
}

module attributes {stable_mosaic.version = 11 : i64} {
  func.func @_autoencoder_kernel(%arg0: i32, %arg1: memref<16x128xf32, #tpu.memory_space<vmem>>, %arg2: memref<128x384xf32, #tpu.memory_space<vmem>>, %arg3: memref<1x384xf32, #tpu.memory_space<vmem>>, %arg4: memref<384x128xf32, #tpu.memory_space<vmem>>, %arg5: memref<1x128xf32, #tpu.memory_space<vmem>>, %arg6: memref<128x384xf32, #tpu.memory_space<vmem>>, %arg7: memref<1x384xf32, #tpu.memory_space<vmem>>, %arg8: memref<384x128xf32, #tpu.memory_space<vmem>>, %arg9: memref<1x128xf32, #tpu.memory_space<vmem>>, %arg10: memref<16x128xf32, #tpu.memory_space<vmem>>, %arg11: memref<16x128xf32, #tpu.memory_space<vmem>>) attributes {dimension_semantics = [#tpu.dimension_semantics<parallel>], iteration_bounds = array<i64: 2>, scalar_prefetch = 0 : i64, scratch_operands = 0 : i64, tpu.core_type = #tpu.core_type<tc>, window_params = [{transform_indices = @transform_0, window_bounds = array<i64: 16, 128>}, {pipeline_mode = #tpu.pipeline_mode<synchronous>, transform_indices = @transform_1, window_bounds = array<i64: 128, 384>}, {pipeline_mode = #tpu.pipeline_mode<synchronous>, transform_indices = @transform_2, window_bounds = array<i64: 1, 384>}, {pipeline_mode = #tpu.pipeline_mode<synchronous>, transform_indices = @transform_3, window_bounds = array<i64: 384, 128>}, {pipeline_mode = #tpu.pipeline_mode<synchronous>, transform_indices = @transform_4, window_bounds = array<i64: 1, 128>}, {pipeline_mode = #tpu.pipeline_mode<synchronous>, transform_indices = @transform_5, window_bounds = array<i64: 128, 384>}, {pipeline_mode = #tpu.pipeline_mode<synchronous>, transform_indices = @transform_6, window_bounds = array<i64: 1, 384>}, {pipeline_mode = #tpu.pipeline_mode<synchronous>, transform_indices = @transform_7, window_bounds = array<i64: 384, 128>}, {pipeline_mode = #tpu.pipeline_mode<synchronous>, transform_indices = @transform_8, window_bounds = array<i64: 1, 128>}, {transform_indices = @transform_9, window_bounds = array<i64: 16, 128>}, {transform_indices = @transform_10, window_bounds = array<i64: 16, 128>}]} {
    %c0 = arith.constant 0 : index
    %c0_0 = arith.constant 0 : index
    %0 = vector.load %arg1[%c0, %c0_0] : memref<16x128xf32, #tpu.memory_space<vmem>>, vector<16x128xf32>
    %c0_1 = arith.constant 0 : index
    %c0_2 = arith.constant 0 : index
    %1 = vector.load %arg2[%c0_1, %c0_2] : memref<128x384xf32, #tpu.memory_space<vmem>>, vector<128x384xf32>
    %cst = arith.constant dense<0.000000e+00> : vector<16x384xf32>
    %2 = tpu.matmul %0, %1, %cst {dimension_numbers = #tpu.dot_dimension_numbers<[1], [0], [0], [1], [0, 0, 1, 1], [], []>} : vector<16x128xf32>, vector<128x384xf32>, vector<16x384xf32> -> vector<16x384xf32>
    %c0_3 = arith.constant 0 : index
    %c0_4 = arith.constant 0 : index
    %3 = vector.load %arg3[%c0_3, %c0_4] : memref<1x384xf32, #tpu.memory_space<vmem>>, vector<1x384xf32>
    %4 = vector.broadcast %3 : vector<1x384xf32> to vector<16x384xf32>
    %5 = arith.addf %2, %4 : vector<16x384xf32>
    %cst_5 = arith.constant 0.000000e+00 : f32
    %6 = vector.broadcast %cst_5 : f32 to vector<16x384xf32>
    %7 = arith.maximumf %5, %6 : vector<16x384xf32>
    %c0_6 = arith.constant 0 : index
    %c0_7 = arith.constant 0 : index
    %8 = vector.load %arg4[%c0_6, %c0_7] : memref<384x128xf32, #tpu.memory_space<vmem>>, vector<384x128xf32>
    %cst_8 = arith.constant dense<0.000000e+00> : vector<16x128xf32>
    %9 = tpu.matmul %7, %8, %cst_8 {dimension_numbers = #tpu.dot_dimension_numbers<[1], [0], [0], [1], [0, 0, 1, 1], [], []>} : vector<16x384xf32>, vector<384x128xf32>, vector<16x128xf32> -> vector<16x128xf32>
    %c0_9 = arith.constant 0 : index
    %c0_10 = arith.constant 0 : index
    %10 = vector.load %arg5[%c0_9, %c0_10] : memref<1x128xf32, #tpu.memory_space<vmem>>, vector<1x128xf32>
    %11 = vector.broadcast %10 : vector<1x128xf32> to vector<16x128xf32>
    %12 = arith.addf %9, %11 : vector<16x128xf32>
    %c0_11 = arith.constant 0 : index
    %c0_12 = arith.constant 0 : index
    %13 = vector.load %arg6[%c0_11, %c0_12] : memref<128x384xf32, #tpu.memory_space<vmem>>, vector<128x384xf32>
    %cst_13 = arith.constant dense<0.000000e+00> : vector<16x384xf32>
    %14 = tpu.matmul %12, %13, %cst_13 {dimension_numbers = #tpu.dot_dimension_numbers<[1], [0], [0], [1], [0, 0, 1, 1], [], []>} : vector<16x128xf32>, vector<128x384xf32>, vector<16x384xf32> -> vector<16x384xf32>
    %c0_14 = arith.constant 0 : index
    %c0_15 = arith.constant 0 : index
    %15 = vector.load %arg7[%c0_14, %c0_15] : memref<1x384xf32, #tpu.memory_space<vmem>>, vector<1x384xf32>
    %16 = vector.broadcast %15 : vector<1x384xf32> to vector<16x384xf32>
    %17 = arith.addf %14, %16 : vector<16x384xf32>
    %cst_16 = arith.constant 0.000000e+00 : f32
    %18 = vector.broadcast %cst_16 : f32 to vector<16x384xf32>
    %19 = arith.maximumf %17, %18 : vector<16x384xf32>
    %c0_17 = arith.constant 0 : index
    %c0_18 = arith.constant 0 : index
    %20 = vector.load %arg8[%c0_17, %c0_18] : memref<384x128xf32, #tpu.memory_space<vmem>>, vector<384x128xf32>
    %cst_19 = arith.constant dense<0.000000e+00> : vector<16x128xf32>
    %21 = tpu.matmul %19, %20, %cst_19 {dimension_numbers = #tpu.dot_dimension_numbers<[1], [0], [0], [1], [0, 0, 1, 1], [], []>} : vector<16x384xf32>, vector<384x128xf32>, vector<16x128xf32> -> vector<16x128xf32>
    %c0_20 = arith.constant 0 : index
    %c0_21 = arith.constant 0 : index
    %22 = vector.load %arg9[%c0_20, %c0_21] : memref<1x128xf32, #tpu.memory_space<vmem>>, vector<1x128xf32>
    %23 = vector.broadcast %22 : vector<1x128xf32> to vector<16x128xf32>
    %24 = arith.addf %21, %23 : vector<16x128xf32>
    %c0_22 = arith.constant 0 : index
    %c0_23 = arith.constant 0 : index
    %25 = vector.load %arg11[%c0_22, %c0_23] : memref<16x128xf32, #tpu.memory_space<vmem>>, vector<16x128xf32>
    tpu.vector_store %arg11[%c0_22, %c0_23], %12 {strides = array<i32>} : memref<16x128xf32, #tpu.memory_space<vmem>>, vector<16x128xf32>,
    %c0_24 = arith.constant 0 : index
    %c0_25 = arith.constant 0 : index
    %26 = vector.load %arg10[%c0_24, %c0_25] : memref<16x128xf32, #tpu.memory_space<vmem>>, vector<16x128xf32>
    tpu.vector_store %arg10[%c0_24, %c0_25], %24 {strides = array<i32>} : memref<16x128xf32, #tpu.memory_space<vmem>>, vector<16x128xf32>,
    return
  }
  func.func @transform_0(%arg0: i32) -> (i32, i32) {
    %c0_i32 = arith.constant 0 : i32
    %c0_i32_0 = arith.constant 0 : i32
    return %arg0, %c0_i32 : i32, i32
  }
  func.func @transform_1(%arg0: i32) -> (i32, i32) {
    %c0_i32 = arith.constant 0 : i32
    %c0_i32_0 = arith.constant 0 : i32
    %c0_i32_1 = arith.constant 0 : i32
    return %c0_i32, %c0_i32_0 : i32, i32
  }
  func.func @transform_2(%arg0: i32) -> (i32, i32) {
    %c0_i32 = arith.constant 0 : i32
    %c0_i32_0 = arith.constant 0 : i32
    %c0_i32_1 = arith.constant 0 : i32
    return %c0_i32, %c0_i32_0 : i32, i32
  }
  func.func @transform_3(%arg0: i32) -> (i32, i32) {
    %c0_i32 = arith.constant 0 : i32
    %c0_i32_0 = arith.constant 0 : i32
    %c0_i32_1 = arith.constant 0 : i32
    return %c0_i32, %c0_i32_0 : i32, i32
  }
  func.func @transform_4(%arg0: i32) -> (i32, i32) {
    %c0_i32 = arith.constant 0 : i32
    %c0_i32_0 = arith.constant 0 : i32
    %c0_i32_1 = arith.constant 0 : i32
    return %c0_i32, %c0_i32_0 : i32, i32
  }
  func.func @transform_5(%arg0: i32) -> (i32, i32) {
    %c0_i32 = arith.constant 0 : i32
    %c0_i32_0 = arith.constant 0 : i32
    %c0_i32_1 = arith.constant 0 : i32
    return %c0_i32, %c0_i32_0 : i32, i32
  }
  func.func @transform_6(%arg0: i32) -> (i32, i32) {
    %c0_i32 = arith.constant 0 : i32
    %c0_i32_0 = arith.constant 0 : i32
    %c0_i32_1 = arith.constant 0 : i32
    return %c0_i32, %c0_i32_0 : i32, i32
  }
  func.func @transform_7(%arg0: i32) -> (i32, i32) {
    %c0_i32 = arith.constant 0 : i32
    %c0_i32_0 = arith.constant 0 : i32
    %c0_i32_1 = arith.constant 0 : i32
    return %c0_i32, %c0_i32_0 : i32, i32
  }
  func.func @transform_8(%arg0: i32) -> (i32, i32) {
    %c0_i32 = arith.constant 0 : i32
    %c0_i32_0 = arith.constant 0 : i32
    %c0_i32_1 = arith.constant 0 : i32
    return %c0_i32, %c0_i32_0 : i32, i32
  }
  func.func @transform_9(%arg0: i32) -> (i32, i32) {
    %c0_i32 = arith.constant 0 : i32
    %c0_i32_0 = arith.constant 0 : i32
    return %arg0, %c0_i32 : i32, i32
  }
  func.func @transform_10(%arg0: i32) -> (i32, i32) {
    %c0_i32 = arith.constant 0 : i32
    %c0_i32_0 = arith.constant 0 : i32
    return %arg0, %c0_i32 : i32, i32
  }
}

</mosaic_0001>

<bundles_post_ra>
// kernel: autoencoder_forward.1
= control target key start
LH: loop header
LB: loop body
LE: loop exit
PB: predicated region body
PF: predicated region fallthrough
CT: control target
= control target key end

     0   :  { %s3195_s0 = inlined_call_operand.hbm [shape: f32[32,128], index: 0, kind: input, shape index: {}]   ;;  %s3196_s1 = inlined_call_operand.hbm [shape: f32[128,384], index: 1, kind: input, shape index: {}]   ;;  %s3197_s2 = inlined_call_operand.hbm [shape: f32[1,384], index: 2, kind: input, shape index: {}]   ;;  %s3198_s3 = inlined_call_operand.hbm [shape: f32[384,128], index: 3, kind: input, shape index: {}]   ;;  %s3199_s4 = inlined_call_operand.hbm [shape: f32[1,128], index: 4, kind: input, shape index: {}]   ;;  %s3200_s5 = inlined_call_operand.hbm [shape: f32[128,384], index: 5, kind: input, shape index: {}]   ;;  %s3201_s6 = inlined_call_operand.hbm [shape: f32[1,384], index: 6, kind: input, shape index: {}]   ;;  %s3202_s7 = inlined_call_operand.hbm [shape: f32[384,128], index: 7, kind: input, shape index: {}]   ;;  %s3203_s8 = inlined_call_operand.hbm [shape: f32[1,128], index: 8, kind: input, shape index: {}]   ;;  %s3204_s9 = inlined_call_operand.hbm [shape: f32[32,128], index: 9, kind: output, shape index: {0}]   ;;  %s3205_s10 = inlined_call_operand.hbm [shape: f32[32,128], index: 10, kind: output, shape index: {1}]  }
   0x1   :  { %3217 = sst [smem:[#allocation27_spill]] %s3196_s1 }
   0x2   :  { %3218 = sst [smem:[#allocation28_spill]] %s3197_s2 }
   0x3   :  { %3219 = sst [smem:[#allocation29_spill]] %s3204_s9 }
   0x4   :  { %3220 = sst [smem:[#allocation30_spill]] %s3205_s10 }
   0x5   :  { %16 = vsyncpa [#allocation3], 0 }
   0x6   :  { %18 = vsyncpa [#allocation3 + $0x1], 0 }
   0x7   :  { %19 = vsyncpa [#allocation6], 0 }
   0x8   :  { %20 = vsyncpa [#allocation9], 0 }
   0x9   :  { %21 = vsyncpa [#allocation12], 0 }
   0xa   :  { %22 = vsyncpa [#allocation15], 0 }
   0xb   :  { %23 = vsyncpa [#allocation4], 0 }
   0xc   :  { %25 = vsyncpa [#allocation4 + $0x1], 0 }
   0xd   :  { %26 = vsyncpa [#allocation19], 0 }
   0xe   :  { %28 = vsyncpa [#allocation19 + $0x1], 0  ;;  %s2743_s13 = smov 0   ;;  %s2745_s14 = smov 0  }
   0xf   :  { %s2747_s15 = smov 0   ;;  %s2749_s16 = smov 0  }
  0x10 LB: > { %s2670_s17 = smov [#allocation5]   ;;  %s2764_s19 = sadd.s32 4294967295, %s2668_s16   ;;  %s2668_s16 = sphi %s2749_s16, %s3253_s16   ;;  %s2664_s15 = sphi %s2747_s15, %s3252_s15   ;;  %s2660_s14 = sphi %s2745_s14, %s3251_s14   ;;  %s2656_s13 = sphi %s2743_s13, %s3250_s13  }
  0x11   : > { %s297_s18 = sshll.u32 %s2670_s17, 4  ;;  %p1579_p0 = scmp.ge.s32.totalorder %s2668_s16, 1  ;;  %s2769_s18 = int_to_ptr.vmem [resolvable:$true] %s297_s18 }
  0x12   : > { %p3209_p1 = scmp.eq.s32.totalorder %s2764_s19, 0  ;;  %p285_p2 = scmp.lt.s32.totalorder %s2668_s16, 3 }
  0x13   : > { %s2671_s21 = smov [#allocation8]   ;;  %s2672_s24 = smov [#allocation11]  }
  0x14   : > { %p2771_p3 = pnand %p1579_p0, %p285_p2  ;;  %s321_s22 = sshll.u32 %s2671_s21, 4  ;;  %s2784_s22 = int_to_ptr.vmem [resolvable:$true] %s321_s22 }
  0x15   : > { %s2786_s25 = sshll.u32 %s2672_s24, 4  ;;  %s3223_s1 = sld [smem:[#allocation27_spill]]  ;;  %s346_s25 = int_to_ptr.vmem [resolvable:$true] %s2786_s25 }
  0x16   : > { %s3221_s20 = scalar_select %p2771_p3, 1, 0 }
  0x17   : > { %p2199_p5 = pneg %p2771_p3 }
  0x19   : > { %p2780_p6 = pnand %p2199_p5, %p3209_p1 }
  0x1b   : > { %s2300_s28 = scalar_lea.hbm %s3223_s1, 6144  ;;  %p2796_p8 = pneg %p2780_p6 }
  0x1c   : > { %p2301_p7 = scmp.ne.s32.totalorder %s3223_s1, %s2300_s28  ;;  %p2307_p11 = scmp.lt.u32.totalorder %s2300_s28, %s3223_s1 }
  0x1e   : > { %p2303_p9 = pnand %p2796_p8, %p2301_p7 }
  0x20   : > { %p2304_p10 = pneg %p2303_p9 }
  0x22   : > { %p2309_p12 = pnand %p2307_p11, %p2304_p10 }
  0x24   : > { %2312 = shalt.err (!%p2309_p12)
}
  0x25   : > { %s2313_s21 = scalar_lea.vmem %s2769_s18, 6144  ;;  %p2321_p5 = scmp.lt.s32.totalorder %s2769_s18, %s2769_s18 }
  0x26   : > { %p2314_p13 = scmp.ne.s32.totalorder %s2769_s18, %s2313_s21  ;;  %p2322_p4 = scmp.lt.s32.totalorder %s2313_s21, %s2313_s21 }
  0x28   : > { %p2316_p0 = pnand %p2314_p13, %p2796_p8  ;;  %p2323_p7 = por %p2322_p4, %p2321_p5 }
  0x2a   : > { %p2317_p2 = pneg %p2316_p0 }
  0x2c   : > { %p2324_p9 = pnand %p2323_p7, %p2317_p2 }
  0x2e   : > { %2327 = shalt.err (!%p2324_p9)
}
  0x2f   : > { %s3208_s24 = smov 384   ;;  %s2674_s26 = smov 24  }
  0x30   : > { %2202 = dma.hbm_to_vmem [thread:$0]  (!%p2780_p6), %s3223_s1, 6144, %s2769_s18, [#allocation6], %s3208_s24, %s3208_s24, %s2674_s26  }
  0x31   : > { %s2328_s12 = scalar_lea.hbm %s3198_s3, 6144 }
  0x32   : > { %p2329_p4 = scmp.ne.s32.totalorder %s3198_s3, %s2328_s12  ;;  %p2335_p12 = scmp.lt.u32.totalorder %s2328_s12, %s3198_s3 }
  0x34   : > { %p2331_p10 = pnand %p2329_p4, %p2796_p8 }
  0x36   : > { %p2332_p11 = pneg %p2331_p10 }
  0x38   : > { %p2337_p13 = pnand %p2335_p12, %p2332_p11 }
  0x3a   : > { %2340 = shalt.err (!%p2337_p13)
}
  0x3b   : > { %s2341_s18 = scalar_lea.vmem %s2784_s22, 6144  ;;  %p2349_p7 = scmp.lt.s32.totalorder %s2784_s22, %s2784_s22 }
  0x3c   : > { %p2342_p0 = scmp.ne.s32.totalorder %s2784_s22, %s2341_s18  ;;  %p2350_p9 = scmp.lt.s32.totalorder %s2341_s18, %s2341_s18 }
  0x3e   : > { %p2344_p2 = pnand %p2342_p0, %p2796_p8  ;;  %p2351_p4 = por %p2350_p9, %p2349_p7 }
  0x40   : > { %p2345_p5 = pneg %p2344_p2 }
  0x42   : > { %p2352_p10 = pnand %p2351_p4, %p2345_p5 }
  0x44   : > { %2355 = shalt.err (!%p2352_p10)
}
  0x45   : > { %s3211_s27 = smov 128   ;;  %s3213_s9 = smov 8  }
  0x46   : > { %2208 = dma.hbm_to_vmem [thread:$0]  (!%p2780_p6), %s3198_s3, 6144, %s2784_s22, [#allocation9], %s3211_s27, %s3211_s27, %s3213_s9  }
  0x47   : > { %s2356_s12 = scalar_lea.hbm %s3200_s5, 6144 }
  0x48   : > { %p2357_p11 = scmp.ne.s32.totalorder %s3200_s5, %s2356_s12  ;;  %p2363_p0 = scmp.lt.u32.totalorder %s2356_s12, %s3200_s5 }
  0x4a   : > { %p2359_p12 = pnand %p2357_p11, %p2796_p8 }
  0x4c   : > { %p2360_p13 = pneg %p2359_p12 }
  0x4e   : > { %p2365_p2 = pnand %p2363_p0, %p2360_p13 }
  0x50   : > { %2368 = shalt.err (!%p2365_p2)
}
  0x51   : > { %s2369_s10 = scalar_lea.vmem %s346_s25, 6144  ;;  %p2377_p4 = scmp.lt.s32.totalorder %s346_s25, %s346_s25 }
  0x52   : > { %p2370_p5 = scmp.ne.s32.totalorder %s346_s25, %s2369_s10  ;;  %p2378_p10 = scmp.lt.s32.totalorder %s2369_s10, %s2369_s10 }
  0x54   : > { %p2372_p7 = pnand %p2370_p5, %p2796_p8  ;;  %p2379_p1 = por %p2378_p10, %p2377_p4 }
  0x56   : > { %p2373_p9 = pneg %p2372_p7 }
  0x58   : > { %p2380_p3 = pnand %p2379_p1, %p2373_p9 }
  0x5a   : > { %2383 = shalt.err (!%p2380_p3)
}
  0x5b   : > { %s3225_s22 = smov 384   ;;  %s2677_s29 = smov [#allocation14]  }
  0x5c   : > { %2214 = dma.hbm_to_vmem [thread:$0]  (!%p2780_p6), %s3200_s5, 6144, %s346_s25, [#allocation12], %s3225_s22, %s3225_s22, %s2674_s26  }
  0x5d   : > { %s369_s30 = sshll.u32 %s2677_s29, 4  ;;  %s2678_s12 = smov [#allocation7]   ;;  %s370_s30 = int_to_ptr.vmem [resolvable:$true] %s369_s30 }
  0x5e   : > { %s311_s17 = sshll.u32 %s2678_s12, 4  ;;  %s2384_s10 = scalar_lea.hbm %s3202_s7, 6144  ;;  %s312_s17 = int_to_ptr.vmem [resolvable:$true] %s311_s17 }
  0x5f   : > { %p2385_p1 = scmp.ne.s32.totalorder %s3202_s7, %s2384_s10  ;;  %p2391_p12 = scmp.lt.u32.totalorder %s2384_s10, %s3202_s7 }
  0x61   : > { %p2387_p3 = pnand %p2385_p1, %p2796_p8 }
  0x63   : > { %p2388_p11 = pneg %p2387_p3 }
  0x65   : > { %p2393_p13 = pnand %p2391_p12, %p2388_p11 }
  0x67   : > { %2396 = shalt.err (!%p2393_p13)
}
  0x68   : > { %s2397_s25 = scalar_lea.vmem %s370_s30, 6144  ;;  %p2405_p7 = scmp.lt.s32.totalorder %s370_s30, %s370_s30 }
  0x69   : > { %p2398_p0 = scmp.ne.s32.totalorder %s370_s30, %s2397_s25  ;;  %p2406_p9 = scmp.lt.s32.totalorder %s2397_s25, %s2397_s25 }
  0x6b   : > { %p2400_p2 = pnand %p2398_p0, %p2796_p8  ;;  %p2407_p4 = por %p2406_p9, %p2405_p7 }
  0x6d   : > { %p2401_p5 = pneg %p2400_p2 }
  0x6f   : > { %p2408_p10 = pnand %p2407_p4, %p2401_p5 }
  0x71   : > { %2411 = shalt.err (!%p2408_p10)
}
  0x72   : > { %s3226_s26 = smov 8   ;;  %s3227_s27 = smov 128  }
  0x73   : > { %2220 = dma.hbm_to_vmem [thread:$0]  (!%p2780_p6), %s3202_s7, 6144, %s370_s30, [#allocation15], %s3227_s27, %s3227_s27, %s3226_s26  }
  0x74   : > { %s3228_s2 = sld [smem:[#allocation28_spill]] }
  0x7a   : > { %s2412_s29 = scalar_lea.hbm %s3228_s2, 48 }
  0x7b   : > { %p2413_p1 = scmp.ne.s32.totalorder %s3228_s2, %s2412_s29  ;;  %p2419_p12 = scmp.lt.u32.totalorder %s2412_s29, %s3228_s2 }
  0x7d   : > { %p2415_p3 = pnand %p2413_p1, %p2796_p8 }
  0x7f   : > { %p2416_p11 = pneg %p2415_p3 }
  0x81   : > { %p2421_p13 = pnand %p2419_p12, %p2416_p11 }
  0x83   : > { %2424 = shalt.err (!%p2421_p13)
}
  0x84   : > { %s2425_s24 = scalar_lea.vmem %s312_s17, 48  ;;  %s2432_s30 = scalar_lea.vmem %s312_s17, 64 }
  0x85   : > { %p2426_p0 = scmp.ne.s32.totalorder %s312_s17, %s2425_s24  ;;  %p2433_p7 = scmp.lt.s32.totalorder %s312_s17, %s312_s17 }
  0x86   : > { %p2434_p9 = scmp.lt.s32.totalorder %s2432_s30, %s2425_s24 }
  0x87   : > { %p2428_p2 = pnand %p2426_p0, %p2796_p8 }
  0x88   : > { %p2435_p4 = por %p2434_p9, %p2433_p7 }
  0x89   : > { %p2429_p5 = pneg %p2428_p2 }
  0x8b   : > { %p2436_p10 = pnand %p2435_p4, %p2429_p5 }
  0x8d   : > { %2439 = shalt.err (!%p2436_p10)
}
  0x8e   : > { %2205 = dma.hbm_to_vmem [thread:$0]  (!%p2780_p6), %s3228_s2, 48, %s312_s17, [#allocation6]  }
  0x8f   : > { %s2679_s9 = smov [#allocation10]   ;;  %s2680_s28 = smov [#allocation13]  }
  0x90   : > { %s335_s22 = sshll.u32 %s2679_s9, 4  ;;  %s359_s29 = sshll.u32 %s2680_s28, 4  ;;  %s336_s22 = int_to_ptr.vmem [resolvable:$true] %s335_s22  ;;  %s360_s29 = int_to_ptr.vmem [resolvable:$true] %s359_s29 }
  0x91   : > { %s2440_s18 = scalar_lea.hbm %s3199_s4, 16 }
  0x92   : > { %p2441_p1 = scmp.ne.s32.totalorder %s3199_s4, %s2440_s18  ;;  %p2447_p12 = scmp.lt.u32.totalorder %s2440_s18, %s3199_s4 }
  0x94   : > { %p2443_p3 = pnand %p2441_p1, %p2796_p8 }
  0x96   : > { %p2444_p11 = pneg %p2443_p3 }
  0x98   : > { %p2449_p13 = pnand %p2447_p12, %p2444_p11 }
  0x9a   : > { %2452 = shalt.err (!%p2449_p13)
}
  0x9b   : > { %s2453_s17 = scalar_lea.vmem %s336_s22, 16  ;;  %s2460_s1 = scalar_lea.vmem %s336_s22, 32 }
  0x9c   : > { %p2454_p0 = scmp.ne.s32.totalorder %s336_s22, %s2453_s17  ;;  %p2461_p7 = scmp.lt.s32.totalorder %s336_s22, %s336_s22 }
  0x9d   : > { %p2462_p9 = scmp.lt.s32.totalorder %s2460_s1, %s2453_s17 }
  0x9e   : > { %p2456_p2 = pnand %p2454_p0, %p2796_p8 }
  0x9f   : > { %p2463_p4 = por %p2462_p9, %p2461_p7 }
  0xa0   : > { %p2457_p5 = pneg %p2456_p2 }
  0xa2   : > { %p2464_p10 = pnand %p2463_p4, %p2457_p5 }
  0xa4   : > { %2467 = shalt.err (!%p2464_p10)
}
  0xa5   : > { %2211 = dma.hbm_to_vmem [thread:$0]  (!%p2780_p6), %s3199_s4, 16, %s336_s22, [#allocation9]  }
  0xa6   : > { %s2468_s18 = scalar_lea.hbm %s3201_s6, 48 }
  0xa7   : > { %p2469_p1 = scmp.ne.s32.totalorder %s3201_s6, %s2468_s18  ;;  %p2475_p12 = scmp.lt.u32.totalorder %s2468_s18, %s3201_s6 }
  0xa9   : > { %p2471_p3 = pnand %p2469_p1, %p2796_p8 }
  0xab   : > { %p2472_p11 = pneg %p2471_p3 }
  0xad   : > { %p2477_p13 = pnand %p2475_p12, %p2472_p11 }
  0xaf   : > { %2480 = shalt.err (!%p2477_p13)
}
  0xb0   : > { %s2481_s17 = scalar_lea.vmem %s360_s29, 48  ;;  %s2488_s22 = scalar_lea.vmem %s360_s29, 64 }
  0xb1   : > { %p2482_p0 = scmp.ne.s32.totalorder %s360_s29, %s2481_s17  ;;  %p2489_p7 = scmp.lt.s32.totalorder %s360_s29, %s360_s29 }
  0xb2   : > { %p2490_p9 = scmp.lt.s32.totalorder %s2488_s22, %s2481_s17 }
  0xb3   : > { %p2484_p2 = pnand %p2482_p0, %p2796_p8 }
  0xb4   : > { %p2491_p4 = por %p2490_p9, %p2489_p7 }
  0xb5   : > { %p2485_p5 = pneg %p2484_p2 }
  0xb7   : > { %p2492_p10 = pnand %p2491_p4, %p2485_p5 }
  0xb9   : > { %2495 = shalt.err (!%p2492_p10)
}
  0xba   : > { %2217 = dma.hbm_to_vmem [thread:$0]  (!%p2780_p6), %s3201_s6, 48, %s360_s29, [#allocation12]  }
  0xbb   : > { %s2681_s28 = smov [#allocation16]   ;;  %s2496_s10 = scalar_lea.hbm %s3203_s8, 16 }
  0xbc   : > { %s383_s12 = sshll.u32 %s2681_s28, 4  ;;  %p2497_p1 = scmp.ne.s32.totalorder %s3203_s8, %s2496_s10  ;;  %s384_s12 = int_to_ptr.vmem [resolvable:$true] %s383_s12 }
  0xbd   : > { %p2503_p12 = scmp.lt.u32.totalorder %s2496_s10, %s3203_s8 }
  0xbe   : > { %p2499_p3 = pnand %p2497_p1, %p2796_p8 }
  0xc0   : > { %p2500_p11 = pneg %p2499_p3 }
  0xc2   : > { %p2505_p13 = pnand %p2503_p12, %p2500_p11 }
  0xc4   : > { %2508 = shalt.err (!%p2505_p13)
}
  0xc5   : > { %s2509_s29 = scalar_lea.vmem %s384_s12, 16  ;;  %s2516_s22 = scalar_lea.vmem %s384_s12, 32 }
  0xc6   : > { %p2510_p0 = scmp.ne.s32.totalorder %s384_s12, %s2509_s29  ;;  %p2517_p7 = scmp.lt.s32.totalorder %s384_s12, %s384_s12 }
  0xc7   : > { %p2518_p9 = scmp.lt.s32.totalorder %s2516_s22, %s2509_s29 }
  0xc8   : > { %p2512_p2 = pnand %p2510_p0, %p2796_p8 }
  0xc9   : > { %p2519_p4 = por %p2518_p9, %p2517_p7 }
  0xca   : > { %p2513_p5 = pneg %p2512_p2 }
  0xcc   : > { %p2520_p10 = pnand %p2519_p4, %p2513_p5 }
  0xce   : > { %2523 = shalt.err (!%p2520_p10)
}
  0xcf   : > { %2223 = dma.hbm_to_vmem [thread:$0]  (!%p2780_p6), %s3203_s8, 16, %s384_s12, [#allocation15]  }
  0xd0   : > { %s1578_s11 = sadd.s32 4294967294, %s2668_s16   ;;  %s2963_s23 = sadd.s32 1, %s2668_s16  }
  0xd1   : > { %s38_s28 = ssub.s32 %s2668_s16, %s2963_s23  ;;  %s41_s21 = sadd.s32 1, %s2664_s15 }
  0xd2   : > { %p39_p8 = scmp.eq.s32.totalorder %s38_s28, 0  ;;  %p48_p1 = scmp.ne.s32.totalorder %s2664_s15, %s2660_s14 }
  0xd3   : > { %p49_p3 = scmp.eq.s32.totalorder %s2668_s16, 0  ;;  %p54_p11 = scmp.ne.s32.totalorder %s2660_s14, %s2656_s13 }
  0xd4   : > { %s2974_s18 = scalar_select %p39_p8, %s2664_s15, %s41_s21  }
  0xd5   : > { %p2976_p12 = por %p49_p3, %p48_p1  ;;  %p3230_p13 = scmp.eq.s32.totalorder %s2764_s19, 0 }
  0xd6   : > { %p246_p0 = scmp.eq.s32.totalorder %s2764_s19, 1  ;;  %p252_p2 = scmp.eq.s32.totalorder %s1578_s11, 1 }
  0xd7   : > { %p2982_p6 = por %p3230_p13, %p54_p11  ;;  %p2243_p5 = scmp.lt.s32.totalorder %s2668_s16, 2 }
  0xd8   : > { %s394_s24 = sand.u32 1, %s2664_s15   ;;  %p2989_p7 = por %p246_p0, %p48_p1 }
  0xd9   : > { %p2993_p9 = por %p252_p2, %p54_p11  ;;  %s1589_s17 = sshll.u32 %s394_s24, 4 }
  0xda   : > { %s3232_s30 = scalar_select %p2989_p7, 1, 0 }
  0xdb   : > { %s3233_s25 = scalar_select %p2993_p9, 1, 0 }
  0xdc   : > { %s1614_s29 = sshll.u32 %s2668_s16, 8  ;;  %s398_s11 = scalar_lea.vmem [#allocation2], %s1589_s17 }
  0xdd   : > { %s3001_s9 = scalar_lea.hbm %s3195_s0, %s1614_s29  ;;  %s405_s28 = sshll.u32 %s398_s11, 4  ;;  %s3003_s28 = int_to_ptr.vmem [resolvable:$true] %s405_s28 }
  0xde   : > { %p3007_p4 = pnand %p2243_p5, %p2976_p12  ;;  %s3011_s2 = scalar_lea.sflag [#allocation3], %s394_s24 }
  0xdf   : > { %s2524_s22 = scalar_lea.hbm %s3001_s9, 256  ;;  %s2529_s10 = scalar_lea.hbm %s3195_s0, 512 }
  0xe0   : > { %p2525_p10 = scmp.ne.s32.totalorder %s3001_s9, %s2524_s22  ;;  %p2526_p8 = pneg %p3007_p4 }
  0xe1   : > { %p2530_p11 = scmp.lt.u32.totalorder %s3001_s9, %s3195_s0  ;;  %p2531_p12 = scmp.lt.u32.totalorder %s2529_s10, %s2524_s22 }
  0xe2   : > { %p2527_p1 = pnand %p2526_p8, %p2525_p10  ;;  %p2533_p0 = scmp.lt.u32.totalorder %s2524_s22, %s3001_s9 }
  0xe3   : > { %p2532_p13 = por %p2531_p12, %p2530_p11 }
  0xe4   : > { %p2528_p3 = pneg %p2527_p1 }
  0xe5   : > { %p2534_p2 = por %p2533_p0, %p2532_p13 }
  0xe7   : > { %p2535_p5 = pnand %p2534_p2, %p2528_p3 }
  0xe9   : > { %2538 = shalt.err (!%p2535_p5)
}
  0xea   : > { %s2539_s24 = scalar_lea.vmem %s3003_s28, 256  ;;  %s2682_s17 = smov [#allocation2]  }
  0xeb   : > { %p2540_p10 = scmp.ne.s32.totalorder %s3003_s28, %s2539_s24  ;;  %s2544_s29 = sshll.u32 %s2682_s17, 4  ;;  %s2545_s29 = int_to_ptr.vmem [resolvable:$false] %s2544_s29 }
  0xec   : > { %s2546_s1 = scalar_lea.vmem %s2545_s29, 512  ;;  %p2547_p7 = scmp.lt.s32.totalorder %s3003_s28, %s2545_s29 }
  0xed   : > { %p2542_p1 = pnand %p2540_p10, %p2526_p8  ;;  %p2548_p11 = scmp.lt.s32.totalorder %s2546_s1, %s2539_s24 }
  0xef   : > { %p2543_p9 = pneg %p2542_p1  ;;  %p2549_p12 = por %p2548_p11, %p2547_p7 }
  0xf1   : > { %p2550_p13 = pnand %p2549_p12, %p2543_p9 }
  0xf3   : > { %2553 = shalt.err (!%p2550_p13)
}
  0xf4   : > { %2227 = dma.hbm_to_vmem [thread:$0]  (!%p3007_p4), %s3001_s9, 256, %s3003_s28, %s3011_s2, %s3227_s27, %s3227_s27, %s3226_s26  }
  0xf5   : > { %p3235_p8 = scmp.ne.s32.totalorder %s3221_s20, 0 }
  0xf6   : > { %s3045_s22 = sand.u32 (!%p3235_p8), 1, %s2660_s14  }
  0xf7   : > { %417 = sbr.rel (%p3235_p8) target bundleno = 1196 (0x4ac), region = 56  ;;  %s3048_s10 = sshll.u32 (!%p3235_p8), %s3045_s22, 4 }
  0xf8   : > { %s420_s21 = scalar_lea.sflag (!%p3235_p8), [#allocation3], %s3045_s22  ;;  %s423_s11 = scalar_lea.vmem (!%p3235_p8), [#allocation2], %s3048_s10 }
  0xfe   : > { %2627 = dma.done.wait (%p2982_p6), %s420_s21, 256  }
  0xff   : > { %2629 = vsyncadd (%p2982_p6), %s420_s21, 4294967040  ;;  %p3236_p7 = scmp.eq.s32.totalorder %s2764_s19, 0 }
 0x101   : > { %2631 = dma.done.wait (%p3236_p7), [#allocation6], 6192   ;;  %p3237_p9 = pmov %p3236_p7 }
 0x102   : > { %p3238_p4 = pmov %p3236_p7 }
 0x103   : > { %2633 = vsyncadd (%p3237_p9), [#allocation6], 4294961104 }
 0x104   : > { %2635 = dma.done.wait (%p3238_p4), [#allocation9], 6160   ;;  %p3239_p3 = pmov %p3238_p4 }
 0x106   : > { %2637 = vsyncadd (%p3239_p3), [#allocation9], 4294961136  ;;  %p3240_p0 = pmov %p3239_p3 }
 0x108   : > { %2639 = dma.done.wait (%p3240_p0), [#allocation12], 6192   ;;  %p3241_p2 = pmov %p3240_p0 }
 0x109   : > { %p3242_p6 = pmov %p3240_p0 }
 0x10a   : > { %2641 = vsyncadd (%p3241_p2), [#allocation12], 4294961104 }
 0x10b   : > { %2643 = dma.done.wait (%p3242_p6), [#allocation15], 6160   ;;  %p3243_p5 = pmov %p3240_p0 }
 0x10c   : > { %v2683_v0 = vmov 0.0   ;;  %v503_v1 = vld [vmem:[#allocation5 + $0x8] sm:$0xff]  ;;  %v506_v2 = vld [vmem:[#allocation5 + $0x20] sm:$0xff]  ;;  %v505_v5 = vld [vmem:[#allocation5 + $0x18] sm:$0xff]  ;;  %s3091_s2 = scalar_lea.vmem [#allocation18], %s3048_s10  ;;  %s1615_s26 = sshll.u32 %s2764_s19, 8 }
 0x10d   : > { %2645 = vsyncadd (%p3243_p5), [#allocation15], 4294961136  ;;  %631 = vmatprep.mubr.f32.mxu0 %v2683_v0  ;;  %v502_v3 = vld [vmem:[#allocation5] sm:$0xff]  ;;  %v1905_v4 = vpack.c.bf16 %v506_v2, %v503_v1  ;;  %v504_v6 = vld [vmem:[#allocation5 + $0x10] sm:$0xff]  ;;  %s1397_s20 = sshll.u32 %s3091_s2, 4  ;;  %s3244_s9 = sld [smem:[#allocation30_spill]]  ;;  %s3104_s20 = int_to_ptr.vmem [resolvable:$true] %s1397_s20 }
 0x10e   : > { %v507_v7 = vld [vmem:[#allocation5 + $0x28] sm:$0xff]  ;;  %v1907_v8 = vpack.c.bf16 %v505_v5, %v502_v3  ;;  %v509_v10 = vld [vmem:[#allocation5 + $0x38] sm:$0xff]  ;;  %v512_v11 = vld [vmem:[#allocation5 + $0x50] sm:$0xff]  ;;  %s1368_s24 = scalar_lea.sflag [#allocation19], %s3045_s22  ;;  %s2554_s17 = scalar_lea.vmem %s3104_s20, 256 }
 0x10f   : > { %v1937_v9 = vpack.c.bf16 %v507_v7, %v504_v6  ;;  %v508_v12 = vld [vmem:[#allocation5 + $0x30] sm:$0xff]  ;;  %1906 = vmatprep.subr.bf16.mxu0 %v1905_v4  ;;  %v1909_v13 = vpack.c.bf16 %v512_v11, %v509_v10  ;;  %v511_v14 = vld [vmem:[#allocation5 + $0x48] sm:$0xff]  ;;  %v510_v15 = vld [vmem:[#allocation5 + $0x40] sm:$0xff]  ;;  %p2555_p10 = scmp.ne.s32.totalorder %s3104_s20, %s2554_s17  ;;  %p3245_p1 = scmp.ne.s32.totalorder %s3232_s30, 0 }
 0x110   : > { %v513_v16 = vld [vmem:[#allocation5 + $0x58] sm:$0xff]  ;;  %1908 = vmatpush1.bf16.msra.mxu0 %v1907_v8  ;;  %v1911_v17 = vpack.c.bf16 %v511_v14, %v508_v12  ;;  %v515_v19 = vld [vmem:[#allocation5 + $0x68] sm:$0xff]  ;;  %v518_v20 = vld [vmem:[#allocation5 + $0x80] sm:$0xff]  ;;  %s2684_s29 = smov [#allocation18]  }
 0x111   : > { %1938 = vmatprep.subr.bf16.mxu1 %v1937_v9  ;;  %v1941_v18 = vpack.c.bf16 %v513_v16, %v510_v15  ;;  %v514_v21 = vld [vmem:[#allocation5 + $0x60] sm:$0xff]  ;;  %1910 = vmatprep.subr.bf16.mxu0 %v1909_v13  ;;  %v1913_v22 = vpack.c.bf16 %v518_v20, %v515_v19  ;;  %v517_v23 = vld [vmem:[#allocation5 + $0x78] sm:$0xff]  ;;  %v516_v24 = vld [vmem:[#allocation5 + $0x70] sm:$0xff]  ;;  %p2556_p11 = pnand %p2555_p10, %p3245_p1  ;;  %s2558_s1 = sshll.u32 %s2684_s29, 4  ;;  %s2559_s1 = int_to_ptr.vmem [resolvable:$false] %s2558_s1 }
 0x112   : > { %1940 = vmatpush3.bf16.msra.mxu1 %v1937_v9  ;;  %v519_v25 = vld [vmem:[#allocation5 + $0x88] sm:$0xff]  ;;  %v521_v27 = vld [vmem:[#allocation5 + $0x98] sm:$0xff]  ;;  %v524_v28 = vld [vmem:[#allocation5 + $0xb0] sm:$0xff]  ;;  %v1915_v31 = vpack.c.bf16 %v517_v23, %v514_v21  ;;  %s2560_s21 = scalar_lea.vmem %s2559_s1, 512  ;;  %p2561_p13 = scmp.lt.s32.totalorder %s3104_s20, %s2559_s1 }
 0x113   : > { %1942 = vmatprep.subr.bf16.mxu1 %v1941_v18  ;;  %v1945_v26 = vpack.c.bf16 %v519_v25, %v516_v24  ;;  %v522_v29 = vld [vmem:[#allocation5 + $0xa0] sm:$0xff]  ;;  %v525_v30 = vld [vmem:[#allocation5 + $0xb8] sm:$0xff]  ;;  %v1917_v32 = vpack.c.bf16 %v524_v28, %v521_v27  ;;  %v520_v33 = vld [vmem:[#allocation5 + $0x90] sm:$0xff]  ;;  %s3111_s28 = scalar_lea.hbm %s3244_s9, %s1615_s26  ;;  %p2557_p12 = pneg %p2556_p11 }
 0x114   : > { %1912 = vmatpush1.bf16.msra.mxu0 %v1911_v17  ;;  %v523_v34 = vld [vmem:[#allocation5 + $0xa8] sm:$0xff]  ;;  %v1949_v35 = vpack.c.bf16 %v525_v30, %v522_v29  ;;  %v530_v37 = vld [vmem:[#allocation5 + $0xe0] sm:$0xff]  ;;  %v528_v38 = vld [vmem:[#allocation5 + $0xd0] sm:$0xff]  ;;  %p2562_p8 = scmp.lt.s32.totalorder %s2560_s21, %s2554_s17 }
 0x115   : > { %1914 = vmatprep.subr.bf16.mxu0 %v1913_v22  ;;  %v527_v36 = vld [vmem:[#allocation5 + $0xc8] sm:$0xff]  ;;  %v1919_v40 = vpack.c.bf16 %v523_v34, %v520_v33  ;;  %v526_v42 = vld [vmem:[#allocation5 + $0xc0] sm:$0xff]  ;;  %v529_v43 = vld [vmem:[#allocation5 + $0xd8] sm:$0xff] }
 0x116   : > { %1944 = vmatpush3.bf16.msra.mxu1 %v1941_v18  ;;  %v531_v39 = vld [vmem:[#allocation5 + $0xe8] sm:$0xff]  ;;  %v1921_v41 = vpack.c.bf16 %v530_v37, %v527_v36  ;;  %v533_v45 = vld [vmem:[#allocation5 + $0xf8] sm:$0xff]  ;;  %v536_v46 = vld [vmem:[#allocation5 + $0x110] sm:$0xff]  ;;  %v1923_v49 = vpack.c.bf16 %v529_v43, %v526_v42  ;;  %p2563_p7 = por %p2562_p8, %p2561_p13 }
 0x117   : > { %1946 = vmatprep.subr.bf16.mxu1 %v1945_v26  ;;  %v1953_v44 = vpack.c.bf16 %v531_v39, %v528_v38  ;;  %v534_v47 = vld [vmem:[#allocation5 + $0x100] sm:$0xff]  ;;  %v537_v48 = vld [vmem:[#allocation5 + $0x118] sm:$0xff]  ;;  %v1925_v51 = vpack.c.bf16 %v536_v46, %v533_v45  ;;  %v532_v52 = vld [vmem:[#allocation5 + $0xf0] sm:$0xff] }
 0x118   : > { %1916 = vmatpush1.bf16.msra.mxu0 %v1915_v31  ;;  %v500_v50 = vld [vmem:[%s423_s11] sm:$0xff]  ;;  %v535_v53 = vld [vmem:[#allocation5 + $0x108] sm:$0xff]  ;;  %v1957_v54 = vpack.c.bf16 %v537_v48, %v534_v47  ;;  %v541_v62 = vld [vmem:[#allocation5 + $0x138] sm:$0xff]  ;;  %p2564_p9 = pnand %p2563_p7, %p2557_p12 }
 0x119   : > { %1918 = vmatprep.subr.bf16.mxu0 %v1917_v32  ;;  %v539_v55 = vld [vmem:[#allocation5 + $0x128] sm:$0xff]  ;;  %v542_v56 = vld [vmem:[#allocation5 + $0x140] sm:$0xff]  ;;  %1797 = vmatprep.mubr.f32.mxu1 %v500_v50  ;;  %v540_v57 = vld [vmem:[#allocation5 + $0x130] sm:$0xff]  ;;  %v1927_v59 = vpack.c.bf16 %v535_v53, %v532_v52 }
 0x11a   : > { %1948 = vmatpush3.bf16.msra.mxu1 %v1945_v26  ;;  %v543_v58 = vld [vmem:[#allocation5 + $0x148] sm:$0xff]  ;;  %v1929_v60 = vpack.c.bf16 %v542_v56, %v539_v55  ;;  %v538_v61 = vld [vmem:[#allocation5 + $0x120] sm:$0xff]  ;;  %v545_v1 = vld [vmem:[#allocation5 + $0x158] sm:$0xff] }
 0x11b   : > { %1950 = vmatprep.subr.bf16.mxu1 %v1949_v35  ;;  %v1961_v63 = vpack.c.bf16 %v543_v58, %v540_v57  ;;  %v548_v2 = vld [vmem:[#allocation5 + $0x170] sm:$0xff]  ;;  %v546_v3 = vld [vmem:[#allocation5 + $0x160] sm:$0xff]  ;;  %v549_v4 = vld [vmem:[#allocation5 + $0x178] sm:$0xff]  ;;  %v1931_v5 = vpack.c.bf16 %v541_v62, %v538_v61 }
 0x11c   : > { %1920 = vmatpush1.bf16.msra.mxu0 %v1919_v40  ;;  %v1933_v6 = vpack.c.bf16 %v548_v2, %v545_v1  ;;  %v544_v7 = vld [vmem:[#allocation5 + $0x150] sm:$0xff]  ;;  %v547_v8 = vld [vmem:[#allocation5 + $0x168] sm:$0xff]  ;;  %v1965_v9 = vpack.c.bf16 %v549_v4, %v546_v3  ;;  %v744_v20 = vld [vmem:[#allocation8 + $0x98] sm:$0xff] }
 0x11d   : > { %1922 = vmatprep.subr.bf16.mxu0 %v1921_v41  ;;  %v741_v10 = vld [vmem:[#allocation8 + $0x80] sm:$0xff]  ;;  %v742_v11 = vld [vmem:[#allocation8 + $0x88] sm:$0xff]  ;;  %v1935_v14 = vpack.c.bf16 %v547_v8, %v544_v7  ;;  %v743_v19 = vld [vmem:[#allocation8 + $0x90] sm:$0xff] }
 0x11e   : > { %1952 = vmatpush3.bf16.msra.mxu1 %v1949_v35  ;;  %v757_v12 = vld [vmem:[#allocation8 + $0x100] sm:$0xff]  ;;  %v758_v13 = vld [vmem:[#allocation8 + $0x108] sm:$0xff]  ;;  %v1969_v15 = vpack.c.bf16 %v742_v11, %v741_v10  ;;  %v759_v21 = vld [vmem:[#allocation8 + $0x110] sm:$0xff]  ;;  %v1973_v25 = vpack.c.bf16 %v744_v20, %v743_v19 }
 0x11f   : > { %1954 = vmatprep.subr.bf16.mxu1 %v1953_v44  ;;  %v725_v16 = vld [vmem:[#allocation8] sm:$0xff]  ;;  %v726_v17 = vld [vmem:[#allocation8 + $0x8] sm:$0xff]  ;;  %v2001_v18 = vpack.c.bf16 %v758_v13, %v757_v12  ;;  %v760_v22 = vld [vmem:[#allocation8 + $0x118] sm:$0xff] }
 0x120   : > { %1924 = vmatpush1.bf16.msra.mxu0 %v1923_v49  ;;  %v501_v23 = vld [vmem:[%s423_s11 + $0x8] sm:$0xff]  ;;  %v1971_v24 = vpack.c.bf16 %v726_v17, %v725_v16  ;;  %v2005_v28 = vpack.c.bf16 %v760_v22, %v759_v21 }
 0x121   : > { %1926 = vmatprep.subr.bf16.mxu0 %v1925_v51  ;;  %v727_v26 = vld [vmem:[#allocation8 + $0x10] sm:$0xff]  ;;  %v728_v27 = vld [vmem:[#allocation8 + $0x18] sm:$0xff]  ;;  %v745_v29 = vld [vmem:[#allocation8 + $0xa0] sm:$0xff] }
 0x122   : > { %1956 = vmatpush3.bf16.msra.mxu1 %v1953_v44  ;;  %v746_v30 = vld [vmem:[#allocation8 + $0xa8] sm:$0xff]  ;;  %v761_v31 = vld [vmem:[#allocation8 + $0x120] sm:$0xff]  ;;  %v1975_v33 = vpack.c.bf16 %v728_v27, %v727_v26  ;;  %v747_v38 = vld [vmem:[#allocation8 + $0xb0] sm:$0xff]  ;;  %v552_v27 = vlaneseq }
 0x123   : > { %1958 = vmatprep.subr.bf16.mxu1 %v1957_v54  ;;  %v762_v32 = vld [vmem:[#allocation8 + $0x128] sm:$0xff]  ;;  %v1977_v34 = vpack.c.bf16 %v746_v30, %v745_v29  ;;  %v729_v35 = vld [vmem:[#allocation8 + $0x20] sm:$0xff]  ;;  %v748_v39 = vld [vmem:[#allocation8 + $0xb8] sm:$0xff] }
 0x124   : > { %1928 = vmatpush1.bf16.msra.mxu0 %v1927_v59  ;;  %v730_v36 = vld [vmem:[#allocation8 + $0x28] sm:$0xff]  ;;  %v2009_v37 = vpack.c.bf16 %v762_v32, %v761_v31  ;;  %v763_v40 = vld [vmem:[#allocation8 + $0x130] sm:$0xff]  ;;  %v764_v41 = vld [vmem:[#allocation8 + $0x138] sm:$0xff]  ;;  %v1981_v43 = vpack.c.bf16 %v748_v39, %v747_v38 }
 0x125   : > { %1930 = vmatprep.subr.bf16.mxu0 %v1929_v60  ;;  %v1979_v42 = vpack.c.bf16 %v730_v36, %v729_v35  ;;  %v731_v44 = vld [vmem:[#allocation8 + $0x30] sm:$0xff]  ;;  %v732_v45 = vld [vmem:[#allocation8 + $0x38] sm:$0xff]  ;;  %v2013_v46 = vpack.c.bf16 %v764_v41, %v763_v40  ;;  %v749_v47 = vld [vmem:[#allocation8 + $0xc0] sm:$0xff] }
 0x126   : > { %1960 = vmatpush3.bf16.msra.mxu1 %v1957_v54  ;;  %v750_v48 = vld [vmem:[#allocation8 + $0xc8] sm:$0xff]  ;;  %v765_v49 = vld [vmem:[#allocation8 + $0x140] sm:$0xff]  ;;  %v1983_v51 = vpack.c.bf16 %v732_v45, %v731_v44  ;;  %v751_v56 = vld [vmem:[#allocation8 + $0xd0] sm:$0xff] }
 0x127   : > { %1962 = vmatprep.subr.bf16.mxu1 %v1961_v63  ;;  %v1985_v52 = vpack.c.bf16 %v750_v48, %v749_v47  ;;  %v733_v53 = vld [vmem:[#allocation8 + $0x40] sm:$0xff]  ;;  %v734_v54 = vld [vmem:[#allocation8 + $0x48] sm:$0xff]  ;;  %v752_v57 = vld [vmem:[#allocation8 + $0xd8] sm:$0xff] }
 0x128   : > { %1932 = vmatpush1.bf16.msra.mxu0 %v1931_v5  ;;  %v767_v58 = vld [vmem:[#allocation8 + $0x150] sm:$0xff]  ;;  %v768_v59 = vld [vmem:[#allocation8 + $0x158] sm:$0xff]  ;;  %v1987_v60 = vpack.c.bf16 %v734_v54, %v733_v53  ;;  %v1989_v61 = vpack.c.bf16 %v752_v57, %v751_v56  ;;  %v753_v2 = vld [vmem:[#allocation8 + $0xe0] sm:$0xff] }
 0x129   : > { %1934 = vmatprep.subr.bf16.mxu0 %v1933_v6  ;;  %v735_v62 = vld [vmem:[#allocation8 + $0x50] sm:$0xff]  ;;  %v2021_v1 = vpack.c.bf16 %v768_v59, %v767_v58  ;;  %v754_v3 = vld [vmem:[#allocation8 + $0xe8] sm:$0xff]  ;;  %v737_v6 = vld [vmem:[#allocation8 + $0x60] sm:$0xff] }
 0x12a   : > { %1964 = vmatpush3.bf16.msra.mxu1 %v1961_v63  ;;  %v736_v63 = vld [vmem:[#allocation8 + $0x58] sm:$0xff]  ;;  %v1993_v5 = vpack.c.bf16 %v754_v3, %v753_v2  ;;  %v738_v7 = vld [vmem:[#allocation8 + $0x68] sm:$0xff]  ;;  %v769_v8 = vld [vmem:[#allocation8 + $0x160] sm:$0xff] }
 0x12b   : > { %1966 = vmatprep.subr.bf16.mxu1 %v1965_v9  ;;  %v1991_v4 = vpack.c.bf16 %v736_v63, %v735_v62  ;;  %v770_v10 = vld [vmem:[#allocation8 + $0x168] sm:$0xff]  ;;  %v755_v12 = vld [vmem:[#allocation8 + $0xf0] sm:$0xff]  ;;  %v756_v13 = vld [vmem:[#allocation8 + $0xf8] sm:$0xff] }
 0x12c   : > { %1936 = vmatpush1.bf16.msra.mxu0 %v1935_v14  ;;  %v2025_v11 = vpack.c.bf16 %v770_v10, %v769_v8  ;;  %v1997_v14 = vpack.c.bf16 %v756_v13, %v755_v12  ;;  %v740_v16 = vld [vmem:[#allocation8 + $0x78] sm:$0xff]  ;;  %v771_v17 = vld [vmem:[#allocation8 + $0x170] sm:$0xff]  ;;  %v934_v22 = vld [vmem:[#allocation11 + $0x20] sm:$0xff] }
 0x12d   : > { %1970 = vmatprep.subr.bf16.mxu0 %v1969_v15  ;;  %v739_v15 = vld [vmem:[#allocation8 + $0x70] sm:$0xff]  ;;  %v772_v19 = vld [vmem:[#allocation8 + $0x178] sm:$0xff]  ;;  %v930_v40 = vld [vmem:[#allocation11] sm:$0xff] }
 0x12e   : > { %1968 = vmatpush3.bf16.msra.mxu1 %v1965_v9  ;;  %v1995_v9 = vpack.c.bf16 %v738_v7, %v737_v6  ;;  %v2029_v20 = vpack.c.bf16 %v772_v19, %v771_v17  ;;  %v931_v21 = vld [vmem:[#allocation11 + $0x8] sm:$0xff]  ;;  %v550_v30 = vld [vmem:[#allocation7] sm:$0x7]  ;;  %v938_v48 = vld [vmem:[#allocation11 + $0x40] sm:$0xff] }
 0x12f   : > { %2002 = vmatprep.subr.bf16.mxu1 %v2001_v18  ;;  %632 = vmatmul.mubr.f32.vlgmr.msra.gmra.mrb[0].mxu0 %v500_v50  ;;  %v766_v50 = vld [vmem:[#allocation8 + $0x148] sm:$0xff]  ;;  %v933_v41 = vld [vmem:[#allocation11 + $0x18] sm:$0xff]  ;;  %v936_v59 = vld [vmem:[#allocation11 + $0x30] sm:$0xff] }
 0x130   : > { %637 = vmatprep.mubr.f32.mxu0 %v2683_v0  ;;  %1972 = vmatpush3.bf16.msra.mxu0 %v1971_v24  ;;  %v2017_v55 = vpack.c.bf16 %v766_v50, %v765_v49  ;;  %v932_v24 = vld [vmem:[#allocation11 + $0x10] sm:$0xff]  ;;  %v937_v45 = vld [vmem:[#allocation11 + $0x38] sm:$0xff]  ;;  %v2035_v53 = vpack.c.bf16 %v933_v41, %v930_v40  ;;  %v943_v62 = vld [vmem:[#allocation11 + $0x68] sm:$0xff] }
 0x131   : > { %1798 = vmatmul.mubr.f32.vlgmr.msra.gmra.mrb[0].mxu1 %v501_v23  ;;  %1974 = vmatprep.subr.bf16.mxu0 %v1973_v25  ;;  %v935_v25 = vld [vmem:[#allocation11 + $0x28] sm:$0xff]  ;;  %v941_v49 = vld [vmem:[#allocation11 + $0x58] sm:$0xff]  ;;  %v946_v63 = vld [vmem:[#allocation11 + $0x80] sm:$0xff] }
 0x132   : > { %2004 = vmatpush3.bf16.msra.mxu1 %v2001_v18  ;;  %v1999_v18 = vpack.c.bf16 %v740_v16, %v739_v15  ;;  %v2065_v26 = vpack.c.bf16 %v935_v25, %v932_v24  ;;  %v944_v2 = vld [vmem:[#allocation11 + $0x70] sm:$0xff]  ;;  %v947_v3 = vld [vmem:[#allocation11 + $0x88] sm:$0xff]  ;;  %v2041_v7 = vpack.c.bf16 %v946_v63, %v943_v62  ;;  %v942_v8 = vld [vmem:[#allocation11 + $0x60] sm:$0xff] }
 0x133   : > { %2006 = vmatprep.subr.bf16.mxu1 %v2005_v28  ;;  %638 = vmatmul.mubr.f32.gmra.mrb[2].mxu0 %v501_v23  ;;  %v2033_v23 = vpack.c.bf16 %v934_v22, %v931_v21  ;;  %v949_v10 = vld [vmem:[#allocation11 + $0x98] sm:$0xff]  ;;  %v2073_v12 = vpack.c.bf16 %v947_v3, %v944_v2  ;;  %v950_v13 = vld [vmem:[#allocation11 + $0xa0] sm:$0xff]  ;;  %v948_v17 = vld [vmem:[#allocation11 + $0x90] sm:$0xff] }
 0x134   : > { %1976 = vmatpush3.bf16.msra.mxu0 %v1975_v33  ;;  %v955_v19 = vld [vmem:[#allocation11 + $0xc8] sm:$0xff]  ;;  %v956_v22 = vld [vmem:[#allocation11 + $0xd0] sm:$0xff]  ;;  %v970_v41 = vld [vmem:[#allocation11 + $0x140] sm:$0xff] }
 0x135   : > { %1978 = vmatprep.subr.bf16.mxu0 %v1977_v34  ;;  %v967_v40 = vld [vmem:[#allocation11 + $0x128] sm:$0xff] }
 0x136   : > { %2008 = vmatpush3.bf16.msra.mxu1 %v2005_v28  ;;  %v3078_v28 = vshrl.u32 %v552_v27, 7  ;;  %v957_v27 = vld [vmem:[#allocation11 + $0xd8] sm:$0xff]  ;;  %v1170_v62 = vld [vmem:[#allocation14 + $0x88] sm:$0xff] }
 0x137   : > { %2010 = vmatprep.subr.bf16.mxu1 %v2009_v37  ;;  %v1186_v2 = vld [vmem:[#allocation14 + $0x108] sm:$0xff] }
 0x138   : > { %1980 = vmatpush3.bf16.msra.mxu0 %v1979_v42  ;;  %v554_v29 = vsub.s32 0, %v3078_v28  ;;  %v558_v31 = vsub.s32 1, %v3078_v28  ;;  %v562_v32 = vsub.s32 2, %v3078_v28 }
 0x139   : > { %1982 = vmatprep.subr.bf16.mxu0 %v1981_v43 }
 0x13a   : > { %2012 = vmatpush3.bf16.msra.mxu1 %v2009_v37  ;;  %v555_v33 = vrot.slane %v550_v30, %v554_v29  ;;  %v559_v34 = vrot.slane %v550_v30, %v558_v31  ;;  %v563_v35 = vrot.slane %v550_v30, %v562_v32  ;;  %v961_v30 = vld [vmem:[#allocation11 + $0xf8] sm:$0xff] }
 0x13b   : > { %2014 = vmatprep.subr.bf16.mxu1 %v2013_v46 }
 0x13c   : > { %1984 = vmatpush3.bf16.msra.mxu0 %v1983_v51 }
 0x13d   : > { %1986 = vmatprep.subr.bf16.mxu0 %v1985_v52 }
 0x13e   : > { %2016 = vmatpush3.bf16.msra.mxu1 %v2013_v46  ;;  %v940_v46 = vld [vmem:[#allocation11 + $0x50] sm:$0xff] }
 0x13f   : > { %2018 = vmatprep.subr.bf16.mxu1 %v2017_v55  ;;  %v2037_v58 = vpack.c.bf16 %v940_v46, %v937_v45  ;;  %v966_v45 = vld [vmem:[#allocation11 + $0x120] sm:$0xff]  ;;  %v969_v46 = vld [vmem:[#allocation11 + $0x138] sm:$0xff] }
 0x140   : > { %1988 = vmatpush3.bf16.msra.mxu0 %v1987_v60  ;;  %v939_v60 = vld [vmem:[#allocation11 + $0x48] sm:$0xff] }
 0x141   : > { %1990 = vmatprep.subr.bf16.mxu0 %v1989_v61 }
 0x142   : > { %2020 = vmatpush3.bf16.msra.mxu1 %v2017_v55 }
 0x143   : > { %2022 = vmatprep.subr.bf16.mxu1 %v2021_v1 }
 0x144   : > { %1992 = vmatpush3.bf16.msra.mxu0 %v1991_v4 }
 0x145   : > { %1994 = vmatprep.subr.bf16.mxu0 %v1993_v5  ;;  %v2039_v5 = vpack.c.bf16 %v939_v60, %v936_v59  ;;  %v977_v59 = vld [vmem:[#allocation11 + $0x178] sm:$0xff] }
 0x146   : > { %2024 = vmatpush3.bf16.msra.mxu1 %v2021_v1  ;;  %v2069_v1 = vpack.c.bf16 %v941_v49, %v938_v48  ;;  %v2059_v48 = vpack.c.bf16 %v969_v46, %v966_v45  ;;  %v973_v49 = vld [vmem:[#allocation11 + $0x158] sm:$0xff]  ;;  %v1177_v46 = vld [vmem:[#allocation14 + $0xc0] sm:$0xff] }
 0x147   : > { %2026 = vmatprep.subr.bf16.mxu1 %v2025_v11  ;;  %v1160_v45 = vld [vmem:[#allocation14 + $0x38] sm:$0xff] }
 0x148   : > { %1996 = vmatpush3.bf16.msra.mxu0 %v1995_v9  ;;  %v945_v9 = vld [vmem:[#allocation11 + $0x78] sm:$0xff] }
 0x149   : > { %1998 = vmatprep.subr.bf16.mxu0 %v1997_v14  ;;  %v953_v14 = vld [vmem:[#allocation11 + $0xb8] sm:$0xff]  ;;  %v2043_v15 = vpack.c.bf16 %v945_v9, %v942_v8 }
 0x14a   : > { %2028 = vmatpush3.bf16.msra.mxu1 %v2025_v11  ;;  %v952_v11 = vld [vmem:[#allocation11 + $0xb0] sm:$0xff]  ;;  %v2077_v21 = vpack.c.bf16 %v953_v14, %v950_v13  ;;  %v1172_v13 = vld [vmem:[#allocation14 + $0x98] sm:$0xff] }
 0x14b   : > { %2030 = vmatprep.subr.bf16.mxu1 %v2029_v20  ;;  %v2045_v16 = vpack.c.bf16 %v952_v11, %v949_v10  ;;  %v1153_v10 = vld [vmem:[#allocation14] sm:$0xff]  ;;  %v1154_v11 = vld [vmem:[#allocation14 + $0x8] sm:$0xff] }
 0x14c   : > { %2000 = vmatpush3.bf16.msra.mxu0 %v1999_v18  ;;  %v951_v18 = vld [vmem:[#allocation11 + $0xa8] sm:$0xff] }
 0x14d   : > { %2034 = vmatprep.subr.bf16.mxu0 %v2033_v23  ;;  %v959_v23 = vld [vmem:[#allocation11 + $0xe8] sm:$0xff]  ;;  %v2047_v24 = vpack.c.bf16 %v951_v18, %v948_v17  ;;  %v2099_v17 = vpack.c.bf16 %v1154_v11, %v1153_v10  ;;  %v1183_v11 = vld [vmem:[#allocation14 + $0xf0] sm:$0xff] }
 0x14e   : > { %2032 = vmatpush3.bf16.msra.mxu1 %v2029_v20  ;;  %v958_v20 = vld [vmem:[#allocation11 + $0xe0] sm:$0xff] }
 0x14f   : > { %2066 = vmatprep.subr.bf16.mxu1 %v2065_v26  ;;  %v2049_v25 = vpack.c.bf16 %v958_v20, %v955_v19 }
 0x202   : > { %v633_v36 = vpop.f32.mrb[0].mxu0 }
 0x203   : > { %v634_v37 = vadd.f32 %v633_v36, %v555_v33  ;;  %v635_v38 = vpop.f32.mrb[1].mxu0 }
 0x204   : > { %v1799_v39 = vpop.f32.mrb[0].mxu1  ;;  %v636_v42 = vadd.f32 %v635_v38, %v559_v34  ;;  %v963_v38 = vld [vmem:[#allocation11 + $0x108] sm:$0xff] }
 0x205   : > { %v716_v43 = vadd.f32 %v1799_v39, %v563_v35  ;;  %v710_v44 = vpop.f32.mrb[1].mxu1  ;;  %v719_v54 = vmax.f32 %v634_v37, 0.0  ;;  %v960_v37 = vld [vmem:[#allocation11 + $0xf0] sm:$0xff] }
 0x206   : > { %v711_v47 = vadd.f32 %v710_v44, %v563_v35  ;;  %v720_v50 = vmax.f32 %v636_v42, 0.0  ;;  %v639_v52 = vpop.f32.mrb[2].mxu0  ;;  %v2055_v39 = vpack.c.bf16 %v963_v38, %v960_v37  ;;  %v962_v42 = vld [vmem:[#allocation11 + $0x100] sm:$0xff]  ;;  %v965_v44 = vld [vmem:[#allocation11 + $0x118] sm:$0xff]  ;;  %v1158_v37 = vld [vmem:[#allocation14 + $0x28] sm:$0xff] }
 0x207   : > { %v724_v51 = vmax.f32 %v716_v43, 0.0  ;;  %v640_v56 = vadd.f32 %v639_v52, %v555_v33  ;;  %v641_v57 = vpop.f32.mrb[3].mxu0  ;;  %v964_v33 = vld [vmem:[#allocation11 + $0x110] sm:$0xff]  ;;  %v2057_v43 = vpack.c.bf16 %v970_v41, %v967_v40  ;;  %v1189_v40 = vld [vmem:[#allocation14 + $0x120] sm:$0xff] }
 0x208   : > { %v721_v55 = vmax.f32 %v711_v47, 0.0  ;;  %v642_v61 = vadd.f32 %v641_v57, %v559_v34  ;;  %844 = vmatprep.mubr.f32.mxu0 %v720_v50  ;;  %v2081_v34 = vpack.c.bf16 %v959_v23, %v956_v22  ;;  %v2053_v36 = vpack.c.bf16 %v964_v33, %v961_v30  ;;  %v976_v50 = vld [vmem:[#allocation11 + $0x170] sm:$0xff]  ;;  %v1156_v22 = vld [vmem:[#allocation14 + $0x18] sm:$0xff]  ;;  %v1173_v23 = vld [vmem:[#allocation14 + $0xa0] sm:$0xff] }
 0x209   : > { %845 = vmatmul.mubr.f32.vlgmr.msra.gmra.mrb[4].mxu0 %v719_v54  ;;  %v722_v6 = vmax.f32 %v640_v56, 0.0  ;;  %v2085_v47 = vpack.c.bf16 %v965_v44, %v962_v42  ;;  %v2061_v52 = vpack.c.bf16 %v976_v50, %v973_v49  ;;  %v972_v54 = vld [vmem:[#allocation11 + $0x150] sm:$0xff]  ;;  %v975_v56 = vld [vmem:[#allocation11 + $0x168] sm:$0xff]  ;;  %v1192_v49 = vld [vmem:[#allocation14 + $0x138] sm:$0xff] }
 0x20a   : > { %1832 = vmatprep.mubr.f32.mxu1 %v721_v55  ;;  %v723_v4 = vmax.f32 %v642_v61, 0.0  ;;  %2036 = vmatpush1.bf16.msra.mxu0 %v2035_v53  ;;  %v971_v53 = vld [vmem:[#allocation11 + $0x148] sm:$0xff]  ;;  %v2063_v57 = vpack.c.bf16 %v975_v56, %v972_v54  ;;  %v1175_v38 = vld [vmem:[#allocation14 + $0xb0] sm:$0xff]  ;;  %v1180_v56 = vld [vmem:[#allocation14 + $0xd8] sm:$0xff] }
 0x20b   : > { %1833 = vmatmul.mubr.f32.vlgmr.msra.gmra.mrb[2].mxu1 %v724_v51  ;;  %2038 = vmatprep.subr.bf16.mxu0 %v2037_v58  ;;  %v968_v51 = vld [vmem:[#allocation11 + $0x130] sm:$0xff]  ;;  %v974_v58 = vld [vmem:[#allocation11 + $0x160] sm:$0xff] }
 0x20c   : > { %2068 = vmatpush3.bf16.msra.mxu1 %v2065_v26  ;;  %849 = vmatprep.mubr.f32.mxu0 %v723_v4  ;;  %v954_v26 = vld [vmem:[#allocation11 + $0xc0] sm:$0xff]  ;;  %v2089_v55 = vpack.c.bf16 %v971_v53, %v968_v51  ;;  %v2093_v60 = vpack.c.bf16 %v977_v59, %v974_v58  ;;  %v1190_v41 = vld [vmem:[#allocation14 + $0x128] sm:$0xff]  ;;  %v1159_v44 = vld [vmem:[#allocation14 + $0x30] sm:$0xff] }
 0x20d   : > { %2070 = vmatprep.subr.bf16.mxu1 %v2069_v1  ;;  %850 = vmatmul.mubr.f32.gmra.mrb[6].mxu0 %v722_v6  ;;  %v2051_v35 = vpack.c.bf16 %v957_v27, %v954_v26  ;;  %v1169_v61 = vld [vmem:[#allocation14 + $0x80] sm:$0xff]  ;;  %v1188_v26 = vld [vmem:[#allocation14 + $0x118] sm:$0xff]  ;;  %v2111_v50 = vpack.c.bf16 %v1160_v45, %v1159_v44  ;;  %v1162_v54 = vld [vmem:[#allocation14 + $0x48] sm:$0xff] }
 0x20e   : > { %2040 = vmatpush1.bf16.msra.mxu0 %v2039_v5  ;;  %1059 = vmatprep.mubr.f32.mxu0 %v2683_v0  ;;  %v2097_v63 = vpack.c.bf16 %v1170_v62, %v1169_v61  ;;  %v1161_v53 = vld [vmem:[#allocation14 + $0x40] sm:$0xff]  ;;  %v1194_v58 = vld [vmem:[#allocation14 + $0x148] sm:$0xff]  ;;  %v1163_v62 = vld [vmem:[#allocation14 + $0x50] sm:$0xff] }
 0x20f   : > { %2042 = vmatprep.subr.bf16.mxu0 %v2041_v7  ;;  %v1604_v7 = vld [vmem:[#allocation10] ss:$0 sm:$0xff]  ;;  %v2115_v59 = vpack.c.bf16 %v1162_v54, %v1161_v53 }
 0x210   : > { %2072 = vmatpush3.bf16.msra.mxu1 %v2069_v1  ;;  %v1185_v1 = vld [vmem:[#allocation14 + $0x100] sm:$0xff] }
 0x211   : > { %2074 = vmatprep.subr.bf16.mxu1 %v2073_v12  ;;  %v2129_v3 = vpack.c.bf16 %v1186_v2, %v1185_v1  ;;  %v1181_v1 = vld [vmem:[#allocation14 + $0xe0] sm:$0xff]  ;;  %v1182_v2 = vld [vmem:[#allocation14 + $0xe8] sm:$0xff] }
 0x212   : > { %2044 = vmatpush1.bf16.msra.mxu0 %v2043_v15 }
 0x213   : > { %2046 = vmatprep.subr.bf16.mxu0 %v2045_v16 }
 0x214   : > { %2076 = vmatpush3.bf16.msra.mxu1 %v2073_v12  ;;  %v1171_v12 = vld [vmem:[#allocation14 + $0x90] sm:$0xff] }
 0x215   : > { %2078 = vmatprep.subr.bf16.mxu1 %v2077_v21  ;;  %v2101_v20 = vpack.c.bf16 %v1172_v13, %v1171_v12  ;;  %v1184_v12 = vld [vmem:[#allocation14 + $0xf8] sm:$0xff]  ;;  %v1197_v13 = vld [vmem:[#allocation14 + $0x160] sm:$0xff] }
 0x216   : > { %2048 = vmatpush1.bf16.msra.mxu0 %v2047_v24  ;;  %v1174_v24 = vld [vmem:[#allocation14 + $0xa8] sm:$0xff] }
 0x217   : > { %2050 = vmatprep.subr.bf16.mxu0 %v2049_v25  ;;  %v1187_v25 = vld [vmem:[#allocation14 + $0x110] sm:$0xff] }
 0x218   : > { %2080 = vmatpush3.bf16.msra.mxu1 %v2077_v21  ;;  %v1155_v21 = vld [vmem:[#allocation14 + $0x10] sm:$0xff] }
 0x219   : > { %2082 = vmatprep.subr.bf16.mxu1 %v2081_v34  ;;  %v2103_v30 = vpack.c.bf16 %v1156_v22, %v1155_v21  ;;  %v1200_v21 = vld [vmem:[#allocation14 + $0x178] sm:$0xff] }
 0x21a   : > { %2052 = vmatpush1.bf16.msra.mxu0 %v2051_v35  ;;  %v2133_v35 = vpack.c.bf16 %v1188_v26, %v1187_v25 }
 0x21b   : > { %2054 = vmatprep.subr.bf16.mxu0 %v2053_v36  ;;  %v1157_v36 = vld [vmem:[#allocation14 + $0x20] sm:$0xff] }
 0x21c   : > { %2084 = vmatpush3.bf16.msra.mxu1 %v2081_v34  ;;  %v2105_v34 = vpack.c.bf16 %v1174_v24, %v1173_v23  ;;  %v2107_v42 = vpack.c.bf16 %v1158_v37, %v1157_v36  ;;  %v978_v23 = vld [vmem:[#allocation13] sm:$0x7] }
 0x21d   : > { %2086 = vmatprep.subr.bf16.mxu1 %v2085_v47  ;;  %v983_v24 = vrot.slane %v978_v23, %v554_v29  ;;  %v987_v25 = vrot.slane %v978_v23, %v558_v31 }
 0x21e   : > { %2056 = vmatpush1.bf16.msra.mxu0 %v2055_v39  ;;  %v1176_v39 = vld [vmem:[#allocation14 + $0xb8] sm:$0xff] }
 0x21f   : > { %2058 = vmatprep.subr.bf16.mxu0 %v2057_v43  ;;  %v2137_v43 = vpack.c.bf16 %v1190_v41, %v1189_v40 }
 0x220   : > { %2088 = vmatpush3.bf16.msra.mxu1 %v2085_v47  ;;  %v1178_v47 = vld [vmem:[#allocation14 + $0xc8] sm:$0xff] }
 0x221   : > { %2090 = vmatprep.subr.bf16.mxu1 %v2089_v55  ;;  %v2113_v51 = vpack.c.bf16 %v1178_v47, %v1177_v46 }
 0x222   : > { %2060 = vmatpush1.bf16.msra.mxu0 %v2059_v48  ;;  %v1191_v48 = vld [vmem:[#allocation14 + $0x130] sm:$0xff] }
 0x223   : > { %2062 = vmatprep.subr.bf16.mxu0 %v2061_v52  ;;  %v2141_v52 = vpack.c.bf16 %v1192_v49, %v1191_v48 }
 0x224   : > { %2092 = vmatpush3.bf16.msra.mxu1 %v2089_v55  ;;  %v1179_v55 = vld [vmem:[#allocation14 + $0xd0] sm:$0xff] }
 0x225   : > { %2094 = vmatprep.subr.bf16.mxu1 %v2093_v60 }
 0x226   : > { %2064 = vmatpush1.bf16.msra.mxu0 %v2063_v57  ;;  %v1193_v57 = vld [vmem:[#allocation14 + $0x140] sm:$0xff] }
 0x227   : > { %2098 = vmatprep.subr.bf16.mxu0 %v2097_v63  ;;  %v2145_v61 = vpack.c.bf16 %v1194_v58, %v1193_v57  ;;  %v1164_v63 = vld [vmem:[#allocation14 + $0x58] sm:$0xff] }
 0x228   : > { %2096 = vmatpush3.bf16.msra.mxu1 %v2093_v60  ;;  %v2117_v60 = vpack.c.bf16 %v1180_v56, %v1179_v55 }
 0x229   : > { %2130 = vmatprep.subr.bf16.mxu1 %v2129_v3 }
 0x2dc   : > { %v1667_v4 = vpop.f32.mrb[4].mxu0 }
 0x2dd   : > { %v1668_v5 = vpop.f32.mrb[5].mxu0 }
 0x2de   : > { %v1834_v6 = vpop.f32.mrb[2].mxu1  ;;  %v1669_v8 = vadd.f32 %v1668_v5, %v1667_v4  ;;  %v1196_v4 = vld [vmem:[#allocation14 + $0x158] sm:$0xff]  ;;  %v2119_v5 = vpack.c.bf16 %v1164_v63, %v1163_v62 }
 0x2df   : > { %v921_v9 = vpop.f32.mrb[3].mxu1 }
 0x2e0   : > { %v847_v14 = vadd.f32 %v1669_v8, %v1604_v7  ;;  %v1670_v15 = vpop.f32.mrb[6].mxu0  ;;  %v1165_v8 = vld [vmem:[#allocation14 + $0x60] sm:$0xff] }
 0x2e1   : > { %v1671_v16 = vpop.f32.mrb[7].mxu0 }
 0x2e2   : > { %v922_v18 = vadd.f32 %v921_v9, %v847_v14  ;;  %v1672_v19 = vadd.f32 %v1671_v16, %v1670_v15  ;;  %v1166_v9 = vld [vmem:[#allocation14 + $0x68] sm:$0xff]  ;;  %v2125_v14 = vpack.c.bf16 %v1184_v12, %v1183_v11  ;;  %v1167_v16 = vld [vmem:[#allocation14 + $0x70] sm:$0xff] }
 0x2e3   : > { %v2123_v10 = vpack.c.bf16 %v1166_v9, %v1165_v8  ;;  %v1198_v15 = vld [vmem:[#allocation14 + $0x168] sm:$0xff] }
 0x2e4   : > { %1358 = vst [vmem:[%s3091_s2] sm:$0xff] %v922_v18  ;;  %v852_v27 = vadd.f32 %v1672_v19, %v1604_v7  ;;  %1060 = vmatmul.mubr.f32.vlgmr.msra.gmra.mrb[8].mxu0 %v922_v18  ;;  %1867 = vmatprep.mubr.f32.mxu1 %v922_v18  ;;  %v2153_v18 = vpack.c.bf16 %v1198_v15, %v1197_v13 }
 0x2e5   : > { %1065 = vmatprep.mubr.f32.mxu0 %v2683_v0  ;;  %2100 = vmatpush3.bf16.msra.mxu0 %v2099_v17  ;;  %v2109_v0 = vpack.c.bf16 %v1176_v39, %v1175_v38  ;;  %v1168_v17 = vld [vmem:[#allocation14 + $0x78] sm:$0xff] }
 0x2e6   : > { %v927_v33 = vadd.f32 %v1834_v6, %v852_v27  ;;  %2102 = vmatprep.subr.bf16.mxu0 %v2101_v20  ;;  %v2121_v6 = vpack.c.bf16 %v1182_v2, %v1181_v1  ;;  %v2127_v19 = vpack.c.bf16 %v1168_v17, %v1167_v16  ;;  %v1199_v20 = vld [vmem:[#allocation14 + $0x170] sm:$0xff] }
 0x2e7   : > { %v2157_v22 = vpack.c.bf16 %v1200_v21, %v1199_v20 }
 0x2e8   : > { %1066 = vmatmul.mubr.f32.gmra.mrb[10].mxu0 %v927_v33  ;;  %1359 = vst [vmem:[%s3091_s2 + $0x8] sm:$0xff] %v927_v33  ;;  %1868 = vmatmul.mubr.f32.vlgmr.msra.gmra.mrb[4].mxu1 %v927_v33  ;;  %v991_v33 = vrot.slane %v978_v23, %v562_v32 }
 0x2e9   : > { %2104 = vmatpush3.bf16.msra.mxu0 %v2103_v30  ;;  %2132 = vmatpush3.bf16.msra.mxu1 %v2129_v3  ;;  %v1195_v3 = vld [vmem:[#allocation14 + $0x150] sm:$0xff] }
 0x2ea   : > { %2106 = vmatprep.subr.bf16.mxu0 %v2105_v34  ;;  %2134 = vmatprep.subr.bf16.mxu1 %v2133_v35  ;;  %v2149_v7 = vpack.c.bf16 %v1196_v4, %v1195_v3 }
 0x2ed   : > { %2108 = vmatpush3.bf16.msra.mxu0 %v2107_v42  ;;  %2136 = vmatpush3.bf16.msra.mxu1 %v2133_v35 }
 0x2ee   : > { %2110 = vmatprep.subr.bf16.mxu0 %v2109_v0  ;;  %2138 = vmatprep.subr.bf16.mxu1 %v2137_v43 }
 0x2f1   : > { %2112 = vmatpush3.bf16.msra.mxu0 %v2111_v50  ;;  %2140 = vmatpush3.bf16.msra.mxu1 %v2137_v43 }
 0x2f2   : > { %2114 = vmatprep.subr.bf16.mxu0 %v2113_v51  ;;  %2142 = vmatprep.subr.bf16.mxu1 %v2141_v52 }
 0x2f5   : > { %2116 = vmatpush3.bf16.msra.mxu0 %v2115_v59  ;;  %2144 = vmatpush3.bf16.msra.mxu1 %v2141_v52 }
 0x2f6   : > { %2118 = vmatprep.subr.bf16.mxu0 %v2117_v60  ;;  %2146 = vmatprep.subr.bf16.mxu1 %v2145_v61 }
 0x2f9   : > { %2120 = vmatpush3.bf16.msra.mxu0 %v2119_v5  ;;  %2148 = vmatpush3.bf16.msra.mxu1 %v2145_v61 }
 0x2fa   : > { %2122 = vmatprep.subr.bf16.mxu0 %v2121_v6  ;;  %2150 = vmatprep.subr.bf16.mxu1 %v2149_v7 }
 0x2fd   : > { %2152 = vmatpush3.bf16.msra.mxu1 %v2149_v7  ;;  %2124 = vmatpush3.bf16.msra.mxu0 %v2123_v10 }
 0x2fe   : > { %2126 = vmatprep.subr.bf16.mxu0 %v2125_v14  ;;  %2154 = vmatprep.subr.bf16.mxu1 %v2153_v18 }
 0x301   : > { %2128 = vmatpush3.bf16.msra.mxu0 %v2127_v19  ;;  %2156 = vmatpush3.bf16.msra.mxu1 %v2153_v18 }
 0x302   : > { %2158 = vmatprep.subr.bf16.mxu1 %v2157_v22 }
 0x305   : > { %2160 = vmatpush3.bf16.msra.mxu1 %v2157_v22 }
 0x3b7   : > { %v1061_v26 = vpop.f32.mrb[8].mxu0 }
 0x3b8   : > { %v1062_v27 = vadd.f32 %v1061_v26, %v983_v24  ;;  %v1063_v30 = vpop.f32.mrb[9].mxu0 }
 0x3b9   : > { %v1064_v34 = vadd.f32 %v1063_v30, %v987_v25 }
 0x3ba   : > { %v1147_v38 = vmax.f32 %v1062_v27, 0.0 }
 0x3bb   : > { %v1148_v35 = vmax.f32 %v1064_v34, 0.0  ;;  %v1067_v36 = vpop.f32.mrb[10].mxu0  ;;  %v1869_v37 = vpop.f32.mrb[4].mxu1 }
 0x3bc   : > { %v1068_v39 = vadd.f32 %v1067_v36, %v983_v24  ;;  %v1144_v40 = vadd.f32 %v1869_v37, %v991_v33  ;;  %v1069_v41 = vpop.f32.mrb[11].mxu0  ;;  %v1138_v29 = vpop.f32.mrb[5].mxu1 }
 0x3bd   : > { %v1070_v42 = vadd.f32 %v1069_v41, %v987_v25  ;;  %v1139_v31 = vadd.f32 %v1138_v29, %v991_v33  ;;  %1272 = vmatprep.mubr.f32.mxu0 %v1148_v35 }
 0x3be   : > { %1273 = vmatmul.mubr.f32.vlgmr.msra.gmra.mrb[12].mxu0 %v1147_v38  ;;  %v1150_v0 = vmax.f32 %v1068_v39, 0.0  ;;  %v1152_v43 = vmax.f32 %v1144_v40, 0.0 }
 0x3bf   : > { %v1151_v28 = vmax.f32 %v1070_v42, 0.0  ;;  %v1149_v32 = vmax.f32 %v1139_v31, 0.0 }
 0x3c1   : > { %1277 = vmatprep.mubr.f32.mxu0 %v1151_v28  ;;  %1902 = vmatprep.mubr.f32.mxu1 %v1149_v32 }
 0x3c2   : > { %1278 = vmatmul.mubr.f32.gmra.mrb[14].mxu0 %v1150_v0  ;;  %1903 = vmatmul.mubr.f32.vlgmr.msra.gmra.mrb[6].mxu1 %v1152_v43 }
 0x3c3   : > { %2567 = shalt.err (!%p2564_p9)
}
 0x3c4   : > { %s2568_s11 = scalar_lea.hbm %s3111_s28, 256  ;;  %s2572_s12 = scalar_lea.hbm %s3244_s9, 512 }
 0x3c5   : > { %p2569_p4 = scmp.ne.s32.totalorder %s3111_s28, %s2568_s11  ;;  %p2573_p2 = scmp.lt.u32.totalorder %s3111_s28, %s3244_s9 }
 0x3c6   : > { %p2574_p6 = scmp.lt.u32.totalorder %s2572_s12, %s2568_s11  ;;  %p2576_p10 = scmp.lt.u32.totalorder %s2568_s11, %s3111_s28 }
 0x3c7   : > { %p2570_p3 = pnand %p2569_p4, %p3245_p1 }
 0x3c8   : > { %p2575_p5 = por %p2574_p6, %p2573_p2 }
 0x3c9   : > { %p2571_p0 = pneg %p2570_p3 }
 0x3ca   : > { %p2577_p11 = por %p2576_p10, %p2575_p5 }
 0x3cc   : > { %p2578_p12 = pnand %p2577_p11, %p2571_p0 }
 0x3ce   : > { %2581 = shalt.err (!%p2578_p12)
}
 0x3cf   : > { %s3216_s17 = smov 128   ;;  %s2686_s21 = smov 8   ;;  %v1605_v46 = vld [vmem:[#allocation16] ss:$0 sm:$0xff] }
 0x3d0   : > { %2196 = dma.vmem_to_hbm [thread:$0]  (%p3245_p1), %s3104_s20, 256, %s3111_s28, %s1368_s24, %s3216_s17, %s3216_s17, %s2686_s21  }
 0x3d1   : > { %s489_s11 = scalar_lea.vmem [#allocation17], %s3048_s10  ;;  %s3246_s24 = sld [smem:[#allocation29_spill]] }
 0x3d2   : > { %s1381_s2 = sshll.u32 %s489_s11, 4  ;;  %s1363_s12 = scalar_lea.sflag [#allocation4], %s3045_s22  ;;  %s3141_s2 = int_to_ptr.vmem [resolvable:$true] %s1381_s2 }
 0x3d3   : > { %s2582_s29 = scalar_lea.vmem %s3141_s2, 256  ;;  %s2687_s10 = smov [#allocation17]  }
 0x3d4   : > { %p2583_p13 = scmp.ne.s32.totalorder %s3141_s2, %s2582_s29  ;;  %s2586_s1 = sshll.u32 %s2687_s10, 4  ;;  %s2587_s1 = int_to_ptr.vmem [resolvable:$false] %s2586_s1 }
 0x3d5   : > { %s2588_s17 = scalar_lea.vmem %s2587_s1, 512  ;;  %p2589_p9 = scmp.lt.s32.totalorder %s3141_s2, %s2587_s1 }
 0x3d6   : > { %p2584_p8 = pnand %p2583_p13, %p3245_p1  ;;  %p2590_p4 = scmp.lt.s32.totalorder %s2588_s17, %s2582_s29 }
 0x3d7   : > { %s3148_s27 = scalar_lea.hbm %s3246_s24, %s1615_s26 }
 0x3d8   : > { %p2585_p7 = pneg %p2584_p8  ;;  %p2591_p3 = por %p2590_p4, %p2589_p9 }
 0x3da   : > { %p2592_p0 = pnand %p2591_p3, %p2585_p7 }
 0x491   : > { %v1741_v44 = vpop.f32.mrb[12].mxu0 }
 0x492   : > { %v1742_v45 = vpop.f32.mrb[13].mxu0 }
 0x493   : > { %v1743_v47 = vadd.f32 %v1742_v45, %v1741_v44 }
 0x495   : > { %v1744_v48 = vpop.f32.mrb[14].mxu0  ;;  %v1904_v49 = vpop.f32.mrb[6].mxu1  ;;  %v1275_v50 = vadd.f32 %v1743_v47, %v1605_v46 }
 0x496   : > { %v1745_v51 = vpop.f32.mrb[15].mxu0  ;;  %v1349_v52 = vpop.f32.mrb[7].mxu1 }
 0x497   : > { %v1746_v53 = vadd.f32 %v1745_v51, %v1744_v48  ;;  %v1350_v54 = vadd.f32 %v1349_v52, %v1275_v50 }
 0x499   : > { %v1280_v55 = vadd.f32 %v1746_v53, %v1605_v46  ;;  %1360 = vst [vmem:[%s489_s11] sm:$0xff] %v1350_v54 }
 0x49b   : > { %v1355_v56 = vadd.f32 %v1904_v49, %v1280_v55 }
 0x49d   : > { %1361 = vst [vmem:[%s489_s11 + $0x8] sm:$0xff] %v1355_v56 }
 0x49e   : > { %2595 = shalt.err (!%p2592_p0)
}
 0x49f   : > { %s2596_s19 = scalar_lea.hbm %s3148_s27, 256  ;;  %s2600_s20 = scalar_lea.hbm %s3246_s24, 512 }
 0x4a0   : > { %p2597_p2 = scmp.ne.s32.totalorder %s3148_s27, %s2596_s19  ;;  %p2601_p10 = scmp.lt.u32.totalorder %s3148_s27, %s3246_s24 }
 0x4a1   : > { %p2602_p11 = scmp.lt.u32.totalorder %s2600_s20, %s2596_s19  ;;  %p2604_p13 = scmp.lt.u32.totalorder %s2596_s19, %s3148_s27 }
 0x4a2   : > { %p2598_p6 = pnand %p2597_p2, %p3245_p1 }
 0x4a3   : > { %p2603_p12 = por %p2602_p11, %p2601_p10 }
 0x4a4   : > { %p2599_p5 = pneg %p2598_p6 }
 0x4a5   : > { %p2605_p8 = por %p2604_p13, %p2603_p12 }
 0x4a7   : > { %p2606_p7 = pnand %p2605_p8, %p2599_p5 }
 0x4a9   : > { %2609 = shalt.err (!%p2606_p7)
}
 0x4aa   : > { %s3247_s17 = smov 128  }
 0x4ab   : > { %2195 = dma.vmem_to_hbm [thread:$0]  (%p3245_p1), %s3141_s2, 256, %s3148_s27, %s1363_s12, %s3247_s17, %s3247_s17, %s2686_s21  }
 0x4ac PF: > { %s1412_s29 = sand.u32 1, %s2656_s13   ;;  %p3248_p9 = scmp.ne.s32.totalorder %s3233_s25, 0 }
 0x4ad   : > { %p3249_p4 = scmp.ge.s32.totalorder %s2668_s16, 2  ;;  %s1413_s1 = scalar_lea.sflag [#allocation4], %s1412_s29 }
 0x4af   : > { %p2229_p3 = pnand %p3249_p4, %p3248_p9 }
 0x4b1   : > { %2647 = dma.done.wait (!%p2229_p3), %s1413_s1, 256  }
 0x4b2   : > { %2649 = vsyncadd (!%p2229_p3), %s1413_s1, 4294967040  ;;  %s1422_s30 = scalar_lea.sflag [#allocation19], %s1412_s29 }
 0x4b3   : > { %2651 = dma.done.wait (!%p2229_p3), %s1422_s30, 256  }
 0x4b4   : > { %2653 = vsyncadd (!%p2229_p3), %s1422_s30, 4294967040  ;;  %p31_p1 = scmp.ge.s32.totalorder %s2963_s23, 4   ;;  %s3250_s13 = smov %s2660_s14 }
 0x4b5   : > { %s3251_s14 = smov %s2664_s15  ;;  %s3252_s15 = smov %s2974_s18 }
 0x4b6   : > { %s3253_s16 = smov %s2963_s23  ;;  %33 = sbr.rel (!%p31_p1) target bundleno = 16 (0x10), region = 150 }
 0x4bd   :  { %1427 = vsyncpa [#allocation3], 1 }
 0x4be   :  { %1429 = vsyncpa [#allocation3 + $0x1], 1 }
 0x4bf   :  { %1430 = vsyncpa [#allocation6], 1 }
 0x4c0   :  { %1431 = vsyncpa [#allocation9], 1 }
 0x4c1   :  { %1432 = vsyncpa [#allocation12], 1 }
 0x4c2   :  { %1433 = vsyncpa [#allocation15], 1 }
 0x4c3   :  { %1434 = vsyncpa [#allocation4], 1 }
 0x4c4   :  { %1436 = vsyncpa [#allocation4 + $0x1], 1 }
 0x4c5   :  { %1437 = vsyncpa [#allocation19], 1 }
 0x4c6   :  { %1439 = vsyncpa [#allocation19 + $0x1], 1 }

// kernel: autoencoder_forward.1
= control target key start
LH: loop header
LB: loop body
LE: loop exit
PB: predicated region body
PF: predicated region fallthrough
CT: control target
= control target key end

     0   :  { %s3195_s0 = inlined_call_operand.hbm [shape: f32[32,128], index: 0, kind: input, shape index: {}]   ;;  %s3196_s1 = inlined_call_operand.hbm [shape: f32[128,384], index: 1, kind: input, shape index: {}]   ;;  %s3197_s2 = inlined_call_operand.hbm [shape: f32[1,384], index: 2, kind: input, shape index: {}]   ;;  %s3198_s3 = inlined_call_operand.hbm [shape: f32[384,128], index: 3, kind: input, shape index: {}]   ;;  %s3199_s4 = inlined_call_operand.hbm [shape: f32[1,128], index: 4, kind: input, shape index: {}]   ;;  %s3200_s5 = inlined_call_operand.hbm [shape: f32[128,384], index: 5, kind: input, shape index: {}]   ;;  %s3201_s6 = inlined_call_operand.hbm [shape: f32[1,384], index: 6, kind: input, shape index: {}]   ;;  %s3202_s7 = inlined_call_operand.hbm [shape: f32[384,128], index: 7, kind: input, shape index: {}]   ;;  %s3203_s8 = inlined_call_operand.hbm [shape: f32[1,128], index: 8, kind: input, shape index: {}]   ;;  %s3204_s9 = inlined_call_operand.hbm [shape: f32[32,128], index: 9, kind: output, shape index: {0}]   ;;  %s3205_s10 = inlined_call_operand.hbm [shape: f32[32,128], index: 10, kind: output, shape index: {1}]  }
   0x1   :  { %3217 = sst [smem:[#allocation27_spill]] %s3196_s1 }
   0x2   :  { %3218 = sst [smem:[#allocation28_spill]] %s3197_s2 }
   0x3   :  { %3219 = sst [smem:[#allocation29_spill]] %s3204_s9 }
   0x4   :  { %3220 = sst [smem:[#allocation30_spill]] %s3205_s10 }
   0x5   :  { %16 = vsyncpa [#allocation3], 0 }
   0x6   :  { %18 = vsyncpa [#allocation3 + $0x1], 0 }
   0x7   :  { %19 = vsyncpa [#allocation6], 0 }
   0x8   :  { %20 = vsyncpa [#allocation9], 0 }
   0x9   :  { %21 = vsyncpa [#allocation12], 0 }
   0xa   :  { %22 = vsyncpa [#allocation15], 0 }
   0xb   :  { %23 = vsyncpa [#allocation4], 0 }
   0xc   :  { %25 = vsyncpa [#allocation4 + $0x1], 0 }
   0xd   :  { %26 = vsyncpa [#allocation19], 0 }
   0xe   :  { %28 = vsyncpa [#allocation19 + $0x1], 0  ;;  %s2743_s13 = smov 0   ;;  %s2745_s14 = smov 0  }
   0xf   :  { %s2747_s15 = smov 0   ;;  %s2749_s16 = smov 0  }
  0x10 LB: > { %s2670_s17 = smov [#allocation5]   ;;  %s2764_s19 = sadd.s32 4294967295, %s2668_s16   ;;  %s2668_s16 = sphi %s2749_s16, %s3253_s16   ;;  %s2664_s15 = sphi %s2747_s15, %s3252_s15   ;;  %s2660_s14 = sphi %s2745_s14, %s3251_s14   ;;  %s2656_s13 = sphi %s2743_s13, %s3250_s13  }
  0x11   : > { %s297_s18 = sshll.u32 %s2670_s17, 4  ;;  %p1579_p0 = scmp.ge.s32.totalorder %s2668_s16, 1  ;;  %s2769_s18 = int_to_ptr.vmem [resolvable:$true] %s297_s18 }
  0x12   : > { %p3209_p1 = scmp.eq.s32.totalorder %s2764_s19, 0  ;;  %p285_p2 = scmp.lt.s32.totalorder %s2668_s16, 3 }
  0x13   : > { %s2671_s21 = smov [#allocation8]   ;;  %s2672_s24 = smov [#allocation11]  }
  0x14   : > { %p2771_p3 = pnand %p1579_p0, %p285_p2  ;;  %s321_s22 = sshll.u32 %s2671_s21, 4  ;;  %s2784_s22 = int_to_ptr.vmem [resolvable:$true] %s321_s22 }
  0x15   : > { %s2786_s25 = sshll.u32 %s2672_s24, 4  ;;  %s3223_s1 = sld [smem:[#allocation27_spill]]  ;;  %s346_s25 = int_to_ptr.vmem [resolvable:$true] %s2786_s25 }
  0x16   : > { %s3221_s20 = scalar_select %p2771_p3, 1, 0 }
  0x17   : > { %p2199_p5 = pneg %p2771_p3 }
  0x19   : > { %p2780_p6 = pnand %p2199_p5, %p3209_p1 }
  0x1b   : > { %s2300_s28 = scalar_lea.hbm %s3223_s1, 6144  ;;  %p2796_p8 = pneg %p2780_p6 }
  0x1c   : > { %p2301_p7 = scmp.ne.s32.totalorder %s3223_s1, %s2300_s28  ;;  %p2307_p11 = scmp.lt.u32.totalorder %s2300_s28, %s3223_s1 }
  0x1e   : > { %p2303_p9 = pnand %p2796_p8, %p2301_p7 }
  0x20   : > { %p2304_p10 = pneg %p2303_p9 }
  0x22   : > { %p2309_p12 = pnand %p2307_p11, %p2304_p10 }
  0x24   : > { %2312 = shalt.err (!%p2309_p12)
}
  0x25   : > { %s2313_s21 = scalar_lea.vmem %s2769_s18, 6144  ;;  %p2321_p5 = scmp.lt.s32.totalorder %s2769_s18, %s2769_s18 }
  0x26   : > { %p2314_p13 = scmp.ne.s32.totalorder %s2769_s18, %s2313_s21  ;;  %p2322_p4 = scmp.lt.s32.totalorder %s2313_s21, %s2313_s21 }
  0x28   : > { %p2316_p0 = pnand %p2314_p13, %p2796_p8  ;;  %p2323_p7 = por %p2322_p4, %p2321_p5 }
  0x2a   : > { %p2317_p2 = pneg %p2316_p0 }
  0x2c   : > { %p2324_p9 = pnand %p2323_p7, %p2317_p2 }
  0x2e   : > { %2327 = shalt.err (!%p2324_p9)
}
  0x2f   : > { %s3208_s24 = smov 384   ;;  %s2674_s26 = smov 24  }
  0x30   : > { %2202 = dma.hbm_to_vmem [thread:$0]  (!%p2780_p6), %s3223_s1, 6144, %s2769_s18, [#allocation6], %s3208_s24, %s3208_s24, %s2674_s26  }
  0x31   : > { %s2328_s12 = scalar_lea.hbm %s3198_s3, 6144 }
  0x32   : > { %p2329_p4 = scmp.ne.s32.totalorder %s3198_s3, %s2328_s12  ;;  %p2335_p12 = scmp.lt.u32.totalorder %s2328_s12, %s3198_s3 }
  0x34   : > { %p2331_p10 = pnand %p2329_p4, %p2796_p8 }
  0x36   : > { %p2332_p11 = pneg %p2331_p10 }
  0x38   : > { %p2337_p13 = pnand %p2335_p12, %p2332_p11 }
  0x3a   : > { %2340 = shalt.err (!%p2337_p13)
}
  0x3b   : > { %s2341_s18 = scalar_lea.vmem %s2784_s22, 6144  ;;  %p2349_p7 = scmp.lt.s32.totalorder %s2784_s22, %s2784_s22 }
  0x3c   : > { %p2342_p0 = scmp.ne.s32.totalorder %s2784_s22, %s2341_s18  ;;  %p2350_p9 = scmp.lt.s32.totalorder %s2341_s18, %s2341_s18 }
  0x3e   : > { %p2344_p2 = pnand %p2342_p0, %p2796_p8  ;;  %p2351_p4 = por %p2350_p9, %p2349_p7 }
  0x40   : > { %p2345_p5 = pneg %p2344_p2 }
  0x42   : > { %p2352_p10 = pnand %p2351_p4, %p2345_p5 }
  0x44   : > { %2355 = shalt.err (!%p2352_p10)
}
  0x45   : > { %s3211_s27 = smov 128   ;;  %s3213_s9 = smov 8  }
  0x46   : > { %2208 = dma.hbm_to_vmem [thread:$0]  (!%p2780_p6), %s3198_s3, 6144, %s2784_s22, [#allocation9], %s3211_s27, %s3211_s27, %s3213_s9  }
  0x47   : > { %s2356_s12 = scalar_lea.hbm %s3200_s5, 6144 }
  0x48   : > { %p2357_p11 = scmp.ne.s32.totalorder %s3200_s5, %s2356_s12  ;;  %p2363_p0 = scmp.lt.u32.totalorder %s2356_s12, %s3200_s5 }
  0x4a   : > { %p2359_p12 = pnand %p2357_p11, %p2796_p8 }
  0x4c   : > { %p2360_p13 = pneg %p2359_p12 }
  0x4e   : > { %p2365_p2 = pnand %p2363_p0, %p2360_p13 }
  0x50   : > { %2368 = shalt.err (!%p2365_p2)
}
  0x51   : > { %s2369_s10 = scalar_lea.vmem %s346_s25, 6144  ;;  %p2377_p4 = scmp.lt.s32.totalorder %s346_s25, %s346_s25 }
  0x52   : > { %p2370_p5 = scmp.ne.s32.totalorder %s346_s25, %s2369_s10  ;;  %p2378_p10 = scmp.lt.s32.totalorder %s2369_s10, %s2369_s10 }
  0x54   : > { %p2372_p7 = pnand %p2370_p5, %p2796_p8  ;;  %p2379_p1 = por %p2378_p10, %p2377_p4 }
  0x56   : > { %p2373_p9 = pneg %p2372_p7 }
  0x58   : > { %p2380_p3 = pnand %p2379_p1, %p2373_p9 }
  0x5a   : > { %2383 = shalt.err (!%p2380_p3)
}
  0x5b   : > { %s3225_s22 = smov 384   ;;  %s2677_s29 = smov [#allocation14]  }
  0x5c   : > { %2214 = dma.hbm_to_vmem [thread:$0]  (!%p2780_p6), %s3200_s5, 6144, %s346_s25, [#allocation12], %s3225_s22, %s3225_s22, %s2674_s26  }
  0x5d   : > { %s369_s30 = sshll.u32 %s2677_s29, 4  ;;  %s2678_s12 = smov [#allocation7]   ;;  %s370_s30 = int_to_ptr.vmem [resolvable:$true] %s369_s30 }
  0x5e   : > { %s311_s17 = sshll.u32 %s2678_s12, 4  ;;  %s2384_s10 = scalar_lea.hbm %s3202_s7, 6144  ;;  %s312_s17 = int_to_ptr.vmem [resolvable:$true] %s311_s17 }
  0x5f   : > { %p2385_p1 = scmp.ne.s32.totalorder %s3202_s7, %s2384_s10  ;;  %p2391_p12 = scmp.lt.u32.totalorder %s2384_s10, %s3202_s7 }
  0x61   : > { %p2387_p3 = pnand %p2385_p1, %p2796_p8 }
  0x63   : > { %p2388_p11 = pneg %p2387_p3 }
  0x65   : > { %p2393_p13 = pnand %p2391_p12, %p2388_p11 }
  0x67   : > { %2396 = shalt.err (!%p2393_p13)
}
  0x68   : > { %s2397_s25 = scalar_lea.vmem %s370_s30, 6144  ;;  %p2405_p7 = scmp.lt.s32.totalorder %s370_s30, %s370_s30 }
  0x69   : > { %p2398_p0 = scmp.ne.s32.totalorder %s370_s30, %s2397_s25  ;;  %p2406_p9 = scmp.lt.s32.totalorder %s2397_s25, %s2397_s25 }
  0x6b   : > { %p2400_p2 = pnand %p2398_p0, %p2796_p8  ;;  %p2407_p4 = por %p2406_p9, %p2405_p7 }
  0x6d   : > { %p2401_p5 = pneg %p2400_p2 }
  0x6f   : > { %p2408_p10 = pnand %p2407_p4, %p2401_p5 }
  0x71   : > { %2411 = shalt.err (!%p2408_p10)
}
  0x72   : > { %s3226_s26 = smov 8   ;;  %s3227_s27 = smov 128  }
  0x73   : > { %2220 = dma.hbm_to_vmem [thread:$0]  (!%p2780_p6), %s3202_s7, 6144, %s370_s30, [#allocation15], %s3227_s27, %s3227_s27, %s3226_s26  }
  0x74   : > { %s3228_s2 = sld [smem:[#allocation28_spill]] }
  0x7a   : > { %s2412_s29 = scalar_lea.hbm %s3228_s2, 48 }
  0x7b   : > { %p2413_p1 = scmp.ne.s32.totalorder %s3228_s2, %s2412_s29  ;;  %p2419_p12 = scmp.lt.u32.totalorder %s2412_s29, %s3228_s2 }
  0x7d   : > { %p2415_p3 = pnand %p2413_p1, %p2796_p8 }
  0x7f   : > { %p2416_p11 = pneg %p2415_p3 }
  0x81   : > { %p2421_p13 = pnand %p2419_p12, %p2416_p11 }
  0x83   : > { %2424 = shalt.err (!%p2421_p13)
}
  0x84   : > { %s2425_s24 = scalar_lea.vmem %s312_s17, 48  ;;  %s2432_s30 = scalar_lea.vmem %s312_s17, 64 }
  0x85   : > { %p2426_p0 = scmp.ne.s32.totalorder %s312_s17, %s2425_s24  ;;  %p2433_p7 = scmp.lt.s32.totalorder %s312_s17, %s312_s17 }
  0x86   : > { %p2434_p9 = scmp.lt.s32.totalorder %s2432_s30, %s2425_s24 }
  0x87   : > { %p2428_p2 = pnand %p2426_p0, %p2796_p8 }
  0x88   : > { %p2435_p4 = por %p2434_p9, %p2433_p7 }
  0x89   : > { %p2429_p5 = pneg %p2428_p2 }
  0x8b   : > { %p2436_p10 = pnand %p2435_p4, %p2429_p5 }
  0x8d   : > { %2439 = shalt.err (!%p2436_p10)
}
  0x8e   : > { %2205 = dma.hbm_to_vmem [thread:$0]  (!%p2780_p6), %s3228_s2, 48, %s312_s17, [#allocation6]  }
  0x8f   : > { %s2679_s9 = smov [#allocation10]   ;;  %s2680_s28 = smov [#allocation13]  }
  0x90   : > { %s335_s22 = sshll.u32 %s2679_s9, 4  ;;  %s359_s29 = sshll.u32 %s2680_s28, 4  ;;  %s336_s22 = int_to_ptr.vmem [resolvable:$true] %s335_s22  ;;  %s360_s29 = int_to_ptr.vmem [resolvable:$true] %s359_s29 }
  0x91   : > { %s2440_s18 = scalar_lea.hbm %s3199_s4, 16 }
  0x92   : > { %p2441_p1 = scmp.ne.s32.totalorder %s3199_s4, %s2440_s18  ;;  %p2447_p12 = scmp.lt.u32.totalorder %s2440_s18, %s3199_s4 }
  0x94   : > { %p2443_p3 = pnand %p2441_p1, %p2796_p8 }
  0x96   : > { %p2444_p11 = pneg %p2443_p3 }
  0x98   : > { %p2449_p13 = pnand %p2447_p12, %p2444_p11 }
  0x9a   : > { %2452 = shalt.err (!%p2449_p13)
}
  0x9b   : > { %s2453_s17 = scalar_lea.vmem %s336_s22, 16  ;;  %s2460_s1 = scalar_lea.vmem %s336_s22, 32 }
  0x9c   : > { %p2454_p0 = scmp.ne.s32.totalorder %s336_s22, %s2453_s17  ;;  %p2461_p7 = scmp.lt.s32.totalorder %s336_s22, %s336_s22 }
  0x9d   : > { %p2462_p9 = scmp.lt.s32.totalorder %s2460_s1, %s2453_s17 }
  0x9e   : > { %p2456_p2 = pnand %p2454_p0, %p2796_p8 }
  0x9f   : > { %p2463_p4 = por %p2462_p9, %p2461_p7 }
  0xa0   : > { %p2457_p5 = pneg %p2456_p2 }
  0xa2   : > { %p2464_p10 = pnand %p2463_p4, %p2457_p5 }
  0xa4   : > { %2467 = shalt.err (!%p2464_p10)
}
  0xa5   : > { %2211 = dma.hbm_to_vmem [thread:$0]  (!%p2780_p6), %s3199_s4, 16, %s336_s22, [#allocation9]  }
  0xa6   : > { %s2468_s18 = scalar_lea.hbm %s3201_s6, 48 }
  0xa7   : > { %p2469_p1 = scmp.ne.s32.totalorder %s3201_s6, %s2468_s18  ;;  %p2475_p12 = scmp.lt.u32.totalorder %s2468_s18, %s3201_s6 }
  0xa9   : > { %p2471_p3 = pnand %p2469_p1, %p2796_p8 }
  0xab   : > { %p2472_p11 = pneg %p2471_p3 }
  0xad   : > { %p2477_p13 = pnand %p2475_p12, %p2472_p11 }
  0xaf   : > { %2480 = shalt.err (!%p2477_p13)
}
  0xb0   : > { %s2481_s17 = scalar_lea.vmem %s360_s29, 48  ;;  %s2488_s22 = scalar_lea.vmem %s360_s29, 64 }
  0xb1   : > { %p2482_p0 = scmp.ne.s32.totalorder %s360_s29, %s2481_s17  ;;  %p2489_p7 = scmp.lt.s32.totalorder %s360_s29, %s360_s29 }
  0xb2   : > { %p2490_p9 = scmp.lt.s32.totalorder %s2488_s22, %s2481_s17 }
  0xb3   : > { %p2484_p2 = pnand %p2482_p0, %p2796_p8 }
  0xb4   : > { %p2491_p4 = por %p2490_p9, %p2489_p7 }
  0xb5   : > { %p2485_p5 = pneg %p2484_p2 }
  0xb7   : > { %p2492_p10 = pnand %p2491_p4, %p2485_p5 }
  0xb9   : > { %2495 = shalt.err (!%p2492_p10)
}
  0xba   : > { %2217 = dma.hbm_to_vmem [thread:$0]  (!%p2780_p6), %s3201_s6, 48, %s360_s29, [#allocation12]  }
  0xbb   : > { %s2681_s28 = smov [#allocation16]   ;;  %s2496_s10 = scalar_lea.hbm %s3203_s8, 16 }
  0xbc   : > { %s383_s12 = sshll.u32 %s2681_s28, 4  ;;  %p2497_p1 = scmp.ne.s32.totalorder %s3203_s8, %s2496_s10  ;;  %s384_s12 = int_to_ptr.vmem [resolvable:$true] %s383_s12 }
  0xbd   : > { %p2503_p12 = scmp.lt.u32.totalorder %s2496_s10, %s3203_s8 }
  0xbe   : > { %p2499_p3 = pnand %p2497_p1, %p2796_p8 }
  0xc0   : > { %p2500_p11 = pneg %p2499_p3 }
  0xc2   : > { %p2505_p13 = pnand %p2503_p12, %p2500_p11 }
  0xc4   : > { %2508 = shalt.err (!%p2505_p13)
}
  0xc5   : > { %s2509_s29 = scalar_lea.vmem %s384_s12, 16  ;;  %s2516_s22 = scalar_lea.vmem %s384_s12, 32 }
  0xc6   : > { %p2510_p0 = scmp.ne.s32.totalorder %s384_s12, %s2509_s29  ;;  %p2517_p7 = scmp.lt.s32.totalorder %s384_s12, %s384_s12 }
  0xc7   : > { %p2518_p9 = scmp.lt.s32.totalorder %s2516_s22, %s2509_s29 }
  0xc8   : > { %p2512_p2 = pnand %p2510_p0, %p2796_p8 }
  0xc9   : > { %p2519_p4 = por %p2518_p9, %p2517_p7 }
  0xca   : > { %p2513_p5 = pneg %p2512_p2 }
  0xcc   : > { %p2520_p10 = pnand %p2519_p4, %p2513_p5 }
  0xce   : > { %2523 = shalt.err (!%p2520_p10)
}
  0xcf   : > { %2223 = dma.hbm_to_vmem [thread:$0]  (!%p2780_p6), %s3203_s8, 16, %s384_s12, [#allocation15]  }
  0xd0   : > { %s1578_s11 = sadd.s32 4294967294, %s2668_s16   ;;  %s2963_s23 = sadd.s32 1, %s2668_s16  }
  0xd1   : > { %s38_s28 = ssub.s32 %s2668_s16, %s2963_s23  ;;  %s41_s21 = sadd.s32 1, %s2664_s15 }
  0xd2   : > { %p39_p8 = scmp.eq.s32.totalorder %s38_s28, 0  ;;  %p48_p1 = scmp.ne.s32.totalorder %s2664_s15, %s2660_s14 }
  0xd3   : > { %p49_p3 = scmp.eq.s32.totalorder %s2668_s16, 0  ;;  %p54_p11 = scmp.ne.s32.totalorder %s2660_s14, %s2656_s13 }
  0xd4   : > { %s2974_s18 = scalar_select %p39_p8, %s2664_s15, %s41_s21  }
  0xd5   : > { %p2976_p12 = por %p49_p3, %p48_p1  ;;  %p3230_p13 = scmp.eq.s32.totalorder %s2764_s19, 0 }
  0xd6   : > { %p246_p0 = scmp.eq.s32.totalorder %s2764_s19, 1  ;;  %p252_p2 = scmp.eq.s32.totalorder %s1578_s11, 1 }
  0xd7   : > { %p2982_p6 = por %p3230_p13, %p54_p11  ;;  %p2243_p5 = scmp.lt.s32.totalorder %s2668_s16, 2 }
  0xd8   : > { %s394_s24 = sand.u32 1, %s2664_s15   ;;  %p2989_p7 = por %p246_p0, %p48_p1 }
  0xd9   : > { %p2993_p9 = por %p252_p2, %p54_p11  ;;  %s1589_s17 = sshll.u32 %s394_s24, 4 }
  0xda   : > { %s3232_s30 = scalar_select %p2989_p7, 1, 0 }
  0xdb   : > { %s3233_s25 = scalar_select %p2993_p9, 1, 0 }
  0xdc   : > { %s1614_s29 = sshll.u32 %s2668_s16, 8  ;;  %s398_s11 = scalar_lea.vmem [#allocation2], %s1589_s17 }
  0xdd   : > { %s3001_s9 = scalar_lea.hbm %s3195_s0, %s1614_s29  ;;  %s405_s28 = sshll.u32 %s398_s11, 4  ;;  %s3003_s28 = int_to_ptr.vmem [resolvable:$true] %s405_s28 }
  0xde   : > { %p3007_p4 = pnand %p2243_p5, %p2976_p12  ;;  %s3011_s2 = scalar_lea.sflag [#allocation3], %s394_s24 }
  0xdf   : > { %s2524_s22 = scalar_lea.hbm %s3001_s9, 256  ;;  %s2529_s10 = scalar_lea.hbm %s3195_s0, 512 }
  0xe0   : > { %p2525_p10 = scmp.ne.s32.totalorder %s3001_s9, %s2524_s22  ;;  %p2526_p8 = pneg %p3007_p4 }
  0xe1   : > { %p2530_p11 = scmp.lt.u32.totalorder %s3001_s9, %s3195_s0  ;;  %p2531_p12 = scmp.lt.u32.totalorder %s2529_s10, %s2524_s22 }
  0xe2   : > { %p2527_p1 = pnand %p2526_p8, %p2525_p10  ;;  %p2533_p0 = scmp.lt.u32.totalorder %s2524_s22, %s3001_s9 }
  0xe3   : > { %p2532_p13 = por %p2531_p12, %p2530_p11 }
  0xe4   : > { %p2528_p3 = pneg %p2527_p1 }
  0xe5   : > { %p2534_p2 = por %p2533_p0, %p2532_p13 }
  0xe7   : > { %p2535_p5 = pnand %p2534_p2, %p2528_p3 }
  0xe9   : > { %2538 = shalt.err (!%p2535_p5)
}
  0xea   : > { %s2539_s24 = scalar_lea.vmem %s3003_s28, 256  ;;  %s2682_s17 = smov [#allocation2]  }
  0xeb   : > { %p2540_p10 = scmp.ne.s32.totalorder %s3003_s28, %s2539_s24  ;;  %s2544_s29 = sshll.u32 %s2682_s17, 4  ;;  %s2545_s29 = int_to_ptr.vmem [resolvable:$false] %s2544_s29 }
  0xec   : > { %s2546_s1 = scalar_lea.vmem %s2545_s29, 512  ;;  %p2547_p7 = scmp.lt.s32.totalorder %s3003_s28, %s2545_s29 }
  0xed   : > { %p2542_p1 = pnand %p2540_p10, %p2526_p8  ;;  %p2548_p11 = scmp.lt.s32.totalorder %s2546_s1, %s2539_s24 }
  0xef   : > { %p2543_p9 = pneg %p2542_p1  ;;  %p2549_p12 = por %p2548_p11, %p2547_p7 }
  0xf1   : > { %p2550_p13 = pnand %p2549_p12, %p2543_p9 }
  0xf3   : > { %2553 = shalt.err (!%p2550_p13)
}
  0xf4   : > { %2227 = dma.hbm_to_vmem [thread:$0]  (!%p3007_p4), %s3001_s9, 256, %s3003_s28, %s3011_s2, %s3227_s27, %s3227_s27, %s3226_s26  }
  0xf5   : > { %p3235_p8 = scmp.ne.s32.totalorder %s3221_s20, 0 }
  0xf6   : > { %s3045_s22 = sand.u32 (!%p3235_p8), 1, %s2660_s14  }
  0xf7   : > { %417 = sbr.rel (%p3235_p8) target bundleno = 1196 (0x4ac), region = 56  ;;  %s3048_s10 = sshll.u32 (!%p3235_p8), %s3045_s22, 4 }
  0xf8   : > { %s420_s21 = scalar_lea.sflag (!%p3235_p8), [#allocation3], %s3045_s22  ;;  %s423_s11 = scalar_lea.vmem (!%p3235_p8), [#allocation2], %s3048_s10 }
  0xfe   : > { %2627 = dma.done.wait (%p2982_p6), %s420_s21, 256  }
  0xff   : > { %2629 = vsyncadd (%p2982_p6), %s420_s21, 4294967040  ;;  %p3236_p7 = scmp.eq.s32.totalorder %s2764_s19, 0 }
 0x101   : > { %2631 = dma.done.wait (%p3236_p7), [#allocation6], 6192   ;;  %p3237_p9 = pmov %p3236_p7 }
 0x102   : > { %p3238_p4 = pmov %p3236_p7 }
 0x103   : > { %2633 = vsyncadd (%p3237_p9), [#allocation6], 4294961104 }
 0x104   : > { %2635 = dma.done.wait (%p3238_p4), [#allocation9], 6160   ;;  %p3239_p3 = pmov %p3238_p4 }
 0x106   : > { %2637 = vsyncadd (%p3239_p3), [#allocation9], 4294961136  ;;  %p3240_p0 = pmov %p3239_p3 }
 0x108   : > { %2639 = dma.done.wait (%p3240_p0), [#allocation12], 6192   ;;  %p3241_p2 = pmov %p3240_p0 }
 0x109   : > { %p3242_p6 = pmov %p3240_p0 }
 0x10a   : > { %2641 = vsyncadd (%p3241_p2), [#allocation12], 4294961104 }
 0x10b   : > { %2643 = dma.done.wait (%p3242_p6), [#allocation15], 6160   ;;  %p3243_p5 = pmov %p3240_p0 }
 0x10c   : > { %v2683_v0 = vmov 0.0   ;;  %v503_v1 = vld [vmem:[#allocation5 + $0x8] sm:$0xff]  ;;  %v506_v2 = vld [vmem:[#allocation5 + $0x20] sm:$0xff]  ;;  %v505_v5 = vld [vmem:[#allocation5 + $0x18] sm:$0xff]  ;;  %s3091_s2 = scalar_lea.vmem [#allocation18], %s3048_s10  ;;  %s1615_s26 = sshll.u32 %s2764_s19, 8 }
 0x10d   : > { %2645 = vsyncadd (%p3243_p5), [#allocation15], 4294961136  ;;  %631 = vmatprep.mubr.f32.mxu0 %v2683_v0  ;;  %v502_v3 = vld [vmem:[#allocation5] sm:$0xff]  ;;  %v1905_v4 = vpack.c.bf16 %v506_v2, %v503_v1  ;;  %v504_v6 = vld [vmem:[#allocation5 + $0x10] sm:$0xff]  ;;  %s1397_s20 = sshll.u32 %s3091_s2, 4  ;;  %s3244_s9 = sld [smem:[#allocation30_spill]]  ;;  %s3104_s20 = int_to_ptr.vmem [resolvable:$true] %s1397_s20 }
 0x10e   : > { %v507_v7 = vld [vmem:[#allocation5 + $0x28] sm:$0xff]  ;;  %v1907_v8 = vpack.c.bf16 %v505_v5, %v502_v3  ;;  %v509_v10 = vld [vmem:[#allocation5 + $0x38] sm:$0xff]  ;;  %v512_v11 = vld [vmem:[#allocation5 + $0x50] sm:$0xff]  ;;  %s1368_s24 = scalar_lea.sflag [#allocation19], %s3045_s22  ;;  %s2554_s17 = scalar_lea.vmem %s3104_s20, 256 }
 0x10f   : > { %v1937_v9 = vpack.c.bf16 %v507_v7, %v504_v6  ;;  %v508_v12 = vld [vmem:[#allocation5 + $0x30] sm:$0xff]  ;;  %1906 = vmatprep.subr.bf16.mxu0 %v1905_v4  ;;  %v1909_v13 = vpack.c.bf16 %v512_v11, %v509_v10  ;;  %v511_v14 = vld [vmem:[#allocation5 + $0x48] sm:$0xff]  ;;  %v510_v15 = vld [vmem:[#allocation5 + $0x40] sm:$0xff]  ;;  %p2555_p10 = scmp.ne.s32.totalorder %s3104_s20, %s2554_s17  ;;  %p3245_p1 = scmp.ne.s32.totalorder %s3232_s30, 0 }
 0x110   : > { %v513_v16 = vld [vmem:[#allocation5 + $0x58] sm:$0xff]  ;;  %1908 = vmatpush1.bf16.msra.mxu0 %v1907_v8  ;;  %v1911_v17 = vpack.c.bf16 %v511_v14, %v508_v12  ;;  %v515_v19 = vld [vmem:[#allocation5 + $0x68] sm:$0xff]  ;;  %v518_v20 = vld [vmem:[#allocation5 + $0x80] sm:$0xff]  ;;  %s2684_s29 = smov [#allocation18]  }
 0x111   : > { %1938 = vmatprep.subr.bf16.mxu1 %v1937_v9  ;;  %v1941_v18 = vpack.c.bf16 %v513_v16, %v510_v15  ;;  %v514_v21 = vld [vmem:[#allocation5 + $0x60] sm:$0xff]  ;;  %1910 = vmatprep.subr.bf16.mxu0 %v1909_v13  ;;  %v1913_v22 = vpack.c.bf16 %v518_v20, %v515_v19  ;;  %v517_v23 = vld [vmem:[#allocation5 + $0x78] sm:$0xff]  ;;  %v516_v24 = vld [vmem:[#allocation5 + $0x70] sm:$0xff]  ;;  %p2556_p11 = pnand %p2555_p10, %p3245_p1  ;;  %s2558_s1 = sshll.u32 %s2684_s29, 4  ;;  %s2559_s1 = int_to_ptr.vmem [resolvable:$false] %s2558_s1 }
 0x112   : > { %1940 = vmatpush3.bf16.msra.mxu1 %v1937_v9  ;;  %v519_v25 = vld [vmem:[#allocation5 + $0x88] sm:$0xff]  ;;  %v521_v27 = vld [vmem:[#allocation5 + $0x98] sm:$0xff]  ;;  %v524_v28 = vld [vmem:[#allocation5 + $0xb0] sm:$0xff]  ;;  %v1915_v31 = vpack.c.bf16 %v517_v23, %v514_v21  ;;  %s2560_s21 = scalar_lea.vmem %s2559_s1, 512  ;;  %p2561_p13 = scmp.lt.s32.totalorder %s3104_s20, %s2559_s1 }
 0x113   : > { %1942 = vmatprep.subr.bf16.mxu1 %v1941_v18  ;;  %v1945_v26 = vpack.c.bf16 %v519_v25, %v516_v24  ;;  %v522_v29 = vld [vmem:[#allocation5 + $0xa0] sm:$0xff]  ;;  %v525_v30 = vld [vmem:[#allocation5 + $0xb8] sm:$0xff]  ;;  %v1917_v32 = vpack.c.bf16 %v524_v28, %v521_v27  ;;  %v520_v33 = vld [vmem:[#allocation5 + $0x90] sm:$0xff]  ;;  %s3111_s28 = scalar_lea.hbm %s3244_s9, %s1615_s26  ;;  %p2557_p12 = pneg %p2556_p11 }
 0x114   : > { %1912 = vmatpush1.bf16.msra.mxu0 %v1911_v17  ;;  %v523_v34 = vld [vmem:[#allocation5 + $0xa8] sm:$0xff]  ;;  %v1949_v35 = vpack.c.bf16 %v525_v30, %v522_v29  ;;  %v530_v37 = vld [vmem:[#allocation5 + $0xe0] sm:$0xff]  ;;  %v528_v38 = vld [vmem:[#allocation5 + $0xd0] sm:$0xff]  ;;  %p2562_p8 = scmp.lt.s32.totalorder %s2560_s21, %s2554_s17 }
 0x115   : > { %1914 = vmatprep.subr.bf16.mxu0 %v1913_v22  ;;  %v527_v36 = vld [vmem:[#allocation5 + $0xc8] sm:$0xff]  ;;  %v1919_v40 = vpack.c.bf16 %v523_v34, %v520_v33  ;;  %v526_v42 = vld [vmem:[#allocation5 + $0xc0] sm:$0xff]  ;;  %v529_v43 = vld [vmem:[#allocation5 + $0xd8] sm:$0xff] }
 0x116   : > { %1944 = vmatpush3.bf16.msra.mxu1 %v1941_v18  ;;  %v531_v39 = vld [vmem:[#allocation5 + $0xe8] sm:$0xff]  ;;  %v1921_v41 = vpack.c.bf16 %v530_v37, %v527_v36  ;;  %v533_v45 = vld [vmem:[#allocation5 + $0xf8] sm:$0xff]  ;;  %v536_v46 = vld [vmem:[#allocation5 + $0x110] sm:$0xff]  ;;  %v1923_v49 = vpack.c.bf16 %v529_v43, %v526_v42  ;;  %p2563_p7 = por %p2562_p8, %p2561_p13 }
 0x117   : > { %1946 = vmatprep.subr.bf16.mxu1 %v1945_v26  ;;  %v1953_v44 = vpack.c.bf16 %v531_v39, %v528_v38  ;;  %v534_v47 = vld [vmem:[#allocation5 + $0x100] sm:$0xff]  ;;  %v537_v48 = vld [vmem:[#allocation5 + $0x118] sm:$0xff]  ;;  %v1925_v51 = vpack.c.bf16 %v536_v46, %v533_v45  ;;  %v532_v52 = vld [vmem:[#allocation5 + $0xf0] sm:$0xff] }
 0x118   : > { %1916 = vmatpush1.bf16.msra.mxu0 %v1915_v31  ;;  %v500_v50 = vld [vmem:[%s423_s11] sm:$0xff]  ;;  %v535_v53 = vld [vmem:[#allocation5 + $0x108] sm:$0xff]  ;;  %v1957_v54 = vpack.c.bf16 %v537_v48, %v534_v47  ;;  %v541_v62 = vld [vmem:[#allocation5 + $0x138] sm:$0xff]  ;;  %p2564_p9 = pnand %p2563_p7, %p2557_p12 }
 0x119   : > { %1918 = vmatprep.subr.bf16.mxu0 %v1917_v32  ;;  %v539_v55 = vld [vmem:[#allocation5 + $0x128] sm:$0xff]  ;;  %v542_v56 = vld [vmem:[#allocation5 + $0x140] sm:$0xff]  ;;  %1797 = vmatprep.mubr.f32.mxu1 %v500_v50  ;;  %v540_v57 = vld [vmem:[#allocation5 + $0x130] sm:$0xff]  ;;  %v1927_v59 = vpack.c.bf16 %v535_v53, %v532_v52 }
 0x11a   : > { %1948 = vmatpush3.bf16.msra.mxu1 %v1945_v26  ;;  %v543_v58 = vld [vmem:[#allocation5 + $0x148] sm:$0xff]  ;;  %v1929_v60 = vpack.c.bf16 %v542_v56, %v539_v55  ;;  %v538_v61 = vld [vmem:[#allocation5 + $0x120] sm:$0xff]  ;;  %v545_v1 = vld [vmem:[#allocation5 + $0x158] sm:$0xff] }
 0x11b   : > { %1950 = vmatprep.subr.bf16.mxu1 %v1949_v35  ;;  %v1961_v63 = vpack.c.bf16 %v543_v58, %v540_v57  ;;  %v548_v2 = vld [vmem:[#allocation5 + $0x170] sm:$0xff]  ;;  %v546_v3 = vld [vmem:[#allocation5 + $0x160] sm:$0xff]  ;;  %v549_v4 = vld [vmem:[#allocation5 + $0x178] sm:$0xff]  ;;  %v1931_v5 = vpack.c.bf16 %v541_v62, %v538_v61 }
 0x11c   : > { %1920 = vmatpush1.bf16.msra.mxu0 %v1919_v40  ;;  %v1933_v6 = vpack.c.bf16 %v548_v2, %v545_v1  ;;  %v544_v7 = vld [vmem:[#allocation5 + $0x150] sm:$0xff]  ;;  %v547_v8 = vld [vmem:[#allocation5 + $0x168] sm:$0xff]  ;;  %v1965_v9 = vpack.c.bf16 %v549_v4, %v546_v3  ;;  %v744_v20 = vld [vmem:[#allocation8 + $0x98] sm:$0xff] }
 0x11d   : > { %1922 = vmatprep.subr.bf16.mxu0 %v1921_v41  ;;  %v741_v10 = vld [vmem:[#allocation8 + $0x80] sm:$0xff]  ;;  %v742_v11 = vld [vmem:[#allocation8 + $0x88] sm:$0xff]  ;;  %v1935_v14 = vpack.c.bf16 %v547_v8, %v544_v7  ;;  %v743_v19 = vld [vmem:[#allocation8 + $0x90] sm:$0xff] }
 0x11e   : > { %1952 = vmatpush3.bf16.msra.mxu1 %v1949_v35  ;;  %v757_v12 = vld [vmem:[#allocation8 + $0x100] sm:$0xff]  ;;  %v758_v13 = vld [vmem:[#allocation8 + $0x108] sm:$0xff]  ;;  %v1969_v15 = vpack.c.bf16 %v742_v11, %v741_v10  ;;  %v759_v21 = vld [vmem:[#allocation8 + $0x110] sm:$0xff]  ;;  %v1973_v25 = vpack.c.bf16 %v744_v20, %v743_v19 }
 0x11f   : > { %1954 = vmatprep.subr.bf16.mxu1 %v1953_v44  ;;  %v725_v16 = vld [vmem:[#allocation8] sm:$0xff]  ;;  %v726_v17 = vld [vmem:[#allocation8 + $0x8] sm:$0xff]  ;;  %v2001_v18 = vpack.c.bf16 %v758_v13, %v757_v12  ;;  %v760_v22 = vld [vmem:[#allocation8 + $0x118] sm:$0xff] }
 0x120   : > { %1924 = vmatpush1.bf16.msra.mxu0 %v1923_v49  ;;  %v501_v23 = vld [vmem:[%s423_s11 + $0x8] sm:$0xff]  ;;  %v1971_v24 = vpack.c.bf16 %v726_v17, %v725_v16  ;;  %v2005_v28 = vpack.c.bf16 %v760_v22, %v759_v21 }
 0x121   : > { %1926 = vmatprep.subr.bf16.mxu0 %v1925_v51  ;;  %v727_v26 = vld [vmem:[#allocation8 + $0x10] sm:$0xff]  ;;  %v728_v27 = vld [vmem:[#allocation8 + $0x18] sm:$0xff]  ;;  %v745_v29 = vld [vmem:[#allocation8 + $0xa0] sm:$0xff] }
 0x122   : > { %1956 = vmatpush3.bf16.msra.mxu1 %v1953_v44  ;;  %v746_v30 = vld [vmem:[#allocation8 + $0xa8] sm:$0xff]  ;;  %v761_v31 = vld [vmem:[#allocation8 + $0x120] sm:$0xff]  ;;  %v1975_v33 = vpack.c.bf16 %v728_v27, %v727_v26  ;;  %v747_v38 = vld [vmem:[#allocation8 + $0xb0] sm:$0xff]  ;;  %v552_v27 = vlaneseq }
 0x123   : > { %1958 = vmatprep.subr.bf16.mxu1 %v1957_v54  ;;  %v762_v32 = vld [vmem:[#allocation8 + $0x128] sm:$0xff]  ;;  %v1977_v34 = vpack.c.bf16 %v746_v30, %v745_v29  ;;  %v729_v35 = vld [vmem:[#allocation8 + $0x20] sm:$0xff]  ;;  %v748_v39 = vld [vmem:[#allocation8 + $0xb8] sm:$0xff] }
 0x124   : > { %1928 = vmatpush1.bf16.msra.mxu0 %v1927_v59  ;;  %v730_v36 = vld [vmem:[#allocation8 + $0x28] sm:$0xff]  ;;  %v2009_v37 = vpack.c.bf16 %v762_v32, %v761_v31  ;;  %v763_v40 = vld [vmem:[#allocation8 + $0x130] sm:$0xff]  ;;  %v764_v41 = vld [vmem:[#allocation8 + $0x138] sm:$0xff]  ;;  %v1981_v43 = vpack.c.bf16 %v748_v39, %v747_v38 }
 0x125   : > { %1930 = vmatprep.subr.bf16.mxu0 %v1929_v60  ;;  %v1979_v42 = vpack.c.bf16 %v730_v36, %v729_v35  ;;  %v731_v44 = vld [vmem:[#allocation8 + $0x30] sm:$0xff]  ;;  %v732_v45 = vld [vmem:[#allocation8 + $0x38] sm:$0xff]  ;;  %v2013_v46 = vpack.c.bf16 %v764_v41, %v763_v40  ;;  %v749_v47 = vld [vmem:[#allocation8 + $0xc0] sm:$0xff] }
 0x126   : > { %1960 = vmatpush3.bf16.msra.mxu1 %v1957_v54  ;;  %v750_v48 = vld [vmem:[#allocation8 + $0xc8] sm:$0xff]  ;;  %v765_v49 = vld [vmem:[#allocation8 + $0x140] sm:$0xff]  ;;  %v1983_v51 = vpack.c.bf16 %v732_v45, %v731_v44  ;;  %v751_v56 = vld [vmem:[#allocation8 + $0xd0] sm:$0xff] }
 0x127   : > { %1962 = vmatprep.subr.bf16.mxu1 %v1961_v63  ;;  %v1985_v52 = vpack.c.bf16 %v750_v48, %v749_v47  ;;  %v733_v53 = vld [vmem:[#allocation8 + $0x40] sm:$0xff]  ;;  %v734_v54 = vld [vmem:[#allocation8 + $0x48] sm:$0xff]  ;;  %v752_v57 = vld [vmem:[#allocation8 + $0xd8] sm:$0xff] }
 0x128   : > { %1932 = vmatpush1.bf16.msra.mxu0 %v1931_v5  ;;  %v767_v58 = vld [vmem:[#allocation8 + $0x150] sm:$0xff]  ;;  %v768_v59 = vld [vmem:[#allocation8 + $0x158] sm:$0xff]  ;;  %v1987_v60 = vpack.c.bf16 %v734_v54, %v733_v53  ;;  %v1989_v61 = vpack.c.bf16 %v752_v57, %v751_v56  ;;  %v753_v2 = vld [vmem:[#allocation8 + $0xe0] sm:$0xff] }
 0x129   : > { %1934 = vmatprep.subr.bf16.mxu0 %v1933_v6  ;;  %v735_v62 = vld [vmem:[#allocation8 + $0x50] sm:$0xff]  ;;  %v2021_v1 = vpack.c.bf16 %v768_v59, %v767_v58  ;;  %v754_v3 = vld [vmem:[#allocation8 + $0xe8] sm:$0xff]  ;;  %v737_v6 = vld [vmem:[#allocation8 + $0x60] sm:$0xff] }
 0x12a   : > { %1964 = vmatpush3.bf16.msra.mxu1 %v1961_v63  ;;  %v736_v63 = vld [vmem:[#allocation8 + $0x58] sm:$0xff]  ;;  %v1993_v5 = vpack.c.bf16 %v754_v3, %v753_v2  ;;  %v738_v7 = vld [vmem:[#allocation8 + $0x68] sm:$0xff]  ;;  %v769_v8 = vld [vmem:[#allocation8 + $0x160] sm:$0xff] }
 0x12b   : > { %1966 = vmatprep.subr.bf16.mxu1 %v1965_v9  ;;  %v1991_v4 = vpack.c.bf16 %v736_v63, %v735_v62  ;;  %v770_v10 = vld [vmem:[#allocation8 + $0x168] sm:$0xff]  ;;  %v755_v12 = vld [vmem:[#allocation8 + $0xf0] sm:$0xff]  ;;  %v756_v13 = vld [vmem:[#allocation8 + $0xf8] sm:$0xff] }
 0x12c   : > { %1936 = vmatpush1.bf16.msra.mxu0 %v1935_v14  ;;  %v2025_v11 = vpack.c.bf16 %v770_v10, %v769_v8  ;;  %v1997_v14 = vpack.c.bf16 %v756_v13, %v755_v12  ;;  %v740_v16 = vld [vmem:[#allocation8 + $0x78] sm:$0xff]  ;;  %v771_v17 = vld [vmem:[#allocation8 + $0x170] sm:$0xff]  ;;  %v934_v22 = vld [vmem:[#allocation11 + $0x20] sm:$0xff] }
 0x12d   : > { %1970 = vmatprep.subr.bf16.mxu0 %v1969_v15  ;;  %v739_v15 = vld [vmem:[#allocation8 + $0x70] sm:$0xff]  ;;  %v772_v19 = vld [vmem:[#allocation8 + $0x178] sm:$0xff]  ;;  %v930_v40 = vld [vmem:[#allocation11] sm:$0xff] }
 0x12e   : > { %1968 = vmatpush3.bf16.msra.mxu1 %v1965_v9  ;;  %v1995_v9 = vpack.c.bf16 %v738_v7, %v737_v6  ;;  %v2029_v20 = vpack.c.bf16 %v772_v19, %v771_v17  ;;  %v931_v21 = vld [vmem:[#allocation11 + $0x8] sm:$0xff]  ;;  %v550_v30 = vld [vmem:[#allocation7] sm:$0x7]  ;;  %v938_v48 = vld [vmem:[#allocation11 + $0x40] sm:$0xff] }
 0x12f   : > { %2002 = vmatprep.subr.bf16.mxu1 %v2001_v18  ;;  %632 = vmatmul.mubr.f32.vlgmr.msra.gmra.mrb[0].mxu0 %v500_v50  ;;  %v766_v50 = vld [vmem:[#allocation8 + $0x148] sm:$0xff]  ;;  %v933_v41 = vld [vmem:[#allocation11 + $0x18] sm:$0xff]  ;;  %v936_v59 = vld [vmem:[#allocation11 + $0x30] sm:$0xff] }
 0x130   : > { %637 = vmatprep.mubr.f32.mxu0 %v2683_v0  ;;  %1972 = vmatpush3.bf16.msra.mxu0 %v1971_v24  ;;  %v2017_v55 = vpack.c.bf16 %v766_v50, %v765_v49  ;;  %v932_v24 = vld [vmem:[#allocation11 + $0x10] sm:$0xff]  ;;  %v937_v45 = vld [vmem:[#allocation11 + $0x38] sm:$0xff]  ;;  %v2035_v53 = vpack.c.bf16 %v933_v41, %v930_v40  ;;  %v943_v62 = vld [vmem:[#allocation11 + $0x68] sm:$0xff] }
 0x131   : > { %1798 = vmatmul.mubr.f32.vlgmr.msra.gmra.mrb[0].mxu1 %v501_v23  ;;  %1974 = vmatprep.subr.bf16.mxu0 %v1973_v25  ;;  %v935_v25 = vld [vmem:[#allocation11 + $0x28] sm:$0xff]  ;;  %v941_v49 = vld [vmem:[#allocation11 + $0x58] sm:$0xff]  ;;  %v946_v63 = vld [vmem:[#allocation11 + $0x80] sm:$0xff] }
 0x132   : > { %2004 = vmatpush3.bf16.msra.mxu1 %v2001_v18  ;;  %v1999_v18 = vpack.c.bf16 %v740_v16, %v739_v15  ;;  %v2065_v26 = vpack.c.bf16 %v935_v25, %v932_v24  ;;  %v944_v2 = vld [vmem:[#allocation11 + $0x70] sm:$0xff]  ;;  %v947_v3 = vld [vmem:[#allocation11 + $0x88] sm:$0xff]  ;;  %v2041_v7 = vpack.c.bf16 %v946_v63, %v943_v62  ;;  %v942_v8 = vld [vmem:[#allocation11 + $0x60] sm:$0xff] }
 0x133   : > { %2006 = vmatprep.subr.bf16.mxu1 %v2005_v28  ;;  %638 = vmatmul.mubr.f32.gmra.mrb[2].mxu0 %v501_v23  ;;  %v2033_v23 = vpack.c.bf16 %v934_v22, %v931_v21  ;;  %v949_v10 = vld [vmem:[#allocation11 + $0x98] sm:$0xff]  ;;  %v2073_v12 = vpack.c.bf16 %v947_v3, %v944_v2  ;;  %v950_v13 = vld [vmem:[#allocation11 + $0xa0] sm:$0xff]  ;;  %v948_v17 = vld [vmem:[#allocation11 + $0x90] sm:$0xff] }
 0x134   : > { %1976 = vmatpush3.bf16.msra.mxu0 %v1975_v33  ;;  %v955_v19 = vld [vmem:[#allocation11 + $0xc8] sm:$0xff]  ;;  %v956_v22 = vld [vmem:[#allocation11 + $0xd0] sm:$0xff]  ;;  %v970_v41 = vld [vmem:[#allocation11 + $0x140] sm:$0xff] }
 0x135   : > { %1978 = vmatprep.subr.bf16.mxu0 %v1977_v34  ;;  %v967_v40 = vld [vmem:[#allocation11 + $0x128] sm:$0xff] }
 0x136   : > { %2008 = vmatpush3.bf16.msra.mxu1 %v2005_v28  ;;  %v3078_v28 = vshrl.u32 %v552_v27, 7  ;;  %v957_v27 = vld [vmem:[#allocation11 + $0xd8] sm:$0xff]  ;;  %v1170_v62 = vld [vmem:[#allocation14 + $0x88] sm:$0xff] }
 0x137   : > { %2010 = vmatprep.subr.bf16.mxu1 %v2009_v37  ;;  %v1186_v2 = vld [vmem:[#allocation14 + $0x108] sm:$0xff] }
 0x138   : > { %1980 = vmatpush3.bf16.msra.mxu0 %v1979_v42  ;;  %v554_v29 = vsub.s32 0, %v3078_v28  ;;  %v558_v31 = vsub.s32 1, %v3078_v28  ;;  %v562_v32 = vsub.s32 2, %v3078_v28 }
 0x139   : > { %1982 = vmatprep.subr.bf16.mxu0 %v1981_v43 }
 0x13a   : > { %2012 = vmatpush3.bf16.msra.mxu1 %v2009_v37  ;;  %v555_v33 = vrot.slane %v550_v30, %v554_v29  ;;  %v559_v34 = vrot.slane %v550_v30, %v558_v31  ;;  %v563_v35 = vrot.slane %v550_v30, %v562_v32  ;;  %v961_v30 = vld [vmem:[#allocation11 + $0xf8] sm:$0xff] }
 0x13b   : > { %2014 = vmatprep.subr.bf16.mxu1 %v2013_v46 }
 0x13c   : > { %1984 = vmatpush3.bf16.msra.mxu0 %v1983_v51 }
 0x13d   : > { %1986 = vmatprep.subr.bf16.mxu0 %v1985_v52 }
 0x13e   : > { %2016 = vmatpush3.bf16.msra.mxu1 %v2013_v46  ;;  %v940_v46 = vld [vmem:[#allocation11 + $0x50] sm:$0xff] }
 0x13f   : > { %2018 = vmatprep.subr.bf16.mxu1 %v2017_v55  ;;  %v2037_v58 = vpack.c.bf16 %v940_v46, %v937_v45  ;;  %v966_v45 = vld [vmem:[#allocation11 + $0x120] sm:$0xff]  ;;  %v969_v46 = vld [vmem:[#allocation11 + $0x138] sm:$0xff] }
 0x140   : > { %1988 = vmatpush3.bf16.msra.mxu0 %v1987_v60  ;;  %v939_v60 = vld [vmem:[#allocation11 + $0x48] sm:$0xff] }
 0x141   : > { %1990 = vmatprep.subr.bf16.mxu0 %v1989_v61 }
 0x142   : > { %2020 = vmatpush3.bf16.msra.mxu1 %v2017_v55 }
 0x143   : > { %2022 = vmatprep.subr.bf16.mxu1 %v2021_v1 }
 0x144   : > { %1992 = vmatpush3.bf16.msra.mxu0 %v1991_v4 }
 0x145   : > { %1994 = vmatprep.subr.bf16.mxu0 %v1993_v5  ;;  %v2039_v5 = vpack.c.bf16 %v939_v60, %v936_v59  ;;  %v977_v59 = vld [vmem:[#allocation11 + $0x178] sm:$0xff] }
 0x146   : > { %2024 = vmatpush3.bf16.msra.mxu1 %v2021_v1  ;;  %v2069_v1 = vpack.c.bf16 %v941_v49, %v938_v48  ;;  %v2059_v48 = vpack.c.bf16 %v969_v46, %v966_v45  ;;  %v973_v49 = vld [vmem:[#allocation11 + $0x158] sm:$0xff]  ;;  %v1177_v46 = vld [vmem:[#allocation14 + $0xc0] sm:$0xff] }
 0x147   : > { %2026 = vmatprep.subr.bf16.mxu1 %v2025_v11  ;;  %v1160_v45 = vld [vmem:[#allocation14 + $0x38] sm:$0xff] }
 0x148   : > { %1996 = vmatpush3.bf16.msra.mxu0 %v1995_v9  ;;  %v945_v9 = vld [vmem:[#allocation11 + $0x78] sm:$0xff] }
 0x149   : > { %1998 = vmatprep.subr.bf16.mxu0 %v1997_v14  ;;  %v953_v14 = vld [vmem:[#allocation11 + $0xb8] sm:$0xff]  ;;  %v2043_v15 = vpack.c.bf16 %v945_v9, %v942_v8 }
 0x14a   : > { %2028 = vmatpush3.bf16.msra.mxu1 %v2025_v11  ;;  %v952_v11 = vld [vmem:[#allocation11 + $0xb0] sm:$0xff]  ;;  %v2077_v21 = vpack.c.bf16 %v953_v14, %v950_v13  ;;  %v1172_v13 = vld [vmem:[#allocation14 + $0x98] sm:$0xff] }
 0x14b   : > { %2030 = vmatprep.subr.bf16.mxu1 %v2029_v20  ;;  %v2045_v16 = vpack.c.bf16 %v952_v11, %v949_v10  ;;  %v1153_v10 = vld [vmem:[#allocation14] sm:$0xff]  ;;  %v1154_v11 = vld [vmem:[#allocation14 + $0x8] sm:$0xff] }
 0x14c   : > { %2000 = vmatpush3.bf16.msra.mxu0 %v1999_v18  ;;  %v951_v18 = vld [vmem:[#allocation11 + $0xa8] sm:$0xff] }
 0x14d   : > { %2034 = vmatprep.subr.bf16.mxu0 %v2033_v23  ;;  %v959_v23 = vld [vmem:[#allocation11 + $0xe8] sm:$0xff]  ;;  %v2047_v24 = vpack.c.bf16 %v951_v18, %v948_v17  ;;  %v2099_v17 = vpack.c.bf16 %v1154_v11, %v1153_v10  ;;  %v1183_v11 = vld [vmem:[#allocation14 + $0xf0] sm:$0xff] }
 0x14e   : > { %2032 = vmatpush3.bf16.msra.mxu1 %v2029_v20  ;;  %v958_v20 = vld [vmem:[#allocation11 + $0xe0] sm:$0xff] }
 0x14f   : > { %2066 = vmatprep.subr.bf16.mxu1 %v2065_v26  ;;  %v2049_v25 = vpack.c.bf16 %v958_v20, %v955_v19 }
 0x202   : > { %v633_v36 = vpop.f32.mrb[0].mxu0 }
 0x203   : > { %v634_v37 = vadd.f32 %v633_v36, %v555_v33  ;;  %v635_v38 = vpop.f32.mrb[1].mxu0 }
 0x204   : > { %v1799_v39 = vpop.f32.mrb[0].mxu1  ;;  %v636_v42 = vadd.f32 %v635_v38, %v559_v34  ;;  %v963_v38 = vld [vmem:[#allocation11 + $0x108] sm:$0xff] }
 0x205   : > { %v716_v43 = vadd.f32 %v1799_v39, %v563_v35  ;;  %v710_v44 = vpop.f32.mrb[1].mxu1  ;;  %v719_v54 = vmax.f32 %v634_v37, 0.0  ;;  %v960_v37 = vld [vmem:[#allocation11 + $0xf0] sm:$0xff] }
 0x206   : > { %v711_v47 = vadd.f32 %v710_v44, %v563_v35  ;;  %v720_v50 = vmax.f32 %v636_v42, 0.0  ;;  %v639_v52 = vpop.f32.mrb[2].mxu0  ;;  %v2055_v39 = vpack.c.bf16 %v963_v38, %v960_v37  ;;  %v962_v42 = vld [vmem:[#allocation11 + $0x100] sm:$0xff]  ;;  %v965_v44 = vld [vmem:[#allocation11 + $0x118] sm:$0xff]  ;;  %v1158_v37 = vld [vmem:[#allocation14 + $0x28] sm:$0xff] }
 0x207   : > { %v724_v51 = vmax.f32 %v716_v43, 0.0  ;;  %v640_v56 = vadd.f32 %v639_v52, %v555_v33  ;;  %v641_v57 = vpop.f32.mrb[3].mxu0  ;;  %v964_v33 = vld [vmem:[#allocation11 + $0x110] sm:$0xff]  ;;  %v2057_v43 = vpack.c.bf16 %v970_v41, %v967_v40  ;;  %v1189_v40 = vld [vmem:[#allocation14 + $0x120] sm:$0xff] }
 0x208   : > { %v721_v55 = vmax.f32 %v711_v47, 0.0  ;;  %v642_v61 = vadd.f32 %v641_v57, %v559_v34  ;;  %844 = vmatprep.mubr.f32.mxu0 %v720_v50  ;;  %v2081_v34 = vpack.c.bf16 %v959_v23, %v956_v22  ;;  %v2053_v36 = vpack.c.bf16 %v964_v33, %v961_v30  ;;  %v976_v50 = vld [vmem:[#allocation11 + $0x170] sm:$0xff]  ;;  %v1156_v22 = vld [vmem:[#allocation14 + $0x18] sm:$0xff]  ;;  %v1173_v23 = vld [vmem:[#allocation14 + $0xa0] sm:$0xff] }
 0x209   : > { %845 = vmatmul.mubr.f32.vlgmr.msra.gmra.mrb[4].mxu0 %v719_v54  ;;  %v722_v6 = vmax.f32 %v640_v56, 0.0  ;;  %v2085_v47 = vpack.c.bf16 %v965_v44, %v962_v42  ;;  %v2061_v52 = vpack.c.bf16 %v976_v50, %v973_v49  ;;  %v972_v54 = vld [vmem:[#allocation11 + $0x150] sm:$0xff]  ;;  %v975_v56 = vld [vmem:[#allocation11 + $0x168] sm:$0xff]  ;;  %v1192_v49 = vld [vmem:[#allocation14 + $0x138] sm:$0xff] }
 0x20a   : > { %1832 = vmatprep.mubr.f32.mxu1 %v721_v55  ;;  %v723_v4 = vmax.f32 %v642_v61, 0.0  ;;  %2036 = vmatpush1.bf16.msra.mxu0 %v2035_v53  ;;  %v971_v53 = vld [vmem:[#allocation11 + $0x148] sm:$0xff]  ;;  %v2063_v57 = vpack.c.bf16 %v975_v56, %v972_v54  ;;  %v1175_v38 = vld [vmem:[#allocation14 + $0xb0] sm:$0xff]  ;;  %v1180_v56 = vld [vmem:[#allocation14 + $0xd8] sm:$0xff] }
 0x20b   : > { %1833 = vmatmul.mubr.f32.vlgmr.msra.gmra.mrb[2].mxu1 %v724_v51  ;;  %2038 = vmatprep.subr.bf16.mxu0 %v2037_v58  ;;  %v968_v51 = vld [vmem:[#allocation11 + $0x130] sm:$0xff]  ;;  %v974_v58 = vld [vmem:[#allocation11 + $0x160] sm:$0xff] }
 0x20c   : > { %2068 = vmatpush3.bf16.msra.mxu1 %v2065_v26  ;;  %849 = vmatprep.mubr.f32.mxu0 %v723_v4  ;;  %v954_v26 = vld [vmem:[#allocation11 + $0xc0] sm:$0xff]  ;;  %v2089_v55 = vpack.c.bf16 %v971_v53, %v968_v51  ;;  %v2093_v60 = vpack.c.bf16 %v977_v59, %v974_v58  ;;  %v1190_v41 = vld [vmem:[#allocation14 + $0x128] sm:$0xff]  ;;  %v1159_v44 = vld [vmem:[#allocation14 + $0x30] sm:$0xff] }
 0x20d   : > { %2070 = vmatprep.subr.bf16.mxu1 %v2069_v1  ;;  %850 = vmatmul.mubr.f32.gmra.mrb[6].mxu0 %v722_v6  ;;  %v2051_v35 = vpack.c.bf16 %v957_v27, %v954_v26  ;;  %v1169_v61 = vld [vmem:[#allocation14 + $0x80] sm:$0xff]  ;;  %v1188_v26 = vld [vmem:[#allocation14 + $0x118] sm:$0xff]  ;;  %v2111_v50 = vpack.c.bf16 %v1160_v45, %v1159_v44  ;;  %v1162_v54 = vld [vmem:[#allocation14 + $0x48] sm:$0xff] }
 0x20e   : > { %2040 = vmatpush1.bf16.msra.mxu0 %v2039_v5  ;;  %1059 = vmatprep.mubr.f32.mxu0 %v2683_v0  ;;  %v2097_v63 = vpack.c.bf16 %v1170_v62, %v1169_v61  ;;  %v1161_v53 = vld [vmem:[#allocation14 + $0x40] sm:$0xff]  ;;  %v1194_v58 = vld [vmem:[#allocation14 + $0x148] sm:$0xff]  ;;  %v1163_v62 = vld [vmem:[#allocation14 + $0x50] sm:$0xff] }
 0x20f   : > { %2042 = vmatprep.subr.bf16.mxu0 %v2041_v7  ;;  %v1604_v7 = vld [vmem:[#allocation10] ss:$0 sm:$0xff]  ;;  %v2115_v59 = vpack.c.bf16 %v1162_v54, %v1161_v53 }
 0x210   : > { %2072 = vmatpush3.bf16.msra.mxu1 %v2069_v1  ;;  %v1185_v1 = vld [vmem:[#allocation14 + $0x100] sm:$0xff] }
 0x211   : > { %2074 = vmatprep.subr.bf16.mxu1 %v2073_v12  ;;  %v2129_v3 = vpack.c.bf16 %v1186_v2, %v1185_v1  ;;  %v1181_v1 = vld [vmem:[#allocation14 + $0xe0] sm:$0xff]  ;;  %v1182_v2 = vld [vmem:[#allocation14 + $0xe8] sm:$0xff] }
 0x212   : > { %2044 = vmatpush1.bf16.msra.mxu0 %v2043_v15 }
 0x213   : > { %2046 = vmatprep.subr.bf16.mxu0 %v2045_v16 }
 0x214   : > { %2076 = vmatpush3.bf16.msra.mxu1 %v2073_v12  ;;  %v1171_v12 = vld [vmem:[#allocation14 + $0x90] sm:$0xff] }
 0x215   : > { %2078 = vmatprep.subr.bf16.mxu1 %v2077_v21  ;;  %v2101_v20 = vpack.c.bf16 %v1172_v13, %v1171_v12  ;;  %v1184_v12 = vld [vmem:[#allocation14 + $0xf8] sm:$0xff]  ;;  %v1197_v13 = vld [vmem:[#allocation14 + $0x160] sm:$0xff] }
 0x216   : > { %2048 = vmatpush1.bf16.msra.mxu0 %v2047_v24  ;;  %v1174_v24 = vld [vmem:[#allocation14 + $0xa8] sm:$0xff] }
 0x217   : > { %2050 = vmatprep.subr.bf16.mxu0 %v2049_v25  ;;  %v1187_v25 = vld [vmem:[#allocation14 + $0x110] sm:$0xff] }
 0x218   : > { %2080 = vmatpush3.bf16.msra.mxu1 %v2077_v21  ;;  %v1155_v21 = vld [vmem:[#allocation14 + $0x10] sm:$0xff] }
 0x219   : > { %2082 = vmatprep.subr.bf16.mxu1 %v2081_v34  ;;  %v2103_v30 = vpack.c.bf16 %v1156_v22, %v1155_v21  ;;  %v1200_v21 = vld [vmem:[#allocation14 + $0x178] sm:$0xff] }
 0x21a   : > { %2052 = vmatpush1.bf16.msra.mxu0 %v2051_v35  ;;  %v2133_v35 = vpack.c.bf16 %v1188_v26, %v1187_v25 }
 0x21b   : > { %2054 = vmatprep.subr.bf16.mxu0 %v2053_v36  ;;  %v1157_v36 = vld [vmem:[#allocation14 + $0x20] sm:$0xff] }
 0x21c   : > { %2084 = vmatpush3.bf16.msra.mxu1 %v2081_v34  ;;  %v2105_v34 = vpack.c.bf16 %v1174_v24, %v1173_v23  ;;  %v2107_v42 = vpack.c.bf16 %v1158_v37, %v1157_v36  ;;  %v978_v23 = vld [vmem:[#allocation13] sm:$0x7] }
 0x21d   : > { %2086 = vmatprep.subr.bf16.mxu1 %v2085_v47  ;;  %v983_v24 = vrot.slane %v978_v23, %v554_v29  ;;  %v987_v25 = vrot.slane %v978_v23, %v558_v31 }
 0x21e   : > { %2056 = vmatpush1.bf16.msra.mxu0 %v2055_v39  ;;  %v1176_v39 = vld [vmem:[#allocation14 + $0xb8] sm:$0xff] }
 0x21f   : > { %2058 = vmatprep.subr.bf16.mxu0 %v2057_v43  ;;  %v2137_v43 = vpack.c.bf16 %v1190_v41, %v1189_v40 }
 0x220   : > { %2088 = vmatpush3.bf16.msra.mxu1 %v2085_v47  ;;  %v1178_v47 = vld [vmem:[#allocation14 + $0xc8] sm:$0xff] }
 0x221   : > { %2090 = vmatprep.subr.bf16.mxu1 %v2089_v55  ;;  %v2113_v51 = vpack.c.bf16 %v1178_v47, %v1177_v46 }
 0x222   : > { %2060 = vmatpush1.bf16.msra.mxu0 %v2059_v48  ;;  %v1191_v48 = vld [vmem:[#allocation14 + $0x130] sm:$0xff] }
 0x223   : > { %2062 = vmatprep.subr.bf16.mxu0 %v2061_v52  ;;  %v2141_v52 = vpack.c.bf16 %v1192_v49, %v1191_v48 }
 0x224   : > { %2092 = vmatpush3.bf16.msra.mxu1 %v2089_v55  ;;  %v1179_v55 = vld [vmem:[#allocation14 + $0xd0] sm:$0xff] }
 0x225   : > { %2094 = vmatprep.subr.bf16.mxu1 %v2093_v60 }
 0x226   : > { %2064 = vmatpush1.bf16.msra.mxu0 %v2063_v57  ;;  %v1193_v57 = vld [vmem:[#allocation14 + $0x140] sm:$0xff] }
 0x227   : > { %2098 = vmatprep.subr.bf16.mxu0 %v2097_v63  ;;  %v2145_v61 = vpack.c.bf16 %v1194_v58, %v1193_v57  ;;  %v1164_v63 = vld [vmem:[#allocation14 + $0x58] sm:$0xff] }
 0x228   : > { %2096 = vmatpush3.bf16.msra.mxu1 %v2093_v60  ;;  %v2117_v60 = vpack.c.bf16 %v1180_v56, %v1179_v55 }
 0x229   : > { %2130 = vmatprep.subr.bf16.mxu1 %v2129_v3 }
 0x2dc   : > { %v1667_v4 = vpop.f32.mrb[4].mxu0 }
 0x2dd   : > { %v1668_v5 = vpop.f32.mrb[5].mxu0 }
 0x2de   : > { %v1834_v6 = vpop.f32.mrb[2].mxu1  ;;  %v1669_v8 = vadd.f32 %v1668_v5, %v1667_v4  ;;  %v1196_v4 = vld [vmem:[#allocation14 + $0x158] sm:$0xff]  ;;  %v2119_v5 = vpack.c.bf16 %v1164_v63, %v1163_v62 }
 0x2df   : > { %v921_v9 = vpop.f32.mrb[3].mxu1 }
 0x2e0   : > { %v847_v14 = vadd.f32 %v1669_v8, %v1604_v7  ;;  %v1670_v15 = vpop.f32.mrb[6].mxu0  ;;  %v1165_v8 = vld [vmem:[#allocation14 + $0x60] sm:$0xff] }
 0x2e1   : > { %v1671_v16 = vpop.f32.mrb[7].mxu0 }
 0x2e2   : > { %v922_v18 = vadd.f32 %v921_v9, %v847_v14  ;;  %v1672_v19 = vadd.f32 %v1671_v16, %v1670_v15  ;;  %v1166_v9 = vld [vmem:[#allocation14 + $0x68] sm:$0xff]  ;;  %v2125_v14 = vpack.c.bf16 %v1184_v12, %v1183_v11  ;;  %v1167_v16 = vld [vmem:[#allocation14 + $0x70] sm:$0xff] }
 0x2e3   : > { %v2123_v10 = vpack.c.bf16 %v1166_v9, %v1165_v8  ;;  %v1198_v15 = vld [vmem:[#allocation14 + $0x168] sm:$0xff] }
 0x2e4   : > { %1358 = vst [vmem:[%s3091_s2] sm:$0xff] %v922_v18  ;;  %v852_v27 = vadd.f32 %v1672_v19, %v1604_v7  ;;  %1060 = vmatmul.mubr.f32.vlgmr.msra.gmra.mrb[8].mxu0 %v922_v18  ;;  %1867 = vmatprep.mubr.f32.mxu1 %v922_v18  ;;  %v2153_v18 = vpack.c.bf16 %v1198_v15, %v1197_v13 }
 0x2e5   : > { %1065 = vmatprep.mubr.f32.mxu0 %v2683_v0  ;;  %2100 = vmatpush3.bf16.msra.mxu0 %v2099_v17  ;;  %v2109_v0 = vpack.c.bf16 %v1176_v39, %v1175_v38  ;;  %v1168_v17 = vld [vmem:[#allocation14 + $0x78] sm:$0xff] }
 0x2e6   : > { %v927_v33 = vadd.f32 %v1834_v6, %v852_v27  ;;  %2102 = vmatprep.subr.bf16.mxu0 %v2101_v20  ;;  %v2121_v6 = vpack.c.bf16 %v1182_v2, %v1181_v1  ;;  %v2127_v19 = vpack.c.bf16 %v1168_v17, %v1167_v16  ;;  %v1199_v20 = vld [vmem:[#allocation14 + $0x170] sm:$0xff] }
 0x2e7   : > { %v2157_v22 = vpack.c.bf16 %v1200_v21, %v1199_v20 }
 0x2e8   : > { %1066 = vmatmul.mubr.f32.gmra.mrb[10].mxu0 %v927_v33  ;;  %1359 = vst [vmem:[%s3091_s2 + $0x8] sm:$0xff] %v927_v33  ;;  %1868 = vmatmul.mubr.f32.vlgmr.msra.gmra.mrb[4].mxu1 %v927_v33  ;;  %v991_v33 = vrot.slane %v978_v23, %v562_v32 }
 0x2e9   : > { %2104 = vmatpush3.bf16.msra.mxu0 %v2103_v30  ;;  %2132 = vmatpush3.bf16.msra.mxu1 %v2129_v3  ;;  %v1195_v3 = vld [vmem:[#allocation14 + $0x150] sm:$0xff] }
 0x2ea   : > { %2106 = vmatprep.subr.bf16.mxu0 %v2105_v34  ;;  %2134 = vmatprep.subr.bf16.mxu1 %v2133_v35  ;;  %v2149_v7 = vpack.c.bf16 %v1196_v4, %v1195_v3 }
 0x2ed   : > { %2108 = vmatpush3.bf16.msra.mxu0 %v2107_v42  ;;  %2136 = vmatpush3.bf16.msra.mxu1 %v2133_v35 }
 0x2ee   : > { %2110 = vmatprep.subr.bf16.mxu0 %v2109_v0  ;;  %2138 = vmatprep.subr.bf16.mxu1 %v2137_v43 }
 0x2f1   : > { %2112 = vmatpush3.bf16.msra.mxu0 %v2111_v50  ;;  %2140 = vmatpush3.bf16.msra.mxu1 %v2137_v43 }
 0x2f2   : > { %2114 = vmatprep.subr.bf16.mxu0 %v2113_v51  ;;  %2142 = vmatprep.subr.bf16.mxu1 %v2141_v52 }
 0x2f5   : > { %2116 = vmatpush3.bf16.msra.mxu0 %v2115_v59  ;;  %2144 = vmatpush3.bf16.msra.mxu1 %v2141_v52 }
 0x2f6   : > { %2118 = vmatprep.subr.bf16.mxu0 %v2117_v60  ;;  %2146 = vmatprep.subr.bf16.mxu1 %v2145_v61 }
 0x2f9   : > { %2120 = vmatpush3.bf16.msra.mxu0 %v2119_v5  ;;  %2148 = vmatpush3.bf16.msra.mxu1 %v2145_v61 }
 0x2fa   : > { %2122 = vmatprep.subr.bf16.mxu0 %v2121_v6  ;;  %2150 = vmatprep.subr.bf16.mxu1 %v2149_v7 }
 0x2fd   : > { %2152 = vmatpush3.bf16.msra.mxu1 %v2149_v7  ;;  %2124 = vmatpush3.bf16.msra.mxu0 %v2123_v10 }
 0x2fe   : > { %2126 = vmatprep.subr.bf16.mxu0 %v2125_v14  ;;  %2154 = vmatprep.subr.bf16.mxu1 %v2153_v18 }
 0x301   : > { %2128 = vmatpush3.bf16.msra.mxu0 %v2127_v19  ;;  %2156 = vmatpush3.bf16.msra.mxu1 %v2153_v18 }
 0x302   : > { %2158 = vmatprep.subr.bf16.mxu1 %v2157_v22 }
 0x305   : > { %2160 = vmatpush3.bf16.msra.mxu1 %v2157_v22 }
 0x3b7   : > { %v1061_v26 = vpop.f32.mrb[8].mxu0 }
 0x3b8   : > { %v1062_v27 = vadd.f32 %v1061_v26, %v983_v24  ;;  %v1063_v30 = vpop.f32.mrb[9].mxu0 }
 0x3b9   : > { %v1064_v34 = vadd.f32 %v1063_v30, %v987_v25 }
 0x3ba   : > { %v1147_v38 = vmax.f32 %v1062_v27, 0.0 }
 0x3bb   : > { %v1148_v35 = vmax.f32 %v1064_v34, 0.0  ;;  %v1067_v36 = vpop.f32.mrb[10].mxu0  ;;  %v1869_v37 = vpop.f32.mrb[4].mxu1 }
 0x3bc   : > { %v1068_v39 = vadd.f32 %v1067_v36, %v983_v24  ;;  %v1144_v40 = vadd.f32 %v1869_v37, %v991_v33  ;;  %v1069_v41 = vpop.f32.mrb[11].mxu0  ;;  %v1138_v29 = vpop.f32.mrb[5].mxu1 }
 0x3bd   : > { %v1070_v42 = vadd.f32 %v1069_v41, %v987_v25  ;;  %v1139_v31 = vadd.f32 %v1138_v29, %v991_v33  ;;  %1272 = vmatprep.mubr.f32.mxu0 %v1148_v35 }
 0x3be   : > { %1273 = vmatmul.mubr.f32.vlgmr.msra.gmra.mrb[12].mxu0 %v1147_v38  ;;  %v1150_v0 = vmax.f32 %v1068_v39, 0.0  ;;  %v1152_v43 = vmax.f32 %v1144_v40, 0.0 }
 0x3bf   : > { %v1151_v28 = vmax.f32 %v1070_v42, 0.0  ;;  %v1149_v32 = vmax.f32 %v1139_v31, 0.0 }
 0x3c1   : > { %1277 = vmatprep.mubr.f32.mxu0 %v1151_v28  ;;  %1902 = vmatprep.mubr.f32.mxu1 %v1149_v32 }
 0x3c2   : > { %1278 = vmatmul.mubr.f32.gmra.mrb[14].mxu0 %v1150_v0  ;;  %1903 = vmatmul.mubr.f32.vlgmr.msra.gmra.mrb[6].mxu1 %v1152_v43 }
 0x3c3   : > { %2567 = shalt.err (!%p2564_p9)
}
 0x3c4   : > { %s2568_s11 = scalar_lea.hbm %s3111_s28, 256  ;;  %s2572_s12 = scalar_lea.hbm %s3244_s9, 512 }
 0x3c5   : > { %p2569_p4 = scmp.ne.s32.totalorder %s3111_s28, %s2568_s11  ;;  %p2573_p2 = scmp.lt.u32.totalorder %s3111_s28, %s3244_s9 }
 0x3c6   : > { %p2574_p6 = scmp.lt.u32.totalorder %s2572_s12, %s2568_s11  ;;  %p2576_p10 = scmp.lt.u32.totalorder %s2568_s11, %s3111_s28 }
 0x3c7   : > { %p2570_p3 = pnand %p2569_p4, %p3245_p1 }
 0x3c8   : > { %p2575_p5 = por %p2574_p6, %p2573_p2 }
 0x3c9   : > { %p2571_p0 = pneg %p2570_p3 }
 0x3ca   : > { %p2577_p11 = por %p2576_p10, %p2575_p5 }
 0x3cc   : > { %p2578_p12 = pnand %p2577_p11, %p2571_p0 }
 0x3ce   : > { %2581 = shalt.err (!%p2578_p12)
}
 0x3cf   : > { %s3216_s17 = smov 128   ;;  %s2686_s21 = smov 8   ;;  %v1605_v46 = vld [vmem:[#allocation16] ss:$0 sm:$0xff] }
 0x3d0   : > { %2196 = dma.vmem_to_hbm [thread:$0]  (%p3245_p1), %s3104_s20, 256, %s3111_s28, %s1368_s24, %s3216_s17, %s3216_s17, %s2686_s21  }
 0x3d1   : > { %s489_s11 = scalar_lea.vmem [#allocation17], %s3048_s10  ;;  %s3246_s24 = sld [smem:[#allocation29_spill]] }
 0x3d2   : > { %s1381_s2 = sshll.u32 %s489_s11, 4  ;;  %s1363_s12 = scalar_lea.sflag [#allocation4], %s3045_s22  ;;  %s3141_s2 = int_to_ptr.vmem [resolvable:$true] %s1381_s2 }
 0x3d3   : > { %s2582_s29 = scalar_lea.vmem %s3141_s2, 256  ;;  %s2687_s10 = smov [#allocation17]  }
 0x3d4   : > { %p2583_p13 = scmp.ne.s32.totalorder %s3141_s2, %s2582_s29  ;;  %s2586_s1 = sshll.u32 %s2687_s10, 4  ;;  %s2587_s1 = int_to_ptr.vmem [resolvable:$false] %s2586_s1 }
 0x3d5   : > { %s2588_s17 = scalar_lea.vmem %s2587_s1, 512  ;;  %p2589_p9 = scmp.lt.s32.totalorder %s3141_s2, %s2587_s1 }
 0x3d6   : > { %p2584_p8 = pnand %p2583_p13, %p3245_p1  ;;  %p2590_p4 = scmp.lt.s32.totalorder %s2588_s17, %s2582_s29 }
 0x3d7   : > { %s3148_s27 = scalar_lea.hbm %s3246_s24, %s1615_s26 }
 0x3d8   : > { %p2585_p7 = pneg %p2584_p8  ;;  %p2591_p3 = por %p2590_p4, %p2589_p9 }
 0x3da   : > { %p2592_p0 = pnand %p2591_p3, %p2585_p7 }
 0x491   : > { %v1741_v44 = vpop.f32.mrb[12].mxu0 }
 0x492   : > { %v1742_v45 = vpop.f32.mrb[13].mxu0 }
 0x493   : > { %v1743_v47 = vadd.f32 %v1742_v45, %v1741_v44 }
 0x495   : > { %v1744_v48 = vpop.f32.mrb[14].mxu0  ;;  %v1904_v49 = vpop.f32.mrb[6].mxu1  ;;  %v1275_v50 = vadd.f32 %v1743_v47, %v1605_v46 }
 0x496   : > { %v1745_v51 = vpop.f32.mrb[15].mxu0  ;;  %v1349_v52 = vpop.f32.mrb[7].mxu1 }
 0x497   : > { %v1746_v53 = vadd.f32 %v1745_v51, %v1744_v48  ;;  %v1350_v54 = vadd.f32 %v1349_v52, %v1275_v50 }
 0x499   : > { %v1280_v55 = vadd.f32 %v1746_v53, %v1605_v46  ;;  %1360 = vst [vmem:[%s489_s11] sm:$0xff] %v1350_v54 }
 0x49b   : > { %v1355_v56 = vadd.f32 %v1904_v49, %v1280_v55 }
 0x49d   : > { %1361 = vst [vmem:[%s489_s11 + $0x8] sm:$0xff] %v1355_v56 }
 0x49e   : > { %2595 = shalt.err (!%p2592_p0)
}
 0x49f   : > { %s2596_s19 = scalar_lea.hbm %s3148_s27, 256  ;;  %s2600_s20 = scalar_lea.hbm %s3246_s24, 512 }
 0x4a0   : > { %p2597_p2 = scmp.ne.s32.totalorder %s3148_s27, %s2596_s19  ;;  %p2601_p10 = scmp.lt.u32.totalorder %s3148_s27, %s3246_s24 }
 0x4a1   : > { %p2602_p11 = scmp.lt.u32.totalorder %s2600_s20, %s2596_s19  ;;  %p2604_p13 = scmp.lt.u32.totalorder %s2596_s19, %s3148_s27 }
 0x4a2   : > { %p2598_p6 = pnand %p2597_p2, %p3245_p1 }
 0x4a3   : > { %p2603_p12 = por %p2602_p11, %p2601_p10 }
 0x4a4   : > { %p2599_p5 = pneg %p2598_p6 }
 0x4a5   : > { %p2605_p8 = por %p2604_p13, %p2603_p12 }
 0x4a7   : > { %p2606_p7 = pnand %p2605_p8, %p2599_p5 }
 0x4a9   : > { %2609 = shalt.err (!%p2606_p7)
}
 0x4aa   : > { %s3247_s17 = smov 128  }
 0x4ab   : > { %2195 = dma.vmem_to_hbm [thread:$0]  (%p3245_p1), %s3141_s2, 256, %s3148_s27, %s1363_s12, %s3247_s17, %s3247_s17, %s2686_s21  }
 0x4ac PF: > { %s1412_s29 = sand.u32 1, %s2656_s13   ;;  %p3248_p9 = scmp.ne.s32.totalorder %s3233_s25, 0 }
 0x4ad   : > { %p3249_p4 = scmp.ge.s32.totalorder %s2668_s16, 2  ;;  %s1413_s1 = scalar_lea.sflag [#allocation4], %s1412_s29 }
 0x4af   : > { %p2229_p3 = pnand %p3249_p4, %p3248_p9 }
 0x4b1   : > { %2647 = dma.done.wait (!%p2229_p3), %s1413_s1, 256  }
 0x4b2   : > { %2649 = vsyncadd (!%p2229_p3), %s1413_s1, 4294967040  ;;  %s1422_s30 = scalar_lea.sflag [#allocation19], %s1412_s29 }
 0x4b3   : > { %2651 = dma.done.wait (!%p2229_p3), %s1422_s30, 256  }
 0x4b4   : > { %2653 = vsyncadd (!%p2229_p3), %s1422_s30, 4294967040  ;;  %p31_p1 = scmp.ge.s32.totalorder %s2963_s23, 4   ;;  %s3250_s13 = smov %s2660_s14 }
 0x4b5   : > { %s3251_s14 = smov %s2664_s15  ;;  %s3252_s15 = smov %s2974_s18 }
 0x4b6   : > { %s3253_s16 = smov %s2963_s23  ;;  %33 = sbr.rel (!%p31_p1) target bundleno = 16 (0x10), region = 150 }
 0x4bd   :  { %1427 = vsyncpa [#allocation3], 1 }
 0x4be   :  { %1429 = vsyncpa [#allocation3 + $0x1], 1 }
 0x4bf   :  { %1430 = vsyncpa [#allocation6], 1 }
 0x4c0   :  { %1431 = vsyncpa [#allocation9], 1 }
 0x4c1   :  { %1432 = vsyncpa [#allocation12], 1 }
 0x4c2   :  { %1433 = vsyncpa [#allocation15], 1 }
 0x4c3   :  { %1434 = vsyncpa [#allocation4], 1 }
 0x4c4   :  { %1436 = vsyncpa [#allocation4 + $0x1], 1 }
 0x4c5   :  { %1437 = vsyncpa [#allocation19], 1 }
 0x4c6   :  { %1439 = vsyncpa [#allocation19 + $0x1], 1 }

</bundles_post_ra>
